<compile_context>
chip_gen: v7x
topology: tpu7x:2x2x1
jax: 0.10.0
libtpu: 0.0.40
codegen_flags: <defaults>
</compile_context>

<pallas_src>
import jax
import jax.numpy as jnp
from jax.experimental import pallas as pl
from jax.experimental.pallas import tpu as pltpu


def spatial_basic_block_kernel(x_ref, w1_ref, b1_ref, w2_ref, b2_ref,
                               w3_ref, b3_ref, o_ref, pad_ref, col_ref):
    F, H, W, Cin = x_ref.shape
    P = w1_ref.shape[1]
    Cout = w3_ref.shape[1]
    R = F * H * W

    xf = x_ref[...].astype(jnp.float32).reshape(R, Cin)      # (R, Cin)

    # conv1 (1x1x1) + bn1 (folded) + relu  ->  one (R,Cin)x(Cin,P) matmul.
    h1 = jnp.dot(xf, w1_ref[...], preferred_element_type=jnp.float32) + b1_ref[...]
    h1 = jnp.maximum(h1, 0.0)                                 # (R, P)

    # conv2 (1,3,3), pad (0,1,1) + bn2 (folded) + relu via im2col:
    # zero only the 1-pixel border of the padded scratch (interior is fully
    # overwritten each step), stage the 9 shifted taps side-by-side into one
    # (R, 9P) tile and do a single matmul against w2 reshaped to (9P, P).
    zrow = jnp.zeros((F, 1, W + 2, P), jnp.float32)
    zcol = jnp.zeros((F, H + 2, 1, P), jnp.float32)
    pad_ref[:, 0:1, :, :] = zrow
    pad_ref[:, H + 1:H + 2, :, :] = zrow
    pad_ref[:, :, 0:1, :] = zcol
    pad_ref[:, :, W + 1:W + 2, :] = zcol
    pad_ref[:, 1:H + 1, 1:W + 1, :] = h1.reshape(F, H, W, P)

    for ky in range(3):
        for kx in range(3):
            t = ky * 3 + kx
            col_ref[:, t * P:(t + 1) * P] = (
                pad_ref[:, ky:ky + H, kx:kx + W, :].reshape(R, P))

    h2 = jnp.dot(col_ref[...], w2_ref[...],
                 preferred_element_type=jnp.float32) + b2_ref[...]
    h2 = jnp.maximum(h2, 0.0)                                 # (R, P)

    # conv3 (1x1x1) + bn3 (folded), identity residual, relu.
    h3 = jnp.dot(h2, w3_ref[...], preferred_element_type=jnp.float32) + b3_ref[...]
    out = jnp.maximum(h3 + xf, 0.0)                           # Cin == Cout
    o_ref[...] = out.reshape(F, H, W, Cout).astype(o_ref.dtype)


def spatial_basic_block(x_frames, w1, b1, w2, b2, w3, b3, *,
                        frames_per_block=None):
    """x_frames: (N*T, H, W, Cin); w2 pre-reshaped HWIO -> (9*P, P)."""
    NT, H, W, Cin = x_frames.shape
    P = w1.shape[1]
    Cout = w3.shape[1]
    # Identity residual requires inplanes == planes*expansion and stride 1.
    assert Cin == Cout, "identity residual needs Cin == planes*expansion"
    assert w2.shape == (9 * P, P), "w2 must be reshaped HWIO -> (9P, P)"

    if frames_per_block is None:
        # Largest divisor of NT <= 8. Blocks here are tiny; for real-model
        # shapes re-derive against scoped VMEM (16 MiB v5e, 32 MiB v6e/v7x;
        # v7x physical VMEM is 64 MiB) counting double-buffered in+out blocks
        # plus the padded/im2col scratch.
        frames_per_block = next(f for f in range(min(NT, 8), 0, -1)
                                if NT % f == 0)
    F = frames_per_block
    assert NT % F == 0, "frames_per_block must divide N*T"

    def full_spec(shape):
        return pl.BlockSpec(shape, lambda i, _n=len(shape): (0,) * _n)

    return pl.pallas_call(
        spatial_basic_block_kernel,
        out_shape=jax.ShapeDtypeStruct((NT, H, W, Cout), x_frames.dtype),
        grid_spec=pltpu.PrefetchScalarGridSpec(
            num_scalar_prefetch=0,
            grid=(NT // F,),
            in_specs=[
                pl.BlockSpec((F, H, W, Cin), lambda i: (i, 0, 0, 0)),
                full_spec(w1.shape), full_spec(b1.shape),
                full_spec(w2.shape), full_spec(b2.shape),
                full_spec(w3.shape), full_spec(b3.shape),
            ],
            out_specs=pl.BlockSpec((F, H, W, Cout), lambda i: (i, 0, 0, 0)),
            scratch_shapes=[
                pltpu.VMEM((F, H + 2, W + 2, P), jnp.float32),   # padded h1
                pltpu.VMEM((F * H * W, 9 * P), jnp.float32),     # im2col tile
            ],
        ),
        compiler_params=pltpu.CompilerParams(
            # Frames are independent (no carried accumulator): parallel lets
            # v7x shard the grid across both TensorCores.
            dimension_semantics=("parallel",)),
    )(x_frames, w1, b1, w2, b2, w3, b3)


def fold_bn(w, b, gamma, beta, mean, var, eps=1e-5):
    scale = gamma / jnp.sqrt(var + eps)        # per output channel
    return w * scale, (b - mean) * scale + beta


def reference(x_frames, w1, b1, w2_hwio, b2, w3, b3):
    hi = jax.lax.Precision.HIGHEST
    h1 = jax.nn.relu(jnp.einsum('nhwc,cp->nhwp', x_frames, w1, precision=hi) + b1)
    h2 = jax.lax.conv_general_dilated(
        h1, w2_hwio, window_strides=(1, 1), padding='SAME',
        dimension_numbers=('NHWC', 'HWIO', 'NHWC'), precision=hi)
    h2 = jax.nn.relu(h2 + b2)
    h3 = jnp.einsum('nhwp,pq->nhwq', h2, w3, precision=hi) + b3
    return jax.nn.relu(h3 + x_frames)


if __name__ == "__main__":
    # Module-consistent shapes: base_channel=32, expansion=4 -> a stage1
    # SpatialBasicBlock with inplanes = planes*expansion = 128 (identity
    # residual, stride (1,1,1), downsample=None). C=128 makes I/O lane-dense.
    N, T, H, W = 2, 4, 8, 8
    planes = 32
    Cin = planes * 4      # 128
    Cout = planes * 4     # 128

    key = jax.random.PRNGKey(0)
    ks = jax.random.split(key, 10)
    x_ncthw = jax.random.normal(ks[0], (N, Cin, T, H, W), jnp.float32)

    # Conv weights in channels-last-friendly layouts:
    #   conv1: torch (P, Cin, 1,1,1) -> (Cin, P)
    #   conv2: torch (P, P, 1, 3, 3) -> HWIO (3, 3, P, P)
    #   conv3: torch (4P, P, 1,1,1)  -> (P, 4P)
    w1 = 0.1 * jax.random.normal(ks[1], (Cin, planes), jnp.float32)
    b1 = 0.1 * jax.random.normal(ks[2], (planes,), jnp.float32)
    w2 = 0.1 * jax.random.normal(ks[3], (3, 3, planes, planes), jnp.float32)
    b2 = 0.1 * jax.random.normal(ks[4], (planes,), jnp.float32)
    w3 = 0.1 * jax.random.normal(ks[5], (planes, Cout), jnp.float32)
    b3 = 0.1 * jax.random.normal(ks[6], (Cout,), jnp.float32)

    def bn_params(k, c):
        k1, k2, k3, k4 = jax.random.split(k, 4)
        gamma = 1.0 + 0.1 * jax.random.normal(k1, (c,), jnp.float32)
        beta = 0.1 * jax.random.normal(k2, (c,), jnp.float32)
        mean = 0.1 * jax.random.normal(k3, (c,), jnp.float32)
        var = jax.random.uniform(k4, (c,), jnp.float32, minval=0.5, maxval=1.5)
        return gamma, beta, mean, var

    w1f, b1f = fold_bn(w1, b1, *bn_params(ks[7], planes))
    w2f, b2f = fold_bn(w2, b2, *bn_params(ks[8], planes))
    w3f, b3f = fold_bn(w3, b3, *bn_params(ks[9], Cout))

    # NCTHW -> (N*T, H, W, C)
    x_frames = jnp.transpose(x_ncthw, (0, 2, 3, 4, 1)).reshape(N * T, H, W, Cin)

    out_frames = spatial_basic_block(
        x_frames,
        w1f, b1f.reshape(1, -1),
        w2f.reshape(9 * planes, planes), b2f.reshape(1, -1),
        w3f, b3f.reshape(1, -1),
        frames_per_block=4)
    out_frames = jax.block_until_ready(out_frames)

    ref = reference(x_frames, w1f, b1f, w2f, b2f, w3f, b3f)
    err = float(jnp.max(jnp.abs(out_frames - ref)))
    assert jnp.allclose(out_frames, ref, atol=1e-3, rtol=1e-3), err

    # back to PyTorch NCTHW convention
    out_ncthw = jnp.transpose(out_frames.reshape(N, T, H, W, Cout),
                              (0, 4, 1, 2, 3))
    assert out_ncthw.shape == (N, Cout, T, H, W)
    print("KERNEL_OK")
</pallas_src>

<mosaic_0001>
module attributes {stable_mosaic.version = 11 : i64} {
  func.func @spatial_basic_block_kernel(%arg0: i32, %arg1: memref<4x8x8x128xf32, #tpu.memory_space<vmem>>, %arg2: memref<128x32xf32, #tpu.memory_space<vmem>>, %arg3: memref<1x32xf32, #tpu.memory_space<vmem>>, %arg4: memref<288x32xf32, #tpu.memory_space<vmem>>, %arg5: memref<1x32xf32, #tpu.memory_space<vmem>>, %arg6: memref<32x128xf32, #tpu.memory_space<vmem>>, %arg7: memref<1x128xf32, #tpu.memory_space<vmem>>, %arg8: memref<4x8x8x128xf32, #tpu.memory_space<vmem>>, %arg9: memref<4x10x10x32xf32, #tpu.memory_space<vmem>>, %arg10: memref<256x288xf32, #tpu.memory_space<vmem>>) attributes {dimension_semantics = [#tpu.dimension_semantics<parallel>], iteration_bounds = array<i64: 2>, scalar_prefetch = 0 : i64, scratch_operands = 2 : i64, tpu.core_type = #tpu.core_type<tc>, window_params = [{transform_indices = @transform_0, window_bounds = array<i64: 4, 8, 8, 128>}, {pipeline_mode = #tpu.pipeline_mode<synchronous>, transform_indices = @transform_1, window_bounds = array<i64: 128, 32>}, {pipeline_mode = #tpu.pipeline_mode<synchronous>, transform_indices = @transform_2, window_bounds = array<i64: 1, 32>}, {pipeline_mode = #tpu.pipeline_mode<synchronous>, transform_indices = @transform_3, window_bounds = array<i64: 288, 32>}, {pipeline_mode = #tpu.pipeline_mode<synchronous>, transform_indices = @transform_4, window_bounds = array<i64: 1, 32>}, {pipeline_mode = #tpu.pipeline_mode<synchronous>, transform_indices = @transform_5, window_bounds = array<i64: 32, 128>}, {pipeline_mode = #tpu.pipeline_mode<synchronous>, transform_indices = @transform_6, window_bounds = array<i64: 1, 128>}, {transform_indices = @transform_7, window_bounds = array<i64: 4, 8, 8, 128>}]} {
    %c0 = arith.constant 0 : index
    %c0_0 = arith.constant 0 : index
    %c0_1 = arith.constant 0 : index
    %c0_2 = arith.constant 0 : index
    %0 = vector.load %arg1[%c0, %c0_0, %c0_1, %c0_2] : memref<4x8x8x128xf32, #tpu.memory_space<vmem>>, vector<4x8x8x128xf32>
    %1 = vector.shape_cast %0 : vector<4x8x8x128xf32> to vector<256x128xf32>
    %c0_3 = arith.constant 0 : index
    %c0_4 = arith.constant 0 : index
    %2 = vector.load %arg2[%c0_3, %c0_4] : memref<128x32xf32, #tpu.memory_space<vmem>>, vector<128x32xf32>
    %cst = arith.constant dense<0.000000e+00> : vector<256x32xf32>
    %3 = tpu.matmul %1, %2, %cst {dimension_numbers = #tpu.dot_dimension_numbers<[1], [0], [0], [1], [0, 0, 1, 1], [], []>} : vector<256x128xf32>, vector<128x32xf32>, vector<256x32xf32> -> vector<256x32xf32>
    %c0_5 = arith.constant 0 : index
    %c0_6 = arith.constant 0 : index
    %4 = vector.load %arg3[%c0_5, %c0_6] : memref<1x32xf32, #tpu.memory_space<vmem>>, vector<1x32xf32>
    %5 = vector.broadcast %4 : vector<1x32xf32> to vector<256x32xf32>
    %6 = arith.addf %3, %5 : vector<256x32xf32>
    %cst_7 = arith.constant 0.000000e+00 : f32
    %7 = vector.broadcast %cst_7 : f32 to vector<256x32xf32>
    %8 = arith.maximumf %6, %7 : vector<256x32xf32>
    %cst_8 = arith.constant 0.000000e+00 : f32
    %9 = vector.broadcast %cst_8 : f32 to vector<4x1x10x32xf32>
    %cst_9 = arith.constant 0.000000e+00 : f32
    %10 = vector.broadcast %cst_9 : f32 to vector<4x10x1x32xf32>
    %c0_10 = arith.constant 0 : index
    %c0_11 = arith.constant 0 : index
    %c0_12 = arith.constant 0 : index
    %c0_13 = arith.constant 0 : index
    %11 = vector.load %arg9[%c0_10, %c0_11, %c0_12, %c0_13] : memref<4x10x10x32xf32, #tpu.memory_space<vmem>>, vector<4x1x10x32xf32>
    tpu.vector_store %arg9[%c0_10, %c0_11, %c0_12, %c0_13], %9 {strides = array<i32>} : memref<4x10x10x32xf32, #tpu.memory_space<vmem>>, vector<4x1x10x32xf32>,
    %c0_14 = arith.constant 0 : index
    %c9 = arith.constant 9 : index
    %c0_15 = arith.constant 0 : index
    %c0_16 = arith.constant 0 : index
    %12 = vector.load %arg9[%c0_14, %c9, %c0_15, %c0_16] : memref<4x10x10x32xf32, #tpu.memory_space<vmem>>, vector<4x1x10x32xf32>
    tpu.vector_store %arg9[%c0_14, %c9, %c0_15, %c0_16], %9 {strides = array<i32>} : memref<4x10x10x32xf32, #tpu.memory_space<vmem>>, vector<4x1x10x32xf32>,
    %c0_17 = arith.constant 0 : index
    %c0_18 = arith.constant 0 : index
    %c0_19 = arith.constant 0 : index
    %c0_20 = arith.constant 0 : index
    %13 = vector.load %arg9[%c0_17, %c0_18, %c0_19, %c0_20] : memref<4x10x10x32xf32, #tpu.memory_space<vmem>>, vector<4x10x1x32xf32>
    tpu.vector_store %arg9[%c0_17, %c0_18, %c0_19, %c0_20], %10 {strides = array<i32>} : memref<4x10x10x32xf32, #tpu.memory_space<vmem>>, vector<4x10x1x32xf32>,
    %c0_21 = arith.constant 0 : index
    %c0_22 = arith.constant 0 : index
    %c9_23 = arith.constant 9 : index
    %c0_24 = arith.constant 0 : index
    %14 = vector.load %arg9[%c0_21, %c0_22, %c9_23, %c0_24] : memref<4x10x10x32xf32, #tpu.memory_space<vmem>>, vector<4x10x1x32xf32>
    tpu.vector_store %arg9[%c0_21, %c0_22, %c9_23, %c0_24], %10 {strides = array<i32>} : memref<4x10x10x32xf32, #tpu.memory_space<vmem>>, vector<4x10x1x32xf32>,
    %15 = vector.shape_cast %8 : vector<256x32xf32> to vector<4x8x8x32xf32>
    %c0_25 = arith.constant 0 : index
    %c1 = arith.constant 1 : index
    %c1_26 = arith.constant 1 : index
    %c0_27 = arith.constant 0 : index
    %16 = vector.load %arg9[%c0_25, %c1, %c1_26, %c0_27] : memref<4x10x10x32xf32, #tpu.memory_space<vmem>>, vector<4x8x8x32xf32>
    tpu.vector_store %arg9[%c0_25, %c1, %c1_26, %c0_27], %15 {strides = array<i32>} : memref<4x10x10x32xf32, #tpu.memory_space<vmem>>, vector<4x8x8x32xf32>,
    %c0_28 = arith.constant 0 : index
    %c0_29 = arith.constant 0 : index
    %c0_30 = arith.constant 0 : index
    %c0_31 = arith.constant 0 : index
    %17 = vector.load %arg9[%c0_28, %c0_29, %c0_30, %c0_31] : memref<4x10x10x32xf32, #tpu.memory_space<vmem>>, vector<4x8x8x32xf32>
    %18 = vector.shape_cast %17 : vector<4x8x8x32xf32> to vector<256x32xf32>
    %c0_32 = arith.constant 0 : index
    %c0_33 = arith.constant 0 : index
    %19 = vector.load %arg10[%c0_32, %c0_33] : memref<256x288xf32, #tpu.memory_space<vmem>>, vector<256x32xf32>
    tpu.vector_store %arg10[%c0_32, %c0_33], %18 {strides = array<i32>} : memref<256x288xf32, #tpu.memory_space<vmem>>, vector<256x32xf32>,
    %c0_34 = arith.constant 0 : index
    %c0_35 = arith.constant 0 : index
    %c1_36 = arith.constant 1 : index
    %c0_37 = arith.constant 0 : index
    %20 = vector.load %arg9[%c0_34, %c0_35, %c1_36, %c0_37] : memref<4x10x10x32xf32, #tpu.memory_space<vmem>>, vector<4x8x8x32xf32>
    %21 = vector.shape_cast %20 : vector<4x8x8x32xf32> to vector<256x32xf32>
    %c0_38 = arith.constant 0 : index
    %c32 = arith.constant 32 : index
    %22 = vector.load %arg10[%c0_38, %c32] : memref<256x288xf32, #tpu.memory_space<vmem>>, vector<256x32xf32>
    tpu.vector_store %arg10[%c0_38, %c32], %21 {strides = array<i32>} : memref<256x288xf32, #tpu.memory_space<vmem>>, vector<256x32xf32>,
    %c0_39 = arith.constant 0 : index
    %c0_40 = arith.constant 0 : index
    %c2 = arith.constant 2 : index
    %c0_41 = arith.constant 0 : index
    %23 = vector.load %arg9[%c0_39, %c0_40, %c2, %c0_41] : memref<4x10x10x32xf32, #tpu.memory_space<vmem>>, vector<4x8x8x32xf32>
    %24 = vector.shape_cast %23 : vector<4x8x8x32xf32> to vector<256x32xf32>
    %c0_42 = arith.constant 0 : index
    %c64 = arith.constant 64 : index
    %25 = vector.load %arg10[%c0_42, %c64] : memref<256x288xf32, #tpu.memory_space<vmem>>, vector<256x32xf32>
    tpu.vector_store %arg10[%c0_42, %c64], %24 {strides = array<i32>} : memref<256x288xf32, #tpu.memory_space<vmem>>, vector<256x32xf32>,
    %c0_43 = arith.constant 0 : index
    %c1_44 = arith.constant 1 : index
    %c0_45 = arith.constant 0 : index
    %c0_46 = arith.constant 0 : index
    %26 = vector.load %arg9[%c0_43, %c1_44, %c0_45, %c0_46] : memref<4x10x10x32xf32, #tpu.memory_space<vmem>>, vector<4x8x8x32xf32>
    %27 = vector.shape_cast %26 : vector<4x8x8x32xf32> to vector<256x32xf32>
    %c0_47 = arith.constant 0 : index
    %c96 = arith.constant 96 : index
    %28 = vector.load %arg10[%c0_47, %c96] : memref<256x288xf32, #tpu.memory_space<vmem>>, vector<256x32xf32>
    tpu.vector_store %arg10[%c0_47, %c96], %27 {strides = array<i32>} : memref<256x288xf32, #tpu.memory_space<vmem>>, vector<256x32xf32>,
    %c0_48 = arith.constant 0 : index
    %c1_49 = arith.constant 1 : index
    %c1_50 = arith.constant 1 : index
    %c0_51 = arith.constant 0 : index
    %29 = vector.load %arg9[%c0_48, %c1_49, %c1_50, %c0_51] : memref<4x10x10x32xf32, #tpu.memory_space<vmem>>, vector<4x8x8x32xf32>
    %30 = vector.shape_cast %29 : vector<4x8x8x32xf32> to vector<256x32xf32>
    %c0_52 = arith.constant 0 : index
    %c128 = arith.constant 128 : index
    %31 = vector.load %arg10[%c0_52, %c128] : memref<256x288xf32, #tpu.memory_space<vmem>>, vector<256x32xf32>
    tpu.vector_store %arg10[%c0_52, %c128], %30 {strides = array<i32>} : memref<256x288xf32, #tpu.memory_space<vmem>>, vector<256x32xf32>,
    %c0_53 = arith.constant 0 : index
    %c1_54 = arith.constant 1 : index
    %c2_55 = arith.constant 2 : index
    %c0_56 = arith.constant 0 : index
    %32 = vector.load %arg9[%c0_53, %c1_54, %c2_55, %c0_56] : memref<4x10x10x32xf32, #tpu.memory_space<vmem>>, vector<4x8x8x32xf32>
    %33 = vector.shape_cast %32 : vector<4x8x8x32xf32> to vector<256x32xf32>
    %c0_57 = arith.constant 0 : index
    %c160 = arith.constant 160 : index
    %34 = vector.load %arg10[%c0_57, %c160] : memref<256x288xf32, #tpu.memory_space<vmem>>, vector<256x32xf32>
    tpu.vector_store %arg10[%c0_57, %c160], %33 {strides = array<i32>} : memref<256x288xf32, #tpu.memory_space<vmem>>, vector<256x32xf32>,
    %c0_58 = arith.constant 0 : index
    %c2_59 = arith.constant 2 : index
    %c0_60 = arith.constant 0 : index
    %c0_61 = arith.constant 0 : index
    %35 = vector.load %arg9[%c0_58, %c2_59, %c0_60, %c0_61] : memref<4x10x10x32xf32, #tpu.memory_space<vmem>>, vector<4x8x8x32xf32>
    %36 = vector.shape_cast %35 : vector<4x8x8x32xf32> to vector<256x32xf32>
    %c0_62 = arith.constant 0 : index
    %c192 = arith.constant 192 : index
    %37 = vector.load %arg10[%c0_62, %c192] : memref<256x288xf32, #tpu.memory_space<vmem>>, vector<256x32xf32>
    tpu.vector_store %arg10[%c0_62, %c192], %36 {strides = array<i32>} : memref<256x288xf32, #tpu.memory_space<vmem>>, vector<256x32xf32>,
    %c0_63 = arith.constant 0 : index
    %c2_64 = arith.constant 2 : index
    %c1_65 = arith.constant 1 : index
    %c0_66 = arith.constant 0 : index
    %38 = vector.load %arg9[%c0_63, %c2_64, %c1_65, %c0_66] : memref<4x10x10x32xf32, #tpu.memory_space<vmem>>, vector<4x8x8x32xf32>
    %39 = vector.shape_cast %38 : vector<4x8x8x32xf32> to vector<256x32xf32>
    %c0_67 = arith.constant 0 : index
    %c224 = arith.constant 224 : index
    %40 = vector.load %arg10[%c0_67, %c224] : memref<256x288xf32, #tpu.memory_space<vmem>>, vector<256x32xf32>
    tpu.vector_store %arg10[%c0_67, %c224], %39 {strides = array<i32>} : memref<256x288xf32, #tpu.memory_space<vmem>>, vector<256x32xf32>,
    %c0_68 = arith.constant 0 : index
    %c2_69 = arith.constant 2 : index
    %c2_70 = arith.constant 2 : index
    %c0_71 = arith.constant 0 : index
    %41 = vector.load %arg9[%c0_68, %c2_69, %c2_70, %c0_71] : memref<4x10x10x32xf32, #tpu.memory_space<vmem>>, vector<4x8x8x32xf32>
    %42 = vector.shape_cast %41 : vector<4x8x8x32xf32> to vector<256x32xf32>
    %c0_72 = arith.constant 0 : index
    %c256 = arith.constant 256 : index
    %43 = vector.load %arg10[%c0_72, %c256] : memref<256x288xf32, #tpu.memory_space<vmem>>, vector<256x32xf32>
    tpu.vector_store %arg10[%c0_72, %c256], %42 {strides = array<i32>} : memref<256x288xf32, #tpu.memory_space<vmem>>, vector<256x32xf32>,
    %c0_73 = arith.constant 0 : index
    %c0_74 = arith.constant 0 : index
    %44 = vector.load %arg10[%c0_73, %c0_74] : memref<256x288xf32, #tpu.memory_space<vmem>>, vector<256x288xf32>
    %c0_75 = arith.constant 0 : index
    %c0_76 = arith.constant 0 : index
    %45 = vector.load %arg4[%c0_75, %c0_76] : memref<288x32xf32, #tpu.memory_space<vmem>>, vector<288x32xf32>
    %cst_77 = arith.constant dense<0.000000e+00> : vector<256x32xf32>
    %46 = tpu.matmul %44, %45, %cst_77 {dimension_numbers = #tpu.dot_dimension_numbers<[1], [0], [0], [1], [0, 0, 1, 1], [], []>} : vector<256x288xf32>, vector<288x32xf32>, vector<256x32xf32> -> vector<256x32xf32>
    %c0_78 = arith.constant 0 : index
    %c0_79 = arith.constant 0 : index
    %47 = vector.load %arg5[%c0_78, %c0_79] : memref<1x32xf32, #tpu.memory_space<vmem>>, vector<1x32xf32>
    %48 = vector.broadcast %47 : vector<1x32xf32> to vector<256x32xf32>
    %49 = arith.addf %46, %48 : vector<256x32xf32>
    %cst_80 = arith.constant 0.000000e+00 : f32
    %50 = vector.broadcast %cst_80 : f32 to vector<256x32xf32>
    %51 = arith.maximumf %49, %50 : vector<256x32xf32>
    %c0_81 = arith.constant 0 : index
    %c0_82 = arith.constant 0 : index
    %52 = vector.load %arg6[%c0_81, %c0_82] : memref<32x128xf32, #tpu.memory_space<vmem>>, vector<32x128xf32>
    %cst_83 = arith.constant dense<0.000000e+00> : vector<256x128xf32>
    %53 = tpu.matmul %51, %52, %cst_83 {dimension_numbers = #tpu.dot_dimension_numbers<[1], [0], [0], [1], [0, 0, 1, 1], [], []>} : vector<256x32xf32>, vector<32x128xf32>, vector<256x128xf32> -> vector<256x128xf32>
    %c0_84 = arith.constant 0 : index
    %c0_85 = arith.constant 0 : index
    %54 = vector.load %arg7[%c0_84, %c0_85] : memref<1x128xf32, #tpu.memory_space<vmem>>, vector<1x128xf32>
    %55 = vector.broadcast %54 : vector<1x128xf32> to vector<256x128xf32>
    %56 = arith.addf %53, %55 : vector<256x128xf32>
    %57 = arith.addf %56, %1 : vector<256x128xf32>
    %cst_86 = arith.constant 0.000000e+00 : f32
    %58 = vector.broadcast %cst_86 : f32 to vector<256x128xf32>
    %59 = arith.maximumf %57, %58 : vector<256x128xf32>
    %60 = vector.shape_cast %59 : vector<256x128xf32> to vector<4x8x8x128xf32>
    %c0_87 = arith.constant 0 : index
    %c0_88 = arith.constant 0 : index
    %c0_89 = arith.constant 0 : index
    %c0_90 = arith.constant 0 : index
    %61 = vector.load %arg8[%c0_87, %c0_88, %c0_89, %c0_90] : memref<4x8x8x128xf32, #tpu.memory_space<vmem>>, vector<4x8x8x128xf32>
    tpu.vector_store %arg8[%c0_87, %c0_88, %c0_89, %c0_90], %60 {strides = array<i32>} : memref<4x8x8x128xf32, #tpu.memory_space<vmem>>, vector<4x8x8x128xf32>,
    return
  }
  func.func @transform_0(%arg0: i32) -> (i32, i32, i32, i32) {
    %c0_i32 = arith.constant 0 : i32
    %c0_i32_0 = arith.constant 0 : i32
    %c0_i32_1 = arith.constant 0 : i32
    %c0_i32_2 = arith.constant 0 : i32
    return %arg0, %c0_i32, %c0_i32_0, %c0_i32_1 : i32, i32, i32, i32
  }
  func.func @transform_1(%arg0: i32) -> (i32, i32) {
    %c0_i32 = arith.constant 0 : i32
    %c0_i32_0 = arith.constant 0 : i32
    %c0_i32_1 = arith.constant 0 : i32
    return %c0_i32, %c0_i32_0 : i32, i32
  }
  func.func @transform_2(%arg0: i32) -> (i32, i32) {
    %c0_i32 = arith.constant 0 : i32
    %c0_i32_0 = arith.constant 0 : i32
    %c0_i32_1 = arith.constant 0 : i32
    return %c0_i32, %c0_i32_0 : i32, i32
  }
  func.func @transform_3(%arg0: i32) -> (i32, i32) {
    %c0_i32 = arith.constant 0 : i32
    %c0_i32_0 = arith.constant 0 : i32
    %c0_i32_1 = arith.constant 0 : i32
    return %c0_i32, %c0_i32_0 : i32, i32
  }
  func.func @transform_4(%arg0: i32) -> (i32, i32) {
    %c0_i32 = arith.constant 0 : i32
    %c0_i32_0 = arith.constant 0 : i32
    %c0_i32_1 = arith.constant 0 : i32
    return %c0_i32, %c0_i32_0 : i32, i32
  }
  func.func @transform_5(%arg0: i32) -> (i32, i32) {
    %c0_i32 = arith.constant 0 : i32
    %c0_i32_0 = arith.constant 0 : i32
    %c0_i32_1 = arith.constant 0 : i32
    return %c0_i32, %c0_i32_0 : i32, i32
  }
  func.func @transform_6(%arg0: i32) -> (i32, i32) {
    %c0_i32 = arith.constant 0 : i32
    %c0_i32_0 = arith.constant 0 : i32
    %c0_i32_1 = arith.constant 0 : i32
    return %c0_i32, %c0_i32_0 : i32, i32
  }
  func.func @transform_7(%arg0: i32) -> (i32, i32, i32, i32) {
    %c0_i32 = arith.constant 0 : i32
    %c0_i32_0 = arith.constant 0 : i32
    %c0_i32_1 = arith.constant 0 : i32
    %c0_i32_2 = arith.constant 0 : i32
    return %arg0, %c0_i32, %c0_i32_0, %c0_i32_1 : i32, i32, i32, i32
  }
}

</mosaic_0001>

<bundles_post_ra>
// kernel: tpu_custom_call.1
= control target key start
LH: loop header
LB: loop body
LE: loop exit
PB: predicated region body
PF: predicated region fallthrough
CT: control target
= control target key end

     0   :  { %12 = vsyncpa [#allocation5], 0  ;;  %s5796_s0 = inlined_call_operand.vmem [shape: f32[8,8,8,128], index: 0, kind: input, shape index: {}]   ;;  %s5797_s1 = inlined_call_operand.vmem [shape: f32[128,32], index: 1, kind: input, shape index: {}]   ;;  %s5798_s2 = inlined_call_operand.vmem [shape: f32[1,32], index: 2, kind: input, shape index: {}]   ;;  %s5799_s3 = inlined_call_operand.vmem [shape: f32[288,32], index: 3, kind: input, shape index: {}]   ;;  %s5800_s4 = inlined_call_operand.vmem [shape: f32[1,32], index: 4, kind: input, shape index: {}]   ;;  %s5801_s5 = inlined_call_operand.vmem [shape: f32[32,128], index: 5, kind: input, shape index: {}]   ;;  %s5802_s6 = inlined_call_operand.vmem [shape: f32[1,128], index: 6, kind: input, shape index: {}]   ;;  %s5803_s7 = inlined_call_operand.hbm [shape: f32[8,8,8,128], index: 7, kind: output, shape index: {}]  }
   0x1   :  { %14 = vsyncpa [#allocation5 + $0x1], 0  ;;  %s3984_s24 = smov 0   ;;  %s3986_s25 = smov 0  }
   0x2   :  { %s3988_s26 = smov 0   ;;  %s3990_s27 = smov 0  }
   0x3 LB: > { %s4005_s28 = sadd.s32 4294967295, %s3934_s27   ;;  %s3298_s29 = sadd.s32 4294967294, %s3934_s27   ;;  %s3934_s27 = sphi %s3990_s27, %s5810_s27   ;;  %s3930_s26 = sphi %s3988_s26, %s5809_s26   ;;  %s3926_s25 = sphi %s3986_s25, %s5808_s25   ;;  %s3922_s24 = sphi %s3984_s24, %s5807_s24  }
   0x4   : > { %s4009_s30 = sadd.s32 1, %s3934_s27   ;;  %s179_s8 = sadd.s32 1, %s3930_s26 }
   0x5   : > { %s176_s9 = ssub.s32 %s3934_s27, %s4009_s30  ;;  %p189_p0 = scmp.ne.s32.totalorder %s3930_s26, %s3926_s25 }
   0x6   : > { %p177_p1 = scmp.eq.s32.totalorder %s176_s9, 0  ;;  %p190_p2 = scmp.eq.s32.totalorder %s4005_s28, 1 }
   0x7   : > { %p195_p3 = scmp.ne.s32.totalorder %s3926_s25, %s3922_s24  ;;  %p196_p4 = scmp.eq.s32.totalorder %s3298_s29, 1 }
   0x8   : > { %s4020_s10 = scalar_select %p177_p1, %s3930_s26, %s179_s8  }
   0x9   : > { %p4022_p5 = por %p190_p2, %p189_p0  ;;  %p4026_p6 = por %p196_p4, %p195_p3 }
   0xa   : > { %p3301_p7 = scmp.ge.s32.totalorder %s3934_s27, 1  ;;  %p242_p8 = scmp.lt.s32.totalorder %s3934_s27, 3 }
   0xc   : > { %p243_p9 = pnand %p3301_p7, %p242_p8 }
   0xd   : > { %v315_v0 = vld [vmem:[%s5797_s1] sm:$0xff] (!%p243_p9)  ;;  %v316_v1 = vld [vmem:[%s5797_s1 + $0x8] sm:$0xff] (!%p243_p9)  ;;  %v317_v2 = vld [vmem:[%s5797_s1 + $0x10] sm:$0xff] (!%p243_p9)  ;;  %s3303_s19 = sshll.u32 (!%p243_p9), %s4005_s28, 2  ;;  %vm595_vm0 = vcmask (!%p243_p9), 261120   ;;  %v3936_v5 = vmov (!%p243_p9), 0.0  }
   0xe   : > { %246 = sbr.rel (%p243_p9) target bundleno = 1216 (0x4c0), region = 48  ;;  %v4042_v3 = vpack.c.bf16 (!%p243_p9), %v316_v1, %v315_v0  ;;  %v318_v4 = vld [vmem:[%s5797_s1 + $0x18] sm:$0xff] (!%p243_p9)  ;;  %p4049_p10 = scmp.lt.s32.totalorder (!%p243_p9), %s3303_s19, 7  ;;  %596 = vst.msk [vmem:[#allocation2] sm:$0xff] (!%p243_p9), %vm595_vm0, %v3936_v5  ;;  %vm597_vm1 = vcmask (!%p243_p9), 254976   ;;  %vm614_vm2 = vcmask (!%p243_p9), 253952  }
   0xf   : > { %599 = vst.msk [vmem:[#allocation2 + $0xa0] sm:$0xff] (!%p243_p9), %vm595_vm0, %v3936_v5  ;;  %601 = vst.msk [vmem:[#allocation2 + $0x140] sm:$0xff] (!%p243_p9), %vm595_vm0, %v3936_v5  ;;  %v4069_v6 = vpack.c.bf16 (!%p243_p9), %v318_v4, %v317_v2  ;;  %v4074_v7 = vld [vmem:[%s5797_s1 + $0x20] sm:$0xff] (!%p243_p9)  ;;  %v4079_v8 = vld [vmem:[%s5797_s1 + $0x28] sm:$0xff] (!%p243_p9)  ;;  %s3937_s15 = smov (!%p243_p9), 64   ;;  %s3938_s16 = smov (!%p243_p9), 32  }
  0x10   : > { %603 = vst.msk [vmem:[#allocation2 + $0x1e0] sm:$0xff] (!%p243_p9), %vm595_vm0, %v3936_v5  ;;  %606 = vst.msk [vmem:[#allocation2 + $0x90] sm:$0xff] (!%p243_p9), %vm595_vm0, %v3936_v5  ;;  %3695 = vmatprep.subr.bf16.mxu0 (!%p243_p9), %v4042_v3  ;;  %v3702_v9 = vpack.c.bf16 (!%p243_p9), %v4079_v8, %v4074_v7  ;;  %v321_v10 = vld [vmem:[%s5797_s1 + $0x30] sm:$0xff] (!%p243_p9)  ;;  %v322_v11 = vld [vmem:[%s5797_s1 + $0x38] sm:$0xff] (!%p243_p9)  ;;  %s3939_s9 = smov (!%p243_p9), 96   ;;  %vm952_vm3 = vcmask (!%p243_p9), 523520  }
  0x11   : > { %608 = vst.msk [vmem:[#allocation2 + $0x130] sm:$0xff] (!%p243_p9), %vm595_vm0, %v3936_v5  ;;  %610 = vst.msk [vmem:[#allocation2 + $0x1d0] sm:$0xff] (!%p243_p9), %vm595_vm0, %v3936_v5  ;;  %3697 = vmatpush3.bf16.msra.mxu0 (!%p243_p9), %v4042_v3  ;;  %v3706_v13 = vpack.c.bf16 (!%p243_p9), %v322_v11, %v321_v10  ;;  %v323_v14 = vld [vmem:[%s5797_s1 + $0x40] sm:$0xff] (!%p243_p9)  ;;  %v324_v15 = vld [vmem:[%s5797_s1 + $0x48] sm:$0xff] (!%p243_p9)  ;;  %vm1145_vm4 = vcmask (!%p243_p9), 785920   ;;  %vm1338_vm5 = vcmask (!%p243_p9), 1048320  }
  0x12   : > { %612 = vst.msk [vmem:[#allocation2 + $0x270] sm:$0xff] (!%p243_p9), %vm595_vm0, %v3936_v5  ;;  %3699 = vmatprep.subr.bf16.mxu0 (!%p243_p9), %v4069_v6  ;;  %v3710_v16 = vpack.c.bf16 (!%p243_p9), %v324_v15, %v323_v14  ;;  %v325_v18 = vld [vmem:[%s5797_s1 + $0x50] sm:$0xff] (!%p243_p9)  ;;  %v326_v19 = vld [vmem:[%s5797_s1 + $0x58] sm:$0xff] (!%p243_p9)  ;;  %v327_v24 = vld [vmem:[%s5797_s1 + $0x60] sm:$0xff] (!%p243_p9)  ;;  %v3940_v15 = vmov (!%p243_p9), 0.0|0.0   ;;  %s3381_s22 = sshll.u32 (!%p243_p9), %s4005_s28, 12 }
  0x13   : > { %598 = vst.msk [vmem:[#allocation2 + $0x8] sm:$0x3] (!%p243_p9), %vm597_vm1, %v3936_v5  ;;  %600 = vst.msk [vmem:[#allocation2 + $0xa8] sm:$0x3] (!%p243_p9), %vm597_vm1, %v3936_v5  ;;  %v3714_v23 = vpack.c.bf16 (!%p243_p9), %v326_v19, %v325_v18  ;;  %v328_v25 = vld [vmem:[%s5797_s1 + $0x68] sm:$0xff] (!%p243_p9)  ;;  %v329_v29 = vld [vmem:[%s5797_s1 + $0x70] sm:$0xff] (!%p243_p9)  ;;  %3726 = vmatprep.subr.bf16.mxu1 (!%p243_p9), %v3940_v15 }
  0x14   : > { %615 = vst.msk [vmem:[#allocation2] sm:$0x1] (!%p243_p9), %vm614_vm2, %v3936_v5  ;;  %616 = vst.msk [vmem:[#allocation2 + $0x10] sm:$0x1] (!%p243_p9), %vm614_vm2, %v3936_v5  ;;  %v3718_v28 = vpack.c.bf16 (!%p243_p9), %v328_v25, %v327_v24  ;;  %v330_v30 = vld [vmem:[%s5797_s1 + $0x78] sm:$0xff] (!%p243_p9)  ;;  %v2204_v7 = vld [vmem:[%s5799_s3 + $0x100] sm:$0xff] (!%p243_p9) }
  0x15   : > { %602 = vst.msk [vmem:[#allocation2 + $0x148] sm:$0x3] %vm597_vm1, %v3936_v5  ;;  %604 = vst.msk [vmem:[#allocation2 + $0x1e8] sm:$0x3] %vm597_vm1, %v3936_v5  ;;  %s5812_s19 = smov (!%p4049_p10, %s3303_s19), 7  ;;  %3701 = vmatpush3.bf16.msra.mxu0 %v4069_v6  ;;  %v3722_v33 = vpack.c.bf16 %v330_v30, %v329_v29  ;;  %v2205_v8 = vld [vmem:[%s5799_s3 + $0x108] sm:$0xff] }
  0x16   : > { %607 = vst.msk [vmem:[#allocation2 + $0x98] sm:$0x3] %vm597_vm1, %v3936_v5  ;;  %609 = vst.msk [vmem:[#allocation2 + $0x138] sm:$0x3] %vm597_vm1, %v3936_v5  ;;  %s3379_s13 = sshll.u32 %s5812_s19, 6  ;;  %3703 = vmatprep.subr.bf16.mxu0 %v3702_v9  ;;  %v2206_v10 = vld [vmem:[%s5799_s3 + $0x110] sm:$0xff] }
  0x17   : > { %611 = vst.msk [vmem:[#allocation2 + $0x1d8] sm:$0x3] %vm597_vm1, %v3936_v5  ;;  %613 = vst.msk [vmem:[#allocation2 + $0x278] sm:$0x3] %vm597_vm1, %v3936_v5  ;;  %s4275_s21 = scalar_lea.vmem %s5796_s0, %s3379_s13  ;;  %v2207_v11 = vld [vmem:[%s5799_s3 + $0x118] sm:$0xff]  ;;  %v2173_v14 = vld [vmem:[%s5799_s3 + $0x8] sm:$0xff]  ;;  %s5747_s13 = scalar_lea.hbm %s5803_s7, %s3381_s22 }
  0x18   : > { %617 = vst.msk [vmem:[#allocation2 + $0x20] sm:$0x1] %vm614_vm2, %v3936_v5  ;;  %618 = vst.msk [vmem:[#allocation2 + $0x30] sm:$0x1] %vm614_vm2, %v3936_v5  ;;  %v283_v12 = vld [vmem:[%s4275_s21] sm:$0xff]  ;;  %v284_v34 = vld [vmem:[%s4275_s21 + $0x8] sm:$0xff] }
  0x19   : > { %619 = vst.msk [vmem:[#allocation2 + $0x40] sm:$0x1] %vm614_vm2, %v3936_v5  ;;  %620 = vst.msk [vmem:[#allocation2 + $0x50] sm:$0x1] %vm614_vm2, %v3936_v5  ;;  %3534 = vmatprep.mubr.f32.mxu0 %v283_v12  ;;  %3705 = vmatpush3.bf16.msra.mxu0 %v3702_v9  ;;  %v285_v35 = vld [vmem:[%s4275_s21 + $0x10] sm:$0xff]  ;;  %v286_v36 = vld [vmem:[%s4275_s21 + $0x18] sm:$0xff]  ;;  %v4354_v9 = vpack.c.bf16 %v2205_v8, %v2204_v7  ;;  %v4364_v12 = vpack.c.bf16 %v2207_v11, %v2206_v10 }
  0x1a   : > { %621 = vst.msk [vmem:[#allocation2 + $0x60] sm:$0x1] %vm614_vm2, %v3936_v5  ;;  %622 = vst.msk [vmem:[#allocation2 + $0x70] sm:$0x1] %vm614_vm2, %v3936_v5  ;;  %3707 = vmatprep.subr.bf16.mxu0 %v3706_v13  ;;  %v792_v20 = vld [vmem:[#allocation2 + $0x1] sm:$0xff]  ;;  %v289_v39 = vld [vmem:[%s4275_s21 + $0x30] sm:$0xff] }
  0x1b   : > { %623 = vst.msk [vmem:[#allocation2 + $0x80] sm:$0x1] %vm614_vm2, %v3936_v5  ;;  %626 = vst.msk [vmem:[#allocation2 + $0xb0] sm:$0x1] %vm614_vm2, %v3936_v5  ;;  %856 = vrot.lane.b32.xlu0 %v792_v20, %s3938_s16  ;;  %v800_v21 = vld [vmem:[#allocation2 + $0xa1] sm:$0xff]  ;;  %v290_v40 = vld [vmem:[%s4275_s21 + $0x38] sm:$0xff] }
  0x1c   : > { %627 = vst.msk [vmem:[#allocation2 + $0xc0] sm:$0x1] %vm614_vm2, %v3936_v5  ;;  %628 = vst.msk [vmem:[#allocation2 + $0xd0] sm:$0x1] %vm614_vm2, %v3936_v5  ;;  %v808_v31 = vld [vmem:[#allocation2 + $0x141] sm:$0xff]  ;;  %v293_v43 = vld [vmem:[%s4275_s21 + $0x50] sm:$0xff] }
  0x1d   : > { %629 = vst.msk [vmem:[#allocation2 + $0xe0] sm:$0x1] %vm614_vm2, %v3936_v5  ;;  %630 = vst.msk [vmem:[#allocation2 + $0xf0] sm:$0x1] %vm614_vm2, %v3936_v5  ;;  %3709 = vmatpush3.bf16.msra.mxu0 %v3706_v13  ;;  %v1827_v27 = vld [vmem:[#allocation2 + $0x91] sm:$0xff]  ;;  %v287_v37 = vld [vmem:[%s4275_s21 + $0x20] sm:$0xff] }
  0x1e   : > { %631 = vst.msk [vmem:[#allocation2 + $0x100] sm:$0x1] %vm614_vm2, %v3936_v5  ;;  %632 = vst.msk [vmem:[#allocation2 + $0x110] sm:$0x1] %vm614_vm2, %v3936_v5  ;;  %3711 = vmatprep.subr.bf16.mxu0 %v3710_v16  ;;  %v288_v38 = vld [vmem:[%s4275_s21 + $0x28] sm:$0xff]  ;;  %v291_v41 = vld [vmem:[%s4275_s21 + $0x40] sm:$0xff] }
  0x1f   : > { %633 = vst.msk [vmem:[#allocation2 + $0x120] sm:$0x1] %vm614_vm2, %v3936_v5  ;;  %636 = vst.msk [vmem:[#allocation2 + $0x150] sm:$0x1] %vm614_vm2, %v3936_v5  ;;  %v292_v42 = vld [vmem:[%s4275_s21 + $0x48] sm:$0xff]  ;;  %v294_v44 = vld [vmem:[%s4275_s21 + $0x58] sm:$0xff] }
  0x20   : > { %637 = vst.msk [vmem:[#allocation2 + $0x160] sm:$0x1] %vm614_vm2, %v3936_v5  ;;  %638 = vst.msk [vmem:[#allocation2 + $0x170] sm:$0x1] %vm614_vm2, %v3936_v5  ;;  %v295_v45 = vld [vmem:[%s4275_s21 + $0x60] sm:$0xff]  ;;  %v296_v46 = vld [vmem:[%s4275_s21 + $0x68] sm:$0xff] }
  0x21   : > { %639 = vst.msk [vmem:[#allocation2 + $0x180] sm:$0x1] %vm614_vm2, %v3936_v5  ;;  %640 = vst.msk [vmem:[#allocation2 + $0x190] sm:$0x1] %vm614_vm2, %v3936_v5  ;;  %3713 = vmatpush3.bf16.msra.mxu0 %v3710_v16  ;;  %v297_v47 = vld [vmem:[%s4275_s21 + $0x70] sm:$0xff]  ;;  %v298_v48 = vld [vmem:[%s4275_s21 + $0x78] sm:$0xff] }
  0x22   : > { %641 = vst.msk [vmem:[#allocation2 + $0x1a0] sm:$0x1] %vm614_vm2, %v3936_v5  ;;  %642 = vst.msk [vmem:[#allocation2 + $0x1b0] sm:$0x1] %vm614_vm2, %v3936_v5  ;;  %3715 = vmatprep.subr.bf16.mxu0 %v3714_v23  ;;  %v299_v49 = vld [vmem:[%s4275_s21 + $0x80] sm:$0xff]  ;;  %v300_v50 = vld [vmem:[%s4275_s21 + $0x88] sm:$0xff] }
  0x23   : > { %643 = vst.msk [vmem:[#allocation2 + $0x1c0] sm:$0x1] %vm614_vm2, %v3936_v5  ;;  %646 = vst.msk [vmem:[#allocation2 + $0x1f0] sm:$0x1] %vm614_vm2, %v3936_v5  ;;  %v301_v51 = vld [vmem:[%s4275_s21 + $0x90] sm:$0xff]  ;;  %v302_v52 = vld [vmem:[%s4275_s21 + $0x98] sm:$0xff] }
  0x24   : > { %647 = vst.msk [vmem:[#allocation2 + $0x200] sm:$0x1] %vm614_vm2, %v3936_v5  ;;  %648 = vst.msk [vmem:[#allocation2 + $0x210] sm:$0x1] %vm614_vm2, %v3936_v5  ;;  %v303_v53 = vld [vmem:[%s4275_s21 + $0xa0] sm:$0xff]  ;;  %v304_v54 = vld [vmem:[%s4275_s21 + $0xa8] sm:$0xff] }
  0x25   : > { %649 = vst.msk [vmem:[#allocation2 + $0x220] sm:$0x1] %vm614_vm2, %v3936_v5  ;;  %650 = vst.msk [vmem:[#allocation2 + $0x230] sm:$0x1] %vm614_vm2, %v3936_v5  ;;  %3717 = vmatpush3.bf16.msra.mxu0 %v3714_v23  ;;  %v1835_v56 = vld [vmem:[#allocation2 + $0x131] sm:$0xff]  ;;  %v816_v59 = vld [vmem:[#allocation2 + $0x1e1] sm:$0xff] }
  0x26   : > { %651 = vst.msk [vmem:[#allocation2 + $0x240] sm:$0x1] %vm614_vm2, %v3936_v5  ;;  %652 = vst.msk [vmem:[#allocation2 + $0x250] sm:$0x1] %vm614_vm2, %v3936_v5  ;;  %3719 = vmatprep.subr.bf16.mxu0 %v3718_v28  ;;  %v305_v57 = vld [vmem:[%s4275_s21 + $0xb0] sm:$0xff]  ;;  %v306_v58 = vld [vmem:[%s4275_s21 + $0xb8] sm:$0xff] }
  0x27   : > { %653 = vst.msk [vmem:[#allocation2 + $0x260] sm:$0x1] %vm614_vm2, %v3936_v5  ;;  %656 = vst.msk [vmem:[#allocation2 + $0x19] sm:$0x1] %vm614_vm2, %v3936_v5  ;;  %v307_v61 = vld [vmem:[%s4275_s21 + $0xc0] sm:$0xff]  ;;  %v308_v62 = vld [vmem:[%s4275_s21 + $0xc8] sm:$0xff] }
  0x28   : > { %657 = vst.msk [vmem:[#allocation2 + $0x29] sm:$0x1] %vm614_vm2, %v3936_v5  ;;  %658 = vst.msk [vmem:[#allocation2 + $0x39] sm:$0x1] %vm614_vm2, %v3936_v5  ;;  %v1843_v0 = vld [vmem:[#allocation2 + $0x1d1] sm:$0xff]  ;;  %v311_v3 = vld [vmem:[%s4275_s21 + $0xe0] sm:$0xff] }
  0x29   : > { %659 = vst.msk [vmem:[#allocation2 + $0x49] sm:$0x1] %vm614_vm2, %v3936_v5  ;;  %660 = vst.msk [vmem:[#allocation2 + $0x59] sm:$0x1] %vm614_vm2, %v3936_v5  ;;  %3721 = vmatpush3.bf16.msra.mxu0 %v3718_v28  ;;  %v309_v1 = vld [vmem:[%s4275_s21 + $0xd0] sm:$0xff]  ;;  %v310_v2 = vld [vmem:[%s4275_s21 + $0xd8] sm:$0xff] }
  0x2a   : > { %661 = vst.msk [vmem:[#allocation2 + $0x69] sm:$0x1] %vm614_vm2, %v3936_v5  ;;  %662 = vst.msk [vmem:[#allocation2 + $0x79] sm:$0x1] %vm614_vm2, %v3936_v5  ;;  %3723 = vmatprep.subr.bf16.mxu0 %v3722_v33  ;;  %v312_v4 = vld [vmem:[%s4275_s21 + $0xe8] sm:$0xff]  ;;  %v314_v6 = vld [vmem:[%s4275_s21 + $0xf8] sm:$0xff] }
  0x2b   : > { %663 = vst.msk [vmem:[#allocation2 + $0x89] sm:$0x1] %vm614_vm2, %v3936_v5  ;;  %666 = vst.msk [vmem:[#allocation2 + $0xb9] sm:$0x1] %vm614_vm2, %v3936_v5  ;;  %v2172_v13 = vld [vmem:[%s5799_s3] sm:$0xff]  ;;  %v2175_v18 = vld [vmem:[%s5799_s3 + $0x18] sm:$0xff] }
  0x2c   : > { %667 = vst.msk [vmem:[#allocation2 + $0xc9] sm:$0x1] %vm614_vm2, %v3936_v5  ;;  %668 = vst.msk [vmem:[#allocation2 + $0xd9] sm:$0x1] %vm614_vm2, %v3936_v5  ;;  %v3727_v16 = vpack.c.bf16 %v2173_v14, %v2172_v13  ;;  %v2176_v20 = vld [vmem:[%s5799_s3 + $0x20] sm:$0xff]  ;;  %v2179_v28 = vld [vmem:[%s5799_s3 + $0x38] sm:$0xff] }
  0x2d   : > { %669 = vst.msk [vmem:[#allocation2 + $0xe9] sm:$0x1] %vm614_vm2, %v3936_v5  ;;  %670 = vst.msk [vmem:[#allocation2 + $0xf9] sm:$0x1] %vm614_vm2, %v3936_v5  ;;  %3725 = vmatpush3.bf16.msra.mxu0 %v3722_v33  ;;  %v2181_v33 = vld [vmem:[%s5799_s3 + $0x48] sm:$0xff]  ;;  %v2196_v13 = vld [vmem:[%s5799_s3 + $0xc0] sm:$0xff] }
  0x2e   : > { %671 = vst.msk [vmem:[#allocation2 + $0x109] sm:$0x1] %vm614_vm2, %v3936_v5  ;;  %672 = vst.msk [vmem:[#allocation2 + $0x119] sm:$0x1] %vm614_vm2, %v3936_v5  ;;  %3775 = vmatprep.subr.bf16.mxu0 %v4354_v9  ;;  %3728 = vmatpush1.bf16.msra.mxu1 %v3727_v16  ;;  %v2197_v14 = vld [vmem:[%s5799_s3 + $0xc8] sm:$0xff] }
  0x2f   : > { %673 = vst.msk [vmem:[#allocation2 + $0x129] sm:$0x1] %vm614_vm2, %v3936_v5  ;;  %676 = vst.msk [vmem:[#allocation2 + $0x159] sm:$0x1] %vm614_vm2, %v3936_v5  ;;  %3729 = vmatprep.subr.bf16.mxu1 %v3940_v15 }
  0x30   : > { %677 = vst.msk [vmem:[#allocation2 + $0x169] sm:$0x1] %vm614_vm2, %v3936_v5  ;;  %678 = vst.msk [vmem:[#allocation2 + $0x179] sm:$0x1] %vm614_vm2, %v3936_v5  ;;  %3535 = vmatmul.mubr.f32.vlgmr.msra.gmra.mrb[0].mxu0 %v284_v34 }
  0x31   : > { %679 = vst.msk [vmem:[#allocation2 + $0x189] sm:$0x1] %vm614_vm2, %v3936_v5  ;;  %680 = vst.msk [vmem:[#allocation2 + $0x199] sm:$0x1] %vm614_vm2, %v3936_v5  ;;  %3537 = vmatprep.mubr.f32.mxu0 %v285_v35  ;;  %3777 = vmatpush3.bf16.msra.mxu0 %v4354_v9 }
  0x32   : > { %681 = vst.msk [vmem:[#allocation2 + $0x1a9] sm:$0x1] %vm614_vm2, %v3936_v5  ;;  %682 = vst.msk [vmem:[#allocation2 + $0x1b9] sm:$0x1] %vm614_vm2, %v3936_v5  ;;  %3779 = vmatprep.subr.bf16.mxu0 %v4364_v12 }
  0x33   : > { %683 = vst.msk [vmem:[#allocation2 + $0x1c9] sm:$0x1] %vm614_vm2, %v3936_v5  ;;  %686 = vst.msk [vmem:[#allocation2 + $0x1f9] sm:$0x1] %vm614_vm2, %v3936_v5 }
  0x34   : > { %687 = vst.msk [vmem:[#allocation2 + $0x209] sm:$0x1] %vm614_vm2, %v3936_v5  ;;  %688 = vst.msk [vmem:[#allocation2 + $0x219] sm:$0x1] %vm614_vm2, %v3936_v5  ;;  %3538 = vmatmul.mubr.f32.gmra.mrb[2].mxu0 %v286_v36  ;;  %v2182_v36 = vld [vmem:[%s5799_s3 + $0x50] sm:$0xff] }
  0x35   : > { %689 = vst.msk [vmem:[#allocation2 + $0x229] sm:$0x1] %vm614_vm2, %v3936_v5  ;;  %690 = vst.msk [vmem:[#allocation2 + $0x239] sm:$0x1] %vm614_vm2, %v3936_v5  ;;  %3540 = vmatprep.mubr.f32.mxu0 %v287_v37  ;;  %3781 = vmatpush3.bf16.msra.mxu0 %v4364_v12  ;;  %v2183_v37 = vld [vmem:[%s5799_s3 + $0x58] sm:$0xff] }
  0x36   : > { %691 = vst.msk [vmem:[#allocation2 + $0x249] sm:$0x1] %vm614_vm2, %v3936_v5  ;;  %692 = vst.msk [vmem:[#allocation2 + $0x259] sm:$0x1] %vm614_vm2, %v3936_v5 }
  0x37   : > { %693 = vst.msk [vmem:[#allocation2 + $0x269] sm:$0x1] %vm614_vm2, %v3936_v5  ;;  %624 = vst.msk [vmem:[#allocation2 + $0x90] sm:$0x1] %vm614_vm2, %v3936_v5 }
  0x38   : > { %625 = vst.msk [vmem:[#allocation2 + $0xa0] sm:$0x1] %vm614_vm2, %v3936_v5  ;;  %634 = vst.msk [vmem:[#allocation2 + $0x130] sm:$0x1] %vm614_vm2, %v3936_v5  ;;  %3541 = vmatmul.mubr.f32.gmra.mrb[4].mxu0 %v288_v38  ;;  %v3742_v38 = vpack.c.bf16 %v2183_v37, %v2182_v36  ;;  %v2200_v37 = vld [vmem:[%s5799_s3 + $0xe0] sm:$0xff] }
  0x39   : > { %635 = vst.msk [vmem:[#allocation2 + $0x140] sm:$0x1] %vm614_vm2, %v3936_v5  ;;  %644 = vst.msk [vmem:[#allocation2 + $0x1d0] sm:$0x1] %vm614_vm2, %v3936_v5  ;;  %3543 = vmatprep.mubr.f32.mxu0 %v289_v39 }
  0x3a   : > { %645 = vst.msk [vmem:[#allocation2 + $0x1e0] sm:$0x1] %vm614_vm2, %v3936_v5  ;;  %654 = vst.msk [vmem:[#allocation2 + $0x270] sm:$0x1] %vm614_vm2, %v3936_v5 }
  0x3b   : > { %655 = vst.msk [vmem:[#allocation2 + $0x9] sm:$0x1] %vm614_vm2, %v3936_v5  ;;  %664 = vst.msk [vmem:[#allocation2 + $0x99] sm:$0x1] %vm614_vm2, %v3936_v5 }
  0x3c   : > { %665 = vst.msk [vmem:[#allocation2 + $0xa9] sm:$0x1] %vm614_vm2, %v3936_v5  ;;  %674 = vst.msk [vmem:[#allocation2 + $0x139] sm:$0x1] %vm614_vm2, %v3936_v5  ;;  %3544 = vmatmul.mubr.f32.gmra.mrb[6].mxu0 %v290_v40 }
  0x3d   : > { %675 = vst.msk [vmem:[#allocation2 + $0x149] sm:$0x1] %vm614_vm2, %v3936_v5  ;;  %684 = vst.msk [vmem:[#allocation2 + $0x1d9] sm:$0x1] %vm614_vm2, %v3936_v5  ;;  %3546 = vmatprep.mubr.f32.mxu0 %v291_v41  ;;  %v2184_v41 = vld [vmem:[%s5799_s3 + $0x60] sm:$0xff] }
  0x3e   : > { %685 = vst.msk [vmem:[#allocation2 + $0x1e9] sm:$0x1] %vm614_vm2, %v3936_v5  ;;  %694 = vst.msk [vmem:[#allocation2 + $0x279] sm:$0x1] %vm614_vm2, %v3936_v5  ;;  %v1635_v22 = vld [vmem:[#allocation2 + $0x90] sm:$0xff] }
  0x3f   : > { %1706 = vrot.lane.b32.xlu0 %v1635_v22, %s3937_s15  ;;  %v1643_v32 = vld [vmem:[#allocation2 + $0x130] sm:$0xff]  ;;  %v736_v30 = vld [vmem:[#allocation2 + $0xa0] sm:$0xff] }
  0x40   : > { %3547 = vmatmul.mubr.f32.gmra.mrb[8].mxu0 %v292_v42  ;;  %v1651_v60 = vld [vmem:[#allocation2 + $0x1d0] sm:$0xff]  ;;  %768 = vst.msk [vmem:[#allocation3 + $0xc0] sm:$0xff] %vm595_vm0, %v736_v30  ;;  %v744_v39 = vld [vmem:[#allocation2 + $0x140] sm:$0xff]  ;;  %v2185_v42 = vld [vmem:[%s5799_s3 + $0x68] sm:$0xff] }
  0x41   : > { %3549 = vmatprep.mubr.f32.mxu0 %v293_v43  ;;  %v313_v5 = vld [vmem:[%s4275_s21 + $0xf0] sm:$0xff]  ;;  %776 = vst.msk [vmem:[#allocation3 + $0x180] sm:$0xff] %vm595_vm0, %v744_v39  ;;  %v3745_v43 = vpack.c.bf16 %v2185_v42, %v2184_v41 }
  0x42   : > { %v985_v17 = vld [vmem:[#allocation2 + $0x2] sm:$0xff]  ;;  %v2019_v23 = vld [vmem:[#allocation2 + $0x92] sm:$0xff] }
  0x43   : > { %1049 = vrot.lane.b32.xlu1 %v985_v17, %s3937_s15  ;;  %v993_v26 = vld [vmem:[#allocation2 + $0xa2] sm:$0xff]  ;;  %1898 = vrot.lane.b32.xlu0 %v1827_v27, %s3939_s9  ;;  %v2174_v17 = vld [vmem:[%s5799_s3 + $0x10] sm:$0xff]  ;;  %2051 = vst.msk [vmem:[#allocation3 + $0xb8] sm:$0xff] %vm595_vm0, %v2019_v23 }
  0x44   : > { %3550 = vmatmul.mubr.f32.gmra.mrb[10].mxu0 %v294_v44  ;;  %v1001_v55 = vld [vmem:[#allocation2 + $0x142] sm:$0xff]  ;;  %v3730_v19 = vpack.c.bf16 %v2175_v18, %v2174_v17  ;;  %v2178_v27 = vld [vmem:[%s5799_s3 + $0x30] sm:$0xff]  ;;  %v3763_v18 = vpack.c.bf16 %v2197_v14, %v2196_v13 }
  0x45   : > { %3552 = vmatprep.mubr.f32.mxu0 %v295_v45  ;;  %v1009_v63 = vld [vmem:[#allocation2 + $0x1e2] sm:$0xff]  ;;  %v3736_v29 = vpack.c.bf16 %v2179_v28, %v2178_v27  ;;  %v2186_v44 = vld [vmem:[%s5799_s3 + $0x70] sm:$0xff]  ;;  %v2187_v45 = vld [vmem:[%s5799_s3 + $0x78] sm:$0xff] }
  0x46   : > { %3731 = vmatpush1.bf16.msra.mxu1 %v3730_v19  ;;  %v2198_v23 = vld [vmem:[%s5799_s3 + $0xd0] sm:$0xff] }
  0x47   : > { %872 = vrot.lane.b32.xlu1 %v800_v21, %s3938_s16  ;;  %1722 = vrot.lane.b32.xlu0 %v1643_v32, %s3937_s15  ;;  %v2177_v21 = vld [vmem:[%s5799_s3 + $0x28] sm:$0xff]  ;;  %v2180_v32 = vld [vmem:[%s5799_s3 + $0x40] sm:$0xff] }
  0x48   : > { %3553 = vmatmul.mubr.f32.gmra.mrb[12].mxu0 %v296_v46  ;;  %3732 = vmatprep.subr.bf16.mxu1 %v3940_v15  ;;  %v3733_v22 = vpack.c.bf16 %v2177_v21, %v2176_v20  ;;  %v3739_v34 = vpack.c.bf16 %v2181_v33, %v2180_v32 }
  0x49   : > { %3555 = vmatprep.mubr.f32.mxu0 %v297_v47  ;;  %v3748_v47 = vpack.c.bf16 %v2187_v45, %v2186_v44 }
  0x4a   : > { %3734 = vmatpush1.bf16.msra.mxu1 %v3733_v22 }
  0x4b   : > { %1065 = vrot.lane.b32.xlu1 %v993_v26, %s3937_s15  ;;  %1914 = vrot.lane.b32.xlu0 %v1835_v56, %s3939_s9  ;;  %v728_v26 = vld [vmem:[#allocation2] sm:$0xff] }
  0x4c   : > { %3556 = vmatmul.mubr.f32.gmra.mrb[14].mxu0 %v298_v48  ;;  %3735 = vmatprep.subr.bf16.mxu1 %v3940_v15  ;;  %760 = vst.msk [vmem:[#allocation3] sm:$0xff] %vm595_vm0, %v728_v26  ;;  %v752_v48 = vld [vmem:[#allocation2 + $0x1e0] sm:$0xff] }
  0x4d   : > { %3558 = vmatprep.mubr.f32.mxu0 %v299_v49  ;;  %v2188_v49 = vld [vmem:[%s5799_s3 + $0x80] sm:$0xff]  ;;  %784 = vst.msk [vmem:[#allocation3 + $0x240] sm:$0xff] %vm595_vm0, %v752_v48 }
  0x4e   : > { %3737 = vmatpush1.bf16.msra.mxu1 %v3736_v29 }
  0x4f   : > { %888 = vrot.lane.b32.xlu1 %v808_v31, %s3938_s16  ;;  %1738 = vrot.lane.b32.xlu0 %v1651_v60, %s3937_s15 }
  0x50   : > { %3559 = vmatmul.mubr.f32.gmra.mrb[16].mxu0 %v300_v50  ;;  %3738 = vmatprep.subr.bf16.mxu1 %v3940_v15  ;;  %v2189_v50 = vld [vmem:[%s5799_s3 + $0x88] sm:$0xff] }
  0x51   : > { %3561 = vmatprep.mubr.f32.mxu0 %v301_v51 }
  0x52   : > { %3740 = vmatpush1.bf16.msra.mxu1 %v3739_v34 }
  0x53   : > { %1081 = vrot.lane.b32.xlu1 %v1001_v55, %s3937_s15  ;;  %1930 = vrot.lane.b32.xlu0 %v1843_v0, %s3939_s9 }
  0x54   : > { %3562 = vmatmul.mubr.f32.gmra.mrb[18].mxu0 %v302_v52  ;;  %3741 = vmatprep.subr.bf16.mxu1 %v3940_v15  ;;  %v3751_v52 = vpack.c.bf16 %v2189_v50, %v2188_v49 }
  0x55   : > { %3564 = vmatprep.mubr.f32.mxu0 %v303_v53  ;;  %v2190_v53 = vld [vmem:[%s5799_s3 + $0x90] sm:$0xff] }
  0x56   : > { %3743 = vmatpush1.bf16.msra.mxu1 %v3742_v38  ;;  %v2201_v38 = vld [vmem:[%s5799_s3 + $0xe8] sm:$0xff] }
  0x57   : > { %904 = vrot.lane.b32.xlu1 %v816_v59, %s3938_s16  ;;  %3744 = vmatprep.subr.bf16.mxu1 %v3940_v15  ;;  %v2193_v59 = vld [vmem:[%s5799_s3 + $0xa8] sm:$0xff]  ;;  %v3769_v44 = vpack.c.bf16 %v2201_v38, %v2200_v37 }
  0x58   : > { %3565 = vmatmul.mubr.f32.gmra.mrb[20].mxu0 %v304_v54  ;;  %v2191_v54 = vld [vmem:[%s5799_s3 + $0x98] sm:$0xff] }
  0x59   : > { %3567 = vmatprep.mubr.f32.mxu0 %v305_v57  ;;  %v3754_v56 = vpack.c.bf16 %v2191_v54, %v2190_v53  ;;  %v4454_v57 = vld [vmem:[%s5798_s2] ss:$0 sm:$0xff]  ;;  %v2202_v53 = vld [vmem:[%s5799_s3 + $0xf0] sm:$0xff]  ;;  %v2203_v54 = vld [vmem:[%s5799_s3 + $0xf8] sm:$0xff] }
  0x5a   : > { %3746 = vmatpush1.bf16.msra.mxu1 %v3745_v43 }
  0x5b   : > { %1097 = vrot.lane.b32.xlu1 %v1009_v63, %s3937_s15  ;;  %3747 = vmatprep.subr.bf16.mxu1 %v3940_v15 }
  0x5c   : > { %3568 = vmatmul.mubr.f32.gmra.mrb[22].mxu0 %v306_v58  ;;  %v2192_v58 = vld [vmem:[%s5799_s3 + $0xa0] sm:$0xff] }
  0x5d   : > { %3570 = vmatprep.mubr.f32.mxu0 %v307_v61  ;;  %v3757_v61 = vpack.c.bf16 %v2193_v59, %v2192_v58 }
  0x5e   : > { %3749 = vmatpush1.bf16.msra.mxu1 %v3748_v47 }
  0x5f   : > { %3750 = vmatprep.subr.bf16.mxu1 %v3940_v15 }
  0x60   : > { %3571 = vmatmul.mubr.f32.gmra.mrb[24].mxu0 %v308_v62 }
  0x61   : > { %3573 = vmatprep.mubr.f32.mxu0 %v309_v1 }
  0x62   : > { %3752 = vmatpush1.bf16.msra.mxu1 %v3751_v52 }
  0x63   : > { %3753 = vmatprep.subr.bf16.mxu1 %v3940_v15 }
  0x64   : > { %3574 = vmatmul.mubr.f32.gmra.mrb[26].mxu0 %v310_v2  ;;  %v2194_v2 = vld [vmem:[%s5799_s3 + $0xb0] sm:$0xff] }
  0x65   : > { %3576 = vmatprep.mubr.f32.mxu0 %v311_v3  ;;  %v2195_v3 = vld [vmem:[%s5799_s3 + $0xb8] sm:$0xff] }
  0x66   : > { %3755 = vmatpush1.bf16.msra.mxu1 %v3754_v56 }
  0x67   : > { %3756 = vmatprep.subr.bf16.mxu1 %v3940_v15 }
  0x68   : > { %3577 = vmatmul.mubr.f32.gmra.mrb[28].mxu0 %v312_v4 }
  0x69   : > { %3579 = vmatprep.mubr.f32.mxu0 %v313_v5 }
  0x6a   : > { %3758 = vmatpush1.bf16.msra.mxu1 %v3757_v61  ;;  %v3772_v61 = vpack.c.bf16 %v2203_v54, %v2202_v53 }
  0x6b   : > { %3759 = vmatprep.subr.bf16.mxu1 %v3940_v15 }
  0x6c   : > { %3580 = vmatmul.mubr.f32.gmra.mrb[30].mxu0 %v314_v6  ;;  %v3760_v6 = vpack.c.bf16 %v2195_v3, %v2194_v2 }
  0x6e   : > { %3761 = vmatpush1.bf16.msra.mxu1 %v3760_v6 }
  0x6f   : > { %3762 = vmatprep.subr.bf16.mxu1 %v3940_v15 }
  0x72   : > { %3764 = vmatpush1.bf16.msra.mxu1 %v3763_v18 }
  0x73   : > { %3765 = vmatprep.subr.bf16.mxu1 %v3940_v15 }
  0x8d   : > { %v857_v25 = vpop.permute.xlu0 %856 }
  0x8e   : > { %953 = vst.msk [vmem:[#allocation3] sm:$0xff] %vm952_vm3, %v857_v25 }
  0xb5   : > { %v1050_v24 = vpop.permute.xlu1 %1049 }
  0xb6   : > { %1146 = vst.msk [vmem:[#allocation3] sm:$0xff] %vm1145_vm4, %v1050_v24  ;;  %v2199_v24 = vld [vmem:[%s5799_s3 + $0xd8] sm:$0xff] }
  0xb7   : > { %v3766_v30 = vpack.c.bf16 %v2199_v24, %v2198_v23 }
  0xb9   : > { %v873_v31 = vpop.permute.xlu1 %872  ;;  %3767 = vmatpush1.bf16.msra.mxu1 %v3766_v30 }
  0xba   : > { %961 = vst.msk [vmem:[#allocation3 + $0xc0] sm:$0xff] %vm952_vm3, %v873_v31  ;;  %3768 = vmatprep.subr.bf16.mxu1 %v3940_v15 }
  0xbd   : > { %v1066_v35 = vpop.permute.xlu1 %1065  ;;  %3770 = vmatpush1.bf16.msra.mxu1 %v3769_v44 }
  0xbe   : > { %1154 = vst.msk [vmem:[#allocation3 + $0xc0] sm:$0xff] %vm1145_vm4, %v1066_v35  ;;  %3771 = vmatprep.subr.bf16.mxu1 %v3940_v15 }
  0xc1   : > { %v889_v40 = vpop.permute.xlu1 %888  ;;  %3773 = vmatpush1.bf16.msra.mxu1 %v3772_v61 }
  0xc2   : > { %969 = vst.msk [vmem:[#allocation3 + $0x180] sm:$0xff] %vm952_vm3, %v889_v40  ;;  %3790 = vmatprep.subr.bf16.mxu1 %v4354_v9 }
  0xc5   : > { %v1082_v46 = vpop.permute.xlu1 %1081 }
  0xc6   : > { %1162 = vst.msk [vmem:[#allocation3 + $0x180] sm:$0xff] %vm1145_vm4, %v1082_v46 }
  0xc9   : > { %v905_v51 = vpop.permute.xlu1 %904 }
  0xca   : > { %977 = vst.msk [vmem:[#allocation3 + $0x240] sm:$0xff] %vm952_vm3, %v905_v51 }
  0xcd   : > { %v1098_v55 = vpop.permute.xlu1 %1097 }
  0xce   : > { %1170 = vst.msk [vmem:[#allocation3 + $0x240] sm:$0xff] %vm1145_vm4, %v1098_v55 }
 0x103   : > { %v3536_v60 = vpop.f32.mrb[0].mxu0 }
 0x104   : > { %v410_v62 = vadd.f32 %v3536_v60, %v4454_v57  ;;  %v404_v63 = vpop.f32.mrb[1].mxu0 }
 0x105   : > { %v405_v0 = vadd.f32 %v4454_v57, %v404_v63 }
 0x106   : > { %v564_v1 = vmax.f32 %v410_v62, 0.0 }
 0x107   : > { %v563_v4 = vmax.f32 %v405_v0, 0.0  ;;  %v3539_v5 = vpop.f32.mrb[2].mxu0 }
 0x108   : > { %697 = vst.msk [vmem:[#allocation2 + $0x21] sm:$0xff] %vm595_vm0, %v564_v1  ;;  %v420_v7 = vadd.f32 %v3539_v5, %v4454_v57  ;;  %v414_v8 = vpop.f32.mrb[3].mxu0 }
 0x109   : > { %696 = vst.msk [vmem:[#allocation2 + $0x11] sm:$0xff] %vm595_vm0, %v563_v4  ;;  %v415_v10 = vadd.f32 %v4454_v57, %v414_v8 }
 0x10a   : > { %v566_v11 = vmax.f32 %v420_v7, 0.0 }
 0x10b   : > { %v565_v16 = vmax.f32 %v415_v10, 0.0  ;;  %v3542_v17 = vpop.f32.mrb[4].mxu0 }
 0x10c   : > { %699 = vst.msk [vmem:[#allocation2 + $0x41] sm:$0xff] %vm595_vm0, %v566_v11  ;;  %v430_v19 = vadd.f32 %v3542_v17, %v4454_v57  ;;  %v424_v20 = vpop.f32.mrb[5].mxu0 }
 0x10d   : > { %698 = vst.msk [vmem:[#allocation2 + $0x31] sm:$0xff] %vm595_vm0, %v565_v16  ;;  %v425_v21 = vadd.f32 %v4454_v57, %v424_v20 }
 0x10e   : > { %v568_v22 = vmax.f32 %v430_v19, 0.0 }
 0x10f   : > { %v1820_v25 = vld [vmem:[#allocation2 + $0x21] sm:$0xff]  ;;  %v567_v28 = vmax.f32 %v425_v21, 0.0  ;;  %v3545_v29 = vpop.f32.mrb[6].mxu0 }
 0x110   : > { %v1628_v26 = vld [vmem:[#allocation2 + $0x20] sm:$0xff]  ;;  %1884 = vrot.lane.b32.xlu0 %v1820_v25, %s3939_s9  ;;  %v4500_v31 = vld [vmem:[#allocation2 + $0x10] sm:$0xff]  ;;  %701 = vst.msk [vmem:[#allocation2 + $0x61] sm:$0xff] %vm595_vm0, %v568_v22  ;;  %v440_v33 = vadd.f32 %v3545_v29, %v4454_v57  ;;  %v434_v34 = vpop.f32.mrb[7].mxu0  ;;  %1404 = vst.msk [vmem:[#allocation3 + $0x20] sm:$0xff] %vm595_vm0, %v1820_v25 }
 0x111   : > { %v4494_v27 = vld [vmem:[#allocation2 + $0x22] sm:$0xff]  ;;  %1692 = vrot.lane.b32.xlu1 %v1628_v26, %s3937_s15  ;;  %v4502_v32 = vld [vmem:[#allocation2 + $0x11] sm:$0xff]  ;;  %762 = vst.msk [vmem:[#allocation3 + $0x30] sm:$0xff] %vm595_vm0, %v1628_v26  ;;  %700 = vst.msk [vmem:[#allocation2 + $0x51] sm:$0xff] %vm595_vm0, %v567_v28  ;;  %v435_v35 = vadd.f32 %v4454_v57, %v434_v34 }
 0x112   : > { %2044 = vst.msk [vmem:[#allocation3 + $0x10] sm:$0xff] %vm595_vm0, %v4494_v27  ;;  %1403 = vst.msk [vmem:[#allocation3 + $0x8] sm:$0xff] %vm595_vm0, %v4502_v32  ;;  %v570_v36 = vmax.f32 %v440_v33, 0.0  ;;  %v4552_v51 = vld [vmem:[#allocation2 + $0x12] sm:$0xff] }
 0x113   : > { %761 = vst.msk [vmem:[#allocation3 + $0x18] sm:$0xff] %vm595_vm0, %v4500_v31  ;;  %v4521_v39 = vld [vmem:[#allocation2 + $0x42] sm:$0xff]  ;;  %v569_v42 = vmax.f32 %v435_v35, 0.0  ;;  %v3548_v43 = vpop.f32.mrb[8].mxu0 }
 0x114   : > { %v4523_v40 = vld [vmem:[#allocation2 + $0x40] sm:$0xff]  ;;  %2046 = vst.msk [vmem:[#allocation3 + $0x40] sm:$0xff] %vm595_vm0, %v4521_v39  ;;  %v4529_v45 = vld [vmem:[#allocation2 + $0x32] sm:$0xff]  ;;  %1501 = vrot.lane.b32.xlu0 %v4494_v27, %s3938_s16  ;;  %703 = vst.msk [vmem:[#allocation2 + $0x81] sm:$0xff] %vm595_vm0, %v570_v36  ;;  %v450_v48 = vadd.f32 %v3548_v43, %v4454_v57  ;;  %v444_v49 = vpop.f32.mrb[9].mxu0 }
 0x115   : > { %v4525_v41 = vld [vmem:[#allocation2 + $0x41] sm:$0xff]  ;;  %1244 = vrot.lane.b32.xlu1 %v1628_v26, %s3939_s9  ;;  %v4534_v46 = vld [vmem:[#allocation2 + $0x30] sm:$0xff]  ;;  %764 = vst.msk [vmem:[#allocation3 + $0x60] sm:$0xff] %vm595_vm0, %v4523_v40  ;;  %2045 = vst.msk [vmem:[#allocation3 + $0x28] sm:$0xff] %vm595_vm0, %v4529_v45  ;;  %v445_v50 = vadd.f32 %v4454_v57, %v444_v49 }
 0x116   : > { %v4536_v47 = vld [vmem:[#allocation2 + $0x31] sm:$0xff]  ;;  %1406 = vst.msk [vmem:[#allocation3 + $0x50] sm:$0xff] %vm595_vm0, %v4525_v41  ;;  %702 = vst.msk [vmem:[#allocation2 + $0x71] sm:$0xff] %vm595_vm0, %v569_v42  ;;  %v572_v52 = vmax.f32 %v450_v48, 0.0 }
 0x117   : > { %1405 = vst.msk [vmem:[#allocation3 + $0x38] sm:$0xff] %vm595_vm0, %v4536_v47  ;;  %763 = vst.msk [vmem:[#allocation3 + $0x48] sm:$0xff] %vm595_vm0, %v4534_v46  ;;  %v4561_v56 = vld [vmem:[#allocation2 + $0x62] sm:$0xff]  ;;  %v571_v59 = vmax.f32 %v445_v50, 0.0  ;;  %v3551_v60 = vpop.f32.mrb[10].mxu0  ;;  %v2099_v48 = vld [vmem:[#allocation3 + $0xb8] sm:$0xff] }
 0x118   : > { %v4563_v58 = vld [vmem:[#allocation2 + $0x60] sm:$0xff]  ;;  %2048 = vst.msk [vmem:[#allocation3 + $0x70] sm:$0xff] %vm595_vm0, %v4561_v56  ;;  %v4569_v15 = vld [vmem:[#allocation2 + $0x52] sm:$0xff]  ;;  %705 = vst.msk [vmem:[#allocation2 + $0xc1] sm:$0xff] %vm595_vm0, %v572_v52  ;;  %v460_v0 = vadd.f32 %v3551_v60, %v4454_v57  ;;  %v454_v1 = vpop.f32.mrb[11].mxu0  ;;  %1499 = vrot.lane.b32.xlu0 %v4552_v51, %s3938_s16 }
 0x119   : > { %v2078_v55 = vld [vmem:[#allocation3 + $0x10] sm:$0xff]  ;;  %860 = vrot.lane.b32.xlu1 %v1820_v25, %s3938_s16  ;;  %v4571_v62 = vld [vmem:[#allocation2 + $0x61] sm:$0xff]  ;;  %766 = vst.msk [vmem:[#allocation3 + $0x90] sm:$0xff] %vm595_vm0, %v4563_v58  ;;  %2047 = vst.msk [vmem:[#allocation3 + $0x58] sm:$0xff] %vm595_vm0, %v4569_v15  ;;  %v455_v3 = vadd.f32 %v4454_v57, %v454_v1 }
 0x11a   : > { %3590 = vmatprep.mubr.msk.f32.mxu0 %vm595_vm0, %v2078_v55  ;;  %v4573_v63 = vld [vmem:[#allocation2 + $0x50] sm:$0xff]  ;;  %704 = vst.msk [vmem:[#allocation2 + $0xb1] sm:$0xff] %vm595_vm0, %v571_v59  ;;  %1408 = vst.msk [vmem:[#allocation3 + $0x80] sm:$0xff] %vm595_vm0, %v4571_v62  ;;  %v574_v4 = vmax.f32 %v460_v0, 0.0 }
 0x11b   : > { %v4583_v2 = vld [vmem:[#allocation2 + $0x51] sm:$0xff]  ;;  %765 = vst.msk [vmem:[#allocation3 + $0x78] sm:$0xff] %vm595_vm0, %v4573_v63  ;;  %v2084_v5 = vld [vmem:[#allocation3 + $0x40] sm:$0xff]  ;;  %v573_v7 = vmax.f32 %v455_v3, 0.0  ;;  %v3554_v8 = vpop.f32.mrb[12].mxu0 }
 0x11c   : > { %1407 = vst.msk [vmem:[#allocation3 + $0x68] sm:$0xff] %vm595_vm0, %v4583_v2  ;;  %v4594_v6 = vld [vmem:[#allocation2 + $0x82] sm:$0xff]  ;;  %707 = vst.msk [vmem:[#allocation2 + $0xe1] sm:$0xff] %vm595_vm0, %v574_v4  ;;  %v470_v14 = vadd.f32 %v3554_v8, %v4454_v57  ;;  %v464_v16 = vpop.f32.mrb[13].mxu0  ;;  %1696 = vrot.lane.b32.xlu0 %v4523_v40, %s3937_s15 }
 0x11d   : > { %1053 = vrot.lane.b32.xlu1 %v4494_v27, %s3937_s15  ;;  %v2081_v10 = vld [vmem:[#allocation3 + $0x28] sm:$0xff]  ;;  %2050 = vst.msk [vmem:[#allocation3 + $0xa0] sm:$0xff] %vm595_vm0, %v4594_v6  ;;  %v4600_v11 = vld [vmem:[#allocation2 + $0x72] sm:$0xff]  ;;  %706 = vst.msk [vmem:[#allocation2 + $0xd1] sm:$0xff] %vm595_vm0, %v573_v7  ;;  %v465_v19 = vadd.f32 %v4454_v57, %v464_v16 }
 0x11e   : > { %v4602_v13 = vld [vmem:[#allocation2 + $0x81] sm:$0xff]  ;;  %3591 = vmatmul.mubr.msk.f32.vlgmr.msra.gmra.mrb[32].mxu0 %vm595_vm0, %v2081_v10  ;;  %2049 = vst.msk [vmem:[#allocation3 + $0x88] sm:$0xff] %vm595_vm0, %v4600_v11  ;;  %v4611_v17 = vld [vmem:[#allocation2 + $0x70] sm:$0xff]  ;;  %v576_v20 = vmax.f32 %v470_v14, 0.0 }
 0x11f   : > { %v4613_v18 = vld [vmem:[#allocation2 + $0x71] sm:$0xff]  ;;  %1410 = vst.msk [vmem:[#allocation3 + $0xb0] sm:$0xff] %vm595_vm0, %v4602_v13  ;;  %3593 = vmatprep.mubr.msk.f32.mxu0 %vm595_vm0, %v2084_v5  ;;  %767 = vst.msk [vmem:[#allocation3 + $0xa8] sm:$0xff] %vm595_vm0, %v4611_v17  ;;  %v4624_v22 = vld [vmem:[#allocation2 + $0xc2] sm:$0xff]  ;;  %v575_v24 = vmax.f32 %v465_v19, 0.0  ;;  %v3557_v25 = vpop.f32.mrb[14].mxu0 }
 0x120   : > { %1409 = vst.msk [vmem:[#allocation3 + $0x98] sm:$0xff] %vm595_vm0, %v4613_v18  ;;  %v2090_v21 = vld [vmem:[#allocation3 + $0x70] sm:$0xff]  ;;  %v4626_v23 = vld [vmem:[#allocation2 + $0xc0] sm:$0xff]  ;;  %v2087_v26 = vld [vmem:[#allocation3 + $0x58] sm:$0xff]  ;;  %v480_v28 = vadd.f32 %v3557_v25, %v4454_v57  ;;  %v474_v29 = vpop.f32.mrb[15].mxu0  ;;  %1888 = vrot.lane.b32.xlu0 %v4525_v41, %s3939_s9 }
 0x121   : > { %1242 = vrot.lane.b32.xlu1 %v4500_v31, %s3939_s9  ;;  %2052 = vst.msk [vmem:[#allocation3 + $0xd0] sm:$0xff] %vm595_vm0, %v4624_v22  ;;  %v4632_v27 = vld [vmem:[#allocation2 + $0xc1] sm:$0xff]  ;;  %709 = vst.msk [vmem:[#allocation2 + $0x101] sm:$0xff] %vm595_vm0, %v576_v20  ;;  %v4641_v30 = vld [vmem:[#allocation2 + $0xb0] sm:$0xff]  ;;  %v475_v33 = vadd.f32 %v4454_v57, %v474_v29 }
 0x122   : > { %770 = vst.msk [vmem:[#allocation3 + $0xf0] sm:$0xff] %vm595_vm0, %v4626_v23  ;;  %3594 = vmatmul.mubr.msk.f32.gmra.mrb[34].mxu0 %vm595_vm0, %v2087_v26  ;;  %v4643_v31 = vld [vmem:[#allocation2 + $0xb1] sm:$0xff]  ;;  %708 = vst.msk [vmem:[#allocation2 + $0xf1] sm:$0xff] %vm595_vm0, %v575_v24  ;;  %v578_v34 = vmax.f32 %v480_v28, 0.0 }
 0x123   : > { %1412 = vst.msk [vmem:[#allocation3 + $0xe0] sm:$0xff] %vm595_vm0, %v4632_v27  ;;  %3596 = vmatprep.mubr.msk.f32.mxu0 %vm595_vm0, %v2090_v21  ;;  %1411 = vst.msk [vmem:[#allocation3 + $0xc8] sm:$0xff] %vm595_vm0, %v4643_v31  ;;  %v4654_v36 = vld [vmem:[#allocation2 + $0xe2] sm:$0xff]  ;;  %v577_v37 = vmax.f32 %v475_v33, 0.0 }
 0x124   : > { %769 = vst.msk [vmem:[#allocation3 + $0xd8] sm:$0xff] %vm595_vm0, %v4641_v30  ;;  %v2096_v35 = vld [vmem:[#allocation3 + $0xa0] sm:$0xff]  ;;  %2054 = vst.msk [vmem:[#allocation3 + $0x100] sm:$0xff] %vm595_vm0, %v4654_v36  ;;  %v4660_v42 = vld [vmem:[#allocation2 + $0xd2] sm:$0xff]  ;;  %1505 = vrot.lane.b32.xlu0 %v4521_v39, %s3938_s16 }
 0x125   : > { %858 = vrot.lane.b32.xlu1 %v4502_v32, %s3938_s16  ;;  %v2093_v38 = vld [vmem:[#allocation3 + $0x88] sm:$0xff]  ;;  %711 = vst.msk [vmem:[#allocation2 + $0x121] sm:$0xff] %vm595_vm0, %v578_v34  ;;  %2053 = vst.msk [vmem:[#allocation3 + $0xe8] sm:$0xff] %vm595_vm0, %v4660_v42  ;;  %v4670_v44 = vld [vmem:[#allocation2 + $0xd1] sm:$0xff] }
 0x126   : > { %v4662_v43 = vld [vmem:[#allocation2 + $0xe1] sm:$0xff]  ;;  %3597 = vmatmul.mubr.msk.f32.gmra.mrb[36].mxu0 %vm595_vm0, %v2093_v38  ;;  %710 = vst.msk [vmem:[#allocation2 + $0x111] sm:$0xff] %vm595_vm0, %v577_v37  ;;  %1413 = vst.msk [vmem:[#allocation3 + $0xf8] sm:$0xff] %vm595_vm0, %v4670_v44  ;;  %v739_v49 = vld [vmem:[#allocation2 + $0xd0] sm:$0xff] }
 0x127   : > { %1414 = vst.msk [vmem:[#allocation3 + $0x110] sm:$0xff] %vm595_vm0, %v4662_v43  ;;  %v740_v32 = vld [vmem:[#allocation2 + $0xe0] sm:$0xff]  ;;  %3599 = vmatprep.mubr.msk.f32.mxu0 %vm595_vm0, %v2096_v35  ;;  %771 = vst.msk [vmem:[#allocation3 + $0x108] sm:$0xff] %vm595_vm0, %v739_v49 }
 0x128   : > { %772 = vst.msk [vmem:[#allocation3 + $0x120] sm:$0xff] %vm595_vm0, %v740_v32  ;;  %v2102_v50 = vld [vmem:[#allocation3 + $0xd0] sm:$0xff]  ;;  %v4679_v52 = vld [vmem:[#allocation2 + $0x102] sm:$0xff]  ;;  %1694 = vrot.lane.b32.xlu0 %v4534_v46, %s3937_s15 }
 0x129   : > { %v4681_v53 = vld [vmem:[#allocation2 + $0x100] sm:$0xff]  ;;  %1051 = vrot.lane.b32.xlu1 %v4552_v51, %s3937_s15  ;;  %2056 = vst.msk [vmem:[#allocation3 + $0x130] sm:$0xff] %vm595_vm0, %v4679_v52  ;;  %v4688_v54 = vld [vmem:[#allocation2 + $0xf2] sm:$0xff] }
 0x12a   : > { %v4690_v55 = vld [vmem:[#allocation2 + $0x101] sm:$0xff]  ;;  %v4692_v59 = vld [vmem:[#allocation2 + $0xf0] sm:$0xff]  ;;  %774 = vst.msk [vmem:[#allocation3 + $0x150] sm:$0xff] %vm595_vm0, %v4681_v53  ;;  %3600 = vmatmul.mubr.msk.f32.gmra.mrb[38].mxu0 %vm595_vm0, %v2099_v48  ;;  %2055 = vst.msk [vmem:[#allocation3 + $0x118] sm:$0xff] %vm595_vm0, %v4688_v54 }
 0x12b   : > { %v4701_v51 = vld [vmem:[#allocation2 + $0xf1] sm:$0xff]  ;;  %1416 = vst.msk [vmem:[#allocation3 + $0x140] sm:$0xff] %vm595_vm0, %v4690_v55  ;;  %773 = vst.msk [vmem:[#allocation3 + $0x138] sm:$0xff] %vm595_vm0, %v4692_v59  ;;  %3602 = vmatprep.mubr.msk.f32.mxu0 %vm595_vm0, %v2102_v50  ;;  %v2108_v60 = vld [vmem:[#allocation3 + $0x100] sm:$0xff] }
 0x12c   : > { %1415 = vst.msk [vmem:[#allocation3 + $0x128] sm:$0xff] %vm595_vm0, %v4701_v51  ;;  %v4710_v61 = vld [vmem:[#allocation2 + $0x122] sm:$0xff]  ;;  %1886 = vrot.lane.b32.xlu0 %v4536_v47, %s3939_s9 }
 0x12d   : > { %1248 = vrot.lane.b32.xlu1 %v4523_v40, %s3939_s9  ;;  %v2105_v0 = vld [vmem:[#allocation3 + $0xe8] sm:$0xff]  ;;  %2058 = vst.msk [vmem:[#allocation3 + $0x160] sm:$0xff] %vm595_vm0, %v4710_v61  ;;  %v4716_v1 = vld [vmem:[#allocation2 + $0x112] sm:$0xff]  ;;  %v3560_v40 = vpop.f32.mrb[16].mxu0 }
 0x12e   : > { %v4718_v3 = vld [vmem:[#allocation2 + $0x121] sm:$0xff]  ;;  %3603 = vmatmul.mubr.msk.f32.gmra.mrb[40].mxu0 %vm595_vm0, %v2105_v0  ;;  %2057 = vst.msk [vmem:[#allocation3 + $0x148] sm:$0xff] %vm595_vm0, %v4716_v1  ;;  %v4725_v4 = vld [vmem:[#allocation2 + $0x110] sm:$0xff]  ;;  %v490_v8 = vadd.f32 %v3560_v40, %v4454_v57  ;;  %v484_v14 = vpop.f32.mrb[17].mxu0 }
 0x12f   : > { %v4727_v5 = vld [vmem:[#allocation2 + $0x111] sm:$0xff]  ;;  %1418 = vst.msk [vmem:[#allocation3 + $0x170] sm:$0xff] %vm595_vm0, %v4718_v3  ;;  %3605 = vmatprep.mubr.msk.f32.mxu0 %vm595_vm0, %v2108_v60  ;;  %775 = vst.msk [vmem:[#allocation3 + $0x168] sm:$0xff] %vm595_vm0, %v4725_v4  ;;  %v485_v19 = vadd.f32 %v4454_v57, %v484_v14 }
 0x130   : > { %1417 = vst.msk [vmem:[#allocation3 + $0x158] sm:$0xff] %vm595_vm0, %v4727_v5  ;;  %v2114_v7 = vld [vmem:[#allocation3 + $0x130] sm:$0xff]  ;;  %1503 = vrot.lane.b32.xlu0 %v4529_v45, %s3938_s16  ;;  %v580_v16 = vmax.f32 %v490_v8, 0.0 }
 0x131   : > { %864 = vrot.lane.b32.xlu1 %v4525_v41, %s3938_s16  ;;  %v2111_v10 = vld [vmem:[#allocation3 + $0x118] sm:$0xff]  ;;  %v579_v21 = vmax.f32 %v485_v19, 0.0 }
 0x132   : > { %3606 = vmatmul.mubr.msk.f32.gmra.mrb[42].mxu0 %vm595_vm0, %v2111_v10  ;;  %713 = vst.msk [vmem:[#allocation2 + $0x161] sm:$0xff] %vm595_vm0, %v580_v16 }
 0x133   : > { %3608 = vmatprep.mubr.msk.f32.mxu0 %vm595_vm0, %v2114_v7  ;;  %712 = vst.msk [vmem:[#allocation2 + $0x151] sm:$0xff] %vm595_vm0, %v579_v21 }
 0x134   : > { %v2120_v20 = vld [vmem:[#allocation3 + $0x160] sm:$0xff]  ;;  %1700 = vrot.lane.b32.xlu0 %v4563_v58, %s3937_s15 }
 0x135   : > { %1057 = vrot.lane.b32.xlu1 %v4521_v39, %s3937_s15  ;;  %v2117_v41 = vld [vmem:[#allocation3 + $0x148] sm:$0xff]  ;;  %v2027_v39 = vld [vmem:[#allocation2 + $0x132] sm:$0xff] }
 0x136   : > { %3609 = vmatmul.mubr.msk.f32.gmra.mrb[44].mxu0 %vm595_vm0, %v2117_v41  ;;  %2059 = vst.msk [vmem:[#allocation3 + $0x178] sm:$0xff] %vm595_vm0, %v2027_v39 }
 0x137   : > { %3611 = vmatprep.mubr.msk.f32.mxu0 %vm595_vm0, %v2120_v20 }
 0x138   : > { %1892 = vrot.lane.b32.xlu0 %v4571_v62, %s3939_s9 }
 0x139   : > { %1246 = vrot.lane.b32.xlu1 %v4534_v46, %s3939_s9  ;;  %v4756_v24 = vld [vmem:[#allocation2 + $0x162] sm:$0xff] }
 0x13a   : > { %2060 = vst.msk [vmem:[#allocation3 + $0x190] sm:$0xff] %vm595_vm0, %v4756_v24  ;;  %v4762_v25 = vld [vmem:[#allocation2 + $0x160] sm:$0xff]  ;;  %v4769_v46 = vld [vmem:[#allocation2 + $0x150] sm:$0xff] }
 0x13b   : > { %v4764_v26 = vld [vmem:[#allocation2 + $0x161] sm:$0xff]  ;;  %v4771_v28 = vld [vmem:[#allocation2 + $0x151] sm:$0xff]  ;;  %778 = vst.msk [vmem:[#allocation3 + $0x1b0] sm:$0xff] %vm595_vm0, %v4762_v25  ;;  %777 = vst.msk [vmem:[#allocation3 + $0x198] sm:$0xff] %vm595_vm0, %v4769_v46 }
 0x13c   : > { %1509 = vrot.lane.b32.xlu0 %v4561_v56, %s3938_s16  ;;  %1420 = vst.msk [vmem:[#allocation3 + $0x1a0] sm:$0xff] %vm595_vm0, %v4764_v26  ;;  %1419 = vst.msk [vmem:[#allocation3 + $0x188] sm:$0xff] %vm595_vm0, %v4771_v28 }
 0x13d   : > { %862 = vrot.lane.b32.xlu1 %v4536_v47, %s3938_s16  ;;  %v3563_v47 = vpop.f32.mrb[18].mxu0  ;;  %v2123_v38 = vld [vmem:[#allocation3 + $0x178] sm:$0xff] }
 0x13e   : > { %v500_v29 = vadd.f32 %v3563_v47, %v4454_v57  ;;  %v494_v33 = vpop.f32.mrb[19].mxu0  ;;  %3612 = vmatmul.mubr.msk.f32.gmra.mrb[46].mxu0 %vm595_vm0, %v2123_v38 }
 0x13f   : > { %v495_v34 = vadd.f32 %v4454_v57, %v494_v33  ;;  %v3566_v40 = vpop.f32.mrb[20].mxu0 }
 0x140   : > { %1698 = vrot.lane.b32.xlu0 %v4573_v63, %s3937_s15  ;;  %v582_v35 = vmax.f32 %v500_v29, 0.0  ;;  %v510_v7 = vadd.f32 %v3566_v40, %v4454_v57  ;;  %v504_v8 = vpop.f32.mrb[21].mxu0  ;;  %v4908_v40 = vld [vmem:[#allocation2 + $0xe0] sm:$0xff] }
 0x141   : > { %1055 = vrot.lane.b32.xlu1 %v4529_v45, %s3937_s15  ;;  %v581_v37 = vmax.f32 %v495_v34, 0.0  ;;  %v2126_v32 = vld [vmem:[#allocation3 + $0x190] sm:$0xff]  ;;  %v1634_v45 = vld [vmem:[#allocation2 + $0x80] sm:$0xff]  ;;  %v3569_v41 = vpop.f32.mrb[22].mxu0 }
 0x142   : > { %715 = vst.msk [vmem:[#allocation2 + $0x181] sm:$0xff] %vm595_vm0, %v582_v35  ;;  %3614 = vmatprep.mubr.msk.f32.mxu0 %vm595_vm0, %v2126_v32  ;;  %v520_v47 = vadd.f32 %v3569_v41, %v4454_v57 }
 0x143   : > { %714 = vst.msk [vmem:[#allocation2 + $0x171] sm:$0xff] %vm595_vm0, %v581_v37  ;;  %v4898_v37 = vld [vmem:[#allocation2 + $0xb2] sm:$0xff] }
 0x144   : > { %1890 = vrot.lane.b32.xlu0 %v4583_v2, %s3939_s9  ;;  %v586_v29 = vmax.f32 %v520_v47, 0.0 }
 0x145   : > { %1252 = vrot.lane.b32.xlu1 %v4563_v58, %s3939_s9 }
 0x146   : > { %719 = vst.msk [vmem:[#allocation2 + $0x1c1] sm:$0xff] %vm595_vm0, %v586_v29 }
 0x148   : > { %1507 = vrot.lane.b32.xlu0 %v4569_v15, %s3938_s16 }
 0x149   : > { %868 = vrot.lane.b32.xlu1 %v4571_v62, %s3938_s16  ;;  %v4799_v48 = vld [vmem:[#allocation2 + $0x182] sm:$0xff] }
 0x14a   : > { %2062 = vst.msk [vmem:[#allocation3 + $0x1c0] sm:$0xff] %vm595_vm0, %v4799_v48  ;;  %v4803_v58 = vld [vmem:[#allocation2 + $0x172] sm:$0xff]  ;;  %v4809_v49 = vld [vmem:[#allocation2 + $0x180] sm:$0xff] }
 0x14b   : > { %2061 = vst.msk [vmem:[#allocation3 + $0x1a8] sm:$0xff] %vm595_vm0, %v4803_v58  ;;  %v4811_v62 = vld [vmem:[#allocation2 + $0x181] sm:$0xff]  ;;  %v4813_v50 = vld [vmem:[#allocation2 + $0x170] sm:$0xff]  ;;  %780 = vst.msk [vmem:[#allocation3 + $0x1e0] sm:$0xff] %vm595_vm0, %v4809_v49 }
 0x14c   : > { %1704 = vrot.lane.b32.xlu0 %v1634_v45, %s3937_s15  ;;  %v4816_v60 = vld [vmem:[#allocation2 + $0x171] sm:$0xff]  ;;  %1422 = vst.msk [vmem:[#allocation3 + $0x1d0] sm:$0xff] %vm595_vm0, %v4811_v62  ;;  %779 = vst.msk [vmem:[#allocation3 + $0x1c8] sm:$0xff] %vm595_vm0, %v4813_v50 }
 0x14d   : > { %1061 = vrot.lane.b32.xlu1 %v4561_v56, %s3937_s15  ;;  %1421 = vst.msk [vmem:[#allocation3 + $0x1b8] sm:$0xff] %vm595_vm0, %v4816_v60 }
 0x150   : > { %1896 = vrot.lane.b32.xlu0 %v4602_v13, %s3939_s9 }
 0x151   : > { %1250 = vrot.lane.b32.xlu1 %v4573_v63, %s3939_s9  ;;  %v2132_v0 = vld [vmem:[#allocation3 + $0x1c0] sm:$0xff]  ;;  %v505_v63 = vadd.f32 %v4454_v57, %v504_v8 }
 0x152   : > { %v2129_v56 = vld [vmem:[#allocation3 + $0x1a8] sm:$0xff] }
 0x153   : > { %3615 = vmatmul.mubr.msk.f32.gmra.mrb[48].mxu0 %vm595_vm0, %v2129_v56  ;;  %v583_v13 = vmax.f32 %v505_v63, 0.0 }
 0x154   : > { %1513 = vrot.lane.b32.xlu0 %v4594_v6, %s3938_s16  ;;  %3617 = vmatprep.mubr.msk.f32.mxu0 %vm595_vm0, %v2132_v0  ;;  %v4847_v6 = vpop.permute.xlu0 %1706 }
 0x155   : > { %866 = vrot.lane.b32.xlu1 %v4583_v2, %s3938_s16  ;;  %v584_v2 = vmax.f32 %v510_v7, 0.0  ;;  %716 = vst.msk [vmem:[#allocation2 + $0x191] sm:$0xff] %vm595_vm0, %v583_v13 }
 0x157   : > { %717 = vst.msk [vmem:[#allocation2 + $0x1a1] sm:$0xff] %vm595_vm0, %v584_v2 }
 0x158   : > { %1702 = vrot.lane.b32.xlu0 %v4611_v17, %s3937_s15  ;;  %v4861_v14 = vpop.permute.xlu0 %1898 }
 0x159   : > { %1059 = vrot.lane.b32.xlu1 %v4569_v15, %s3937_s15 }
 0x15c   : > { %1894 = vrot.lane.b32.xlu0 %v4613_v18, %s3939_s9  ;;  %v4857_v10 = vld [vmem:[#allocation2 + $0x192] sm:$0xff] }
 0x15d   : > { %1256 = vrot.lane.b32.xlu1 %v1634_v45, %s3939_s9  ;;  %2063 = vst.msk [vmem:[#allocation3 + $0x1d8] sm:$0xff] %vm595_vm0, %v4857_v10  ;;  %v4869_v19 = vld [vmem:[#allocation2 + $0x190] sm:$0xff] }
 0x15e   : > { %v4853_v15 = vld [vmem:[#allocation2 + $0x1a2] sm:$0xff]  ;;  %v4873_v20 = vld [vmem:[#allocation2 + $0x191] sm:$0xff]  ;;  %781 = vst.msk [vmem:[#allocation3 + $0x1f8] sm:$0xff] %vm595_vm0, %v4869_v19 }
 0x15f   : > { %2064 = vst.msk [vmem:[#allocation3 + $0x1f0] sm:$0xff] %vm595_vm0, %v4853_v15  ;;  %v4865_v16 = vld [vmem:[#allocation2 + $0x1a0] sm:$0xff]  ;;  %1423 = vst.msk [vmem:[#allocation3 + $0x1e8] sm:$0xff] %vm595_vm0, %v4873_v20 }
 0x160   : > { %1511 = vrot.lane.b32.xlu0 %v4600_v11, %s3938_s16  ;;  %782 = vst.msk [vmem:[#allocation3 + $0x210] sm:$0xff] %vm595_vm0, %v4865_v16 }
 0x161   : > { %1254 = vrot.lane.b32.xlu1 %v4611_v17, %s3939_s9  ;;  %v4867_v17 = vld [vmem:[#allocation2 + $0x1a1] sm:$0xff] }
 0x162   : > { %1424 = vst.msk [vmem:[#allocation3 + $0x200] sm:$0xff] %vm595_vm0, %v4867_v17 }
 0x164   : > { %1708 = vrot.lane.b32.xlu0 %v4626_v23, %s3937_s15  ;;  %v2135_v21 = vld [vmem:[#allocation3 + $0x1d8] sm:$0xff] }
 0x165   : > { %870 = vrot.lane.b32.xlu1 %v4613_v18, %s3938_s16  ;;  %v4887_v18 = vpop.permute.xlu0 %1722  ;;  %3618 = vmatmul.mubr.msk.f32.gmra.mrb[50].mxu0 %vm595_vm0, %v2135_v21 }
 0x166   : > { %v2138_v39 = vld [vmem:[#allocation3 + $0x1f0] sm:$0xff] }
 0x167   : > { %3620 = vmatprep.mubr.msk.f32.mxu0 %vm595_vm0, %v2138_v39 }
 0x168   : > { %1900 = vrot.lane.b32.xlu0 %v4632_v27, %s3939_s9 }
 0x169   : > { %1063 = vrot.lane.b32.xlu1 %v4600_v11, %s3937_s15  ;;  %v514_v11 = vpop.f32.mrb[23].mxu0 }
 0x16a   : > { %v515_v33 = vadd.f32 %v4454_v57, %v514_v11  ;;  %v3572_v34 = vpop.f32.mrb[24].mxu0 }
 0x16b   : > { %v530_v35 = vadd.f32 %v3572_v34, %v4454_v57  ;;  %v524_v32 = vpop.f32.mrb[25].mxu0 }
 0x16c   : > { %1517 = vrot.lane.b32.xlu0 %v4624_v22, %s3938_s16  ;;  %v585_v38 = vmax.f32 %v515_v33, 0.0  ;;  %v525_v56 = vadd.f32 %v4454_v57, %v524_v32  ;;  %v3575_v0 = vpop.f32.mrb[26].mxu0 }
 0x16d   : > { %1260 = vrot.lane.b32.xlu1 %v4626_v23, %s3939_s9  ;;  %v4902_v23 = vpop.permute.xlu0 %1914  ;;  %v588_v45 = vmax.f32 %v530_v35, 0.0  ;;  %v540_v7 = vadd.f32 %v3575_v0, %v4454_v57  ;;  %v4925_v35 = vld [vmem:[#allocation2 + $0x1c2] sm:$0xff] }
 0x16e   : > { %718 = vst.msk [vmem:[#allocation2 + $0x1b1] sm:$0xff] %vm595_vm0, %v585_v38  ;;  %v587_v8 = vmax.f32 %v525_v56, 0.0  ;;  %2066 = vst.msk [vmem:[#allocation3 + $0x220] sm:$0xff] %vm595_vm0, %v4925_v35 }
 0x16f   : > { %721 = vst.msk [vmem:[#allocation2 + $0x201] sm:$0xff] %vm595_vm0, %v588_v45  ;;  %v590_v13 = vmax.f32 %v540_v7, 0.0  ;;  %v4951_v7 = vld [vmem:[#allocation2 + $0x1c1] sm:$0xff] }
 0x170   : > { %1515 = vrot.lane.b32.xlu0 %v4898_v37, %s3938_s16  ;;  %720 = vst.msk [vmem:[#allocation2 + $0x1f1] sm:$0xff] %vm595_vm0, %v587_v8  ;;  %1426 = vst.msk [vmem:[#allocation3 + $0x230] sm:$0xff] %vm595_vm0, %v4951_v7 }
 0x171   : > { %876 = vrot.lane.b32.xlu1 %v4632_v27, %s3938_s16  ;;  %v534_v27 = vpop.f32.mrb[27].mxu0  ;;  %v4921_v29 = vpop.permute.xlu0 %1738  ;;  %723 = vst.msk [vmem:[#allocation2 + $0x221] sm:$0xff] %vm595_vm0, %v590_v13  ;;  %v1637_v13 = vld [vmem:[#allocation2 + $0xd0] sm:$0xff] }
 0x172   : > { %v535_v63 = vadd.f32 %v4454_v57, %v534_v27  ;;  %v3578_v2 = vpop.f32.mrb[28].mxu0 }
 0x173   : > { %v550_v21 = vadd.f32 %v3578_v2, %v4454_v57  ;;  %v544_v41 = vpop.f32.mrb[29].mxu0 }
 0x174   : > { %1712 = vrot.lane.b32.xlu0 %v4908_v40, %s3937_s15  ;;  %v589_v39 = vmax.f32 %v535_v63, 0.0  ;;  %v545_v47 = vadd.f32 %v4454_v57, %v544_v41  ;;  %v3581_v11 = vpop.f32.mrb[30].mxu0 }
 0x175   : > { %1069 = vrot.lane.b32.xlu1 %v4624_v22, %s3937_s15  ;;  %v592_v33 = vmax.f32 %v550_v21, 0.0  ;;  %v560_v22 = vadd.f32 %v3581_v11, %v4454_v57  ;;  %v554_v34 = vpop.f32.mrb[31].mxu0  ;;  %v4936_v56 = vld [vmem:[#allocation2 + $0x1b2] sm:$0xff] }
 0x176   : > { %722 = vst.msk [vmem:[#allocation2 + $0x211] sm:$0xff] %vm595_vm0, %v589_v39  ;;  %v591_v38 = vmax.f32 %v545_v47, 0.0  ;;  %v555_v32 = vadd.f32 %v4454_v57, %v554_v34  ;;  %2065 = vst.msk [vmem:[#allocation3 + $0x208] sm:$0xff] %vm595_vm0, %v4936_v56  ;;  %v4941_v57 = vld [vmem:[#allocation2 + $0x202] sm:$0xff]  ;;  %v4953_v27 = vld [vmem:[#allocation2 + $0x1b0] sm:$0xff] }
 0x177   : > { %725 = vst.msk [vmem:[#allocation2 + $0x241] sm:$0xff] %vm595_vm0, %v592_v33  ;;  %v594_v45 = vmax.f32 %v560_v22, 0.0  ;;  %2068 = vst.msk [vmem:[#allocation3 + $0x250] sm:$0xff] %vm595_vm0, %v4941_v57  ;;  %v4959_v63 = vld [vmem:[#allocation2 + $0x1b1] sm:$0xff]  ;;  %v2144_v33 = vld [vmem:[#allocation3 + $0x220] sm:$0xff] }
 0x178   : > { %1904 = vrot.lane.b32.xlu0 %v4662_v43, %s3939_s9  ;;  %724 = vst.msk [vmem:[#allocation2 + $0x231] sm:$0xff] %vm595_vm0, %v591_v38  ;;  %v593_v0 = vmax.f32 %v555_v32, 0.0  ;;  %v4957_v8 = vld [vmem:[#allocation2 + $0x222] sm:$0xff]  ;;  %783 = vst.msk [vmem:[#allocation3 + $0x228] sm:$0xff] %vm595_vm0, %v4953_v27 }
 0x179   : > { %1258 = vrot.lane.b32.xlu1 %v4641_v30, %s3939_s9  ;;  %727 = vst.msk [vmem:[#allocation2 + $0x261] sm:$0xff] %vm595_vm0, %v594_v45  ;;  %v4949_v30 = vpop.permute.xlu0 %1930  ;;  %2070 = vst.msk [vmem:[#allocation3 + $0x280] sm:$0xff] %vm595_vm0, %v4957_v8 }
 0x17a   : > { %726 = vst.msk [vmem:[#allocation2 + $0x251] sm:$0xff] %vm595_vm0, %v593_v0  ;;  %1425 = vst.msk [vmem:[#allocation3 + $0x218] sm:$0xff] %vm595_vm0, %v4959_v63 }
 0x17c   : > { %1521 = vrot.lane.b32.xlu0 %v4654_v36, %s3938_s16 }
 0x17d   : > { %874 = vrot.lane.b32.xlu1 %v4643_v31, %s3938_s16  ;;  %v4967_v31 = vld [vmem:[#allocation2 + $0x212] sm:$0xff] }
 0x17e   : > { %2069 = vst.msk [vmem:[#allocation3 + $0x268] sm:$0xff] %vm595_vm0, %v4967_v31  ;;  %v4973_v2 = vld [vmem:[#allocation2 + $0x242] sm:$0xff] }
 0x17f   : > { %2072 = vst.msk [vmem:[#allocation3 + $0x2b0] sm:$0xff] %vm595_vm0, %v4973_v2  ;;  %v4979_v21 = vld [vmem:[#allocation2 + $0x232] sm:$0xff] }
 0x180   : > { %1710 = vrot.lane.b32.xlu0 %v1637_v13, %s3937_s15  ;;  %2071 = vst.msk [vmem:[#allocation3 + $0x298] sm:$0xff] %vm595_vm0, %v4979_v21  ;;  %v4984_v41 = vld [vmem:[#allocation2 + $0x262] sm:$0xff] }
 0x181   : > { %1067 = vrot.lane.b32.xlu1 %v4898_v37, %s3937_s15  ;;  %2074 = vst.msk [vmem:[#allocation3 + $0x2e0] sm:$0xff] %vm595_vm0, %v4984_v41  ;;  %v4988_v11 = vld [vmem:[#allocation2 + $0x252] sm:$0xff]  ;;  %v2141_v37 = vld [vmem:[#allocation3 + $0x208] sm:$0xff] }
 0x182   : > { %v1885_v39 = vpop.permute.xlu0 %1884  ;;  %2073 = vst.msk [vmem:[#allocation3 + $0x2c8] sm:$0xff] %vm595_vm0, %v4988_v11  ;;  %3621 = vmatmul.mubr.msk.f32.gmra.mrb[52].mxu0 %vm595_vm0, %v2141_v37  ;;  %v5024_v37 = vld [vmem:[#allocation2 + $0x1f0] sm:$0xff] }
 0x183   : > { %v1693_v47 = vpop.permute.xlu1 %1692  ;;  %3623 = vmatprep.mubr.msk.f32.mxu0 %vm595_vm0, %v2144_v33  ;;  %785 = vst.msk [vmem:[#allocation3 + $0x258] sm:$0xff] %vm595_vm0, %v5024_v37 }
 0x184   : > { %1902 = vrot.lane.b32.xlu0 %v4670_v44, %s3939_s9 }
 0x185   : > { %1264 = vrot.lane.b32.xlu1 %v4908_v40, %s3939_s9 }
 0x186   : > { %v1502_v22 = vpop.permute.xlu0 %1501 }
 0x187   : > { %v1245_v34 = vpop.permute.xlu1 %1244  ;;  %1596 = vst.msk [vmem:[#allocation3 + $0x20] sm:$0xff] %vm952_vm3, %v1502_v22 }
 0x188   : > { %1519 = vrot.lane.b32.xlu0 %v4660_v42, %s3938_s16 }
 0x189   : > { %880 = vrot.lane.b32.xlu1 %v4662_v43, %s3938_s16 }
 0x18a   : > { %v1500_v40 = vpop.permute.xlu0 %1499 }
 0x18b   : > { %v861_v38 = vpop.permute.xlu1 %860  ;;  %1595 = vst.msk [vmem:[#allocation3 + $0x8] sm:$0xff] %vm952_vm3, %v1500_v40 }
 0x18c   : > { %955 = vst.msk [vmem:[#allocation3 + $0x30] sm:$0xff] %vm952_vm3, %v861_v38  ;;  %1716 = vrot.lane.b32.xlu0 %v4681_v53, %s3937_s15 }
 0x18d   : > { %1073 = vrot.lane.b32.xlu1 %v4654_v36, %s3937_s15  ;;  %1788 = vst.msk [vmem:[#allocation3 + $0x8] sm:$0xff] %vm1145_vm4, %v1693_v47  ;;  %v5018_v36 = vld [vmem:[#allocation2 + $0x200] sm:$0xff] }
 0x18e   : > { %1980 = vst.msk [vmem:[#allocation3 + $0x8] sm:$0xff] %vm1338_vm5, %v1885_v39  ;;  %v1697_v32 = vpop.permute.xlu0 %1696  ;;  %v5020_v47 = vld [vmem:[#allocation2 + $0x201] sm:$0xff] }
 0x18f   : > { %v1054_v43 = vpop.permute.xlu1 %1053  ;;  %1428 = vst.msk [vmem:[#allocation3 + $0x260] sm:$0xff] %vm595_vm0, %v5020_v47  ;;  %786 = vst.msk [vmem:[#allocation3 + $0x270] sm:$0xff] %vm595_vm0, %v5018_v36 }
 0x190   : > { %1148 = vst.msk [vmem:[#allocation3 + $0x30] sm:$0xff] %vm1145_vm4, %v1054_v43  ;;  %1908 = vrot.lane.b32.xlu0 %v4690_v55, %s3939_s9 }
 0x191   : > { %1262 = vrot.lane.b32.xlu1 %v1637_v13, %s3939_s9  ;;  %v5026_v13 = vld [vmem:[#allocation2 + $0x1f1] sm:$0xff] }
 0x192   : > { %v1889_v0 = vpop.permute.xlu0 %1888  ;;  %1427 = vst.msk [vmem:[#allocation3 + $0x248] sm:$0xff] %vm595_vm0, %v5026_v13 }
 0x193   : > { %v1243_v45 = vpop.permute.xlu1 %1242 }
 0x194   : > { %1339 = vst.msk [vmem:[#allocation3] sm:$0xff] %vm1338_vm5, %v1243_v45  ;;  %1525 = vrot.lane.b32.xlu0 %v4679_v52, %s3938_s16  ;;  %v5058_v45 = vld [vmem:[#allocation2 + $0x210] sm:$0xff] }
 0x195   : > { %878 = vrot.lane.b32.xlu1 %v4670_v44, %s3938_s16  ;;  %v2077_v39 = vld [vmem:[#allocation3 + $0x8] sm:$0xff]  ;;  %787 = vst.msk [vmem:[#allocation3 + $0x288] sm:$0xff] %vm595_vm0, %v5058_v45 }
 0x196   : > { %2375 = vmatprep.mubr.f32.mxu1 %v2077_v39  ;;  %v1506_v33 = vpop.permute.xlu0 %1505  ;;  %v5060_v39 = vld [vmem:[#allocation2 + $0x211] sm:$0xff] }
 0x197   : > { %v859_v44 = vpop.permute.xlu1 %858  ;;  %1598 = vst.msk [vmem:[#allocation3 + $0x50] sm:$0xff] %vm952_vm3, %v1506_v33 }
 0x198   : > { %954 = vst.msk [vmem:[#allocation3 + $0x18] sm:$0xff] %vm952_vm3, %v859_v44  ;;  %1714 = vrot.lane.b32.xlu0 %v4692_v59, %s3937_s15 }
 0x199   : > { %1071 = vrot.lane.b32.xlu1 %v4660_v42, %s3937_s15  ;;  %1429 = vst.msk [vmem:[#allocation3 + $0x278] sm:$0xff] %vm595_vm0, %v5060_v39 }
 0x19a   : > { %v1695_v40 = vpop.permute.xlu0 %1694 }
 0x19b   : > { %v1052_v22 = vpop.permute.xlu1 %1051  ;;  %v2076_v38 = vld [vmem:[#allocation3] sm:$0xff]  ;;  %1789 = vst.msk [vmem:[#allocation3 + $0x20] sm:$0xff] %vm1145_vm4, %v1695_v40 }
 0x19c   : > { %1147 = vst.msk [vmem:[#allocation3 + $0x18] sm:$0xff] %vm1145_vm4, %v1052_v22  ;;  %2376 = vmatmul.mubr.f32.vlgmr.msra.gmra.mrb[0].mxu1 %v2076_v38  ;;  %1906 = vrot.lane.b32.xlu0 %v4701_v51, %s3939_s9 }
 0x19d   : > { %1340 = vst.msk [vmem:[#allocation3 + $0x18] sm:$0xff] %vm1338_vm5, %v1245_v34  ;;  %1268 = vrot.lane.b32.xlu1 %v4681_v53, %s3939_s9  ;;  %3792 = vmatpush3.bf16.msra.mxu1 %v4354_v9  ;;  %v1642_v34 = vld [vmem:[#allocation2 + $0x120] sm:$0xff] }
 0x19e   : > { %3791 = vmatprep.subr.bf16.mxu1 %v4364_v12  ;;  %v1887_v43 = vpop.permute.xlu0 %1886 }
 0x19f   : > { %v1249_v42 = vpop.permute.xlu1 %1248  ;;  %1981 = vst.msk [vmem:[#allocation3 + $0x20] sm:$0xff] %vm1338_vm5, %v1887_v43 }
 0x1a0   : > { %1523 = vrot.lane.b32.xlu0 %v4688_v54, %s3938_s16 }
 0x1a1   : > { %884 = vrot.lane.b32.xlu1 %v4690_v55, %s3938_s16  ;;  %3793 = vmatpush3.bf16.msra.mxu1 %v4364_v12  ;;  %v5065_v55 = vld [vmem:[#allocation2 + $0x220] sm:$0xff] }
 0x1a2   : > { %v1504_v9 = vpop.permute.xlu0 %1503  ;;  %v5067_v12 = vld [vmem:[#allocation2 + $0x221] sm:$0xff]  ;;  %788 = vst.msk [vmem:[#allocation3 + $0x2a0] sm:$0xff] %vm595_vm0, %v5065_v55 }
 0x1a3   : > { %v865_v53 = vpop.permute.xlu1 %864  ;;  %1597 = vst.msk [vmem:[#allocation3 + $0x38] sm:$0xff] %vm952_vm3, %v1504_v9 }
 0x1a4   : > { %957 = vst.msk [vmem:[#allocation3 + $0x60] sm:$0xff] %vm952_vm3, %v865_v53  ;;  %1720 = vrot.lane.b32.xlu0 %v1642_v34, %s3937_s15 }
 0x1a5   : > { %1077 = vrot.lane.b32.xlu1 %v4679_v52, %s3937_s15  ;;  %1790 = vst.msk [vmem:[#allocation3 + $0x38] sm:$0xff] %vm1145_vm4, %v1697_v32  ;;  %v2079_v32 = vld [vmem:[#allocation3 + $0x18] sm:$0xff] }
 0x1a6   : > { %1430 = vst.msk [vmem:[#allocation3 + $0x290] sm:$0xff] %vm595_vm0, %v5067_v12  ;;  %v1701_v44 = vpop.permute.xlu0 %1700  ;;  %v2080_v33 = vld [vmem:[#allocation3 + $0x20] sm:$0xff] }
 0x1a7   : > { %1982 = vst.msk [vmem:[#allocation3 + $0x38] sm:$0xff] %vm1338_vm5, %v1889_v0  ;;  %v1058_v52 = vpop.permute.xlu1 %1057  ;;  %2380 = vmatprep.mubr.f32.mxu1 %v2080_v33  ;;  %v5117_v33 = vld [vmem:[#allocation2 + $0x241] sm:$0xff] }
 0x1a8   : > { %1150 = vst.msk [vmem:[#allocation3 + $0x60] sm:$0xff] %vm1145_vm4, %v1058_v52  ;;  %1912 = vrot.lane.b32.xlu0 %v4718_v3, %s3939_s9  ;;  %2381 = vmatmul.mubr.f32.gmra.mrb[2].mxu1 %v2079_v32  ;;  %v5115_v52 = vld [vmem:[#allocation2 + $0x240] sm:$0xff] }
 0x1a9   : > { %1266 = vrot.lane.b32.xlu1 %v4692_v59, %s3939_s9  ;;  %1432 = vst.msk [vmem:[#allocation3 + $0x2c0] sm:$0xff] %vm595_vm0, %v5117_v33  ;;  %790 = vst.msk [vmem:[#allocation3 + $0x2d0] sm:$0xff] %vm595_vm0, %v5115_v52 }
 0x1aa   : > { %v1893_v38 = vpop.permute.xlu0 %1892 }
 0x1ab   : > { %v1247_v22 = vpop.permute.xlu1 %1246 }
 0x1ac   : > { %1341 = vst.msk [vmem:[#allocation3 + $0x30] sm:$0xff] %vm1338_vm5, %v1247_v22  ;;  %1529 = vrot.lane.b32.xlu0 %v4710_v61, %s3938_s16 }
 0x1ad   : > { %882 = vrot.lane.b32.xlu1 %v4701_v51, %s3938_s16 }
 0x1ae   : > { %v2083_v0 = vld [vmem:[#allocation3 + $0x38] sm:$0xff]  ;;  %v1510_v43 = vpop.permute.xlu0 %1509 }
 0x1af   : > { %2385 = vmatprep.mubr.f32.mxu1 %v2083_v0  ;;  %v863_v40 = vpop.permute.xlu1 %862  ;;  %1600 = vst.msk [vmem:[#allocation3 + $0x80] sm:$0xff] %vm952_vm3, %v1510_v43 }
 0x1b0   : > { %956 = vst.msk [vmem:[#allocation3 + $0x48] sm:$0xff] %vm952_vm3, %v863_v40  ;;  %1718 = vrot.lane.b32.xlu0 %v4725_v4, %s3937_s15 }
 0x1b1   : > { %1075 = vrot.lane.b32.xlu1 %v4688_v54, %s3937_s15 }
 0x1b2   : > { %v1699_v51 = vpop.permute.xlu0 %1698 }
 0x1b3   : > { %v1056_v59 = vpop.permute.xlu1 %1055  ;;  %v2082_v3 = vld [vmem:[#allocation3 + $0x30] sm:$0xff]  ;;  %1791 = vst.msk [vmem:[#allocation3 + $0x50] sm:$0xff] %vm1145_vm4, %v1699_v51 }
 0x1b4   : > { %1149 = vst.msk [vmem:[#allocation3 + $0x48] sm:$0xff] %vm1145_vm4, %v1056_v59  ;;  %2386 = vmatmul.mubr.f32.gmra.mrb[4].mxu1 %v2082_v3  ;;  %1910 = vrot.lane.b32.xlu0 %v4727_v5, %s3939_s9 }
 0x1b5   : > { %1342 = vst.msk [vmem:[#allocation3 + $0x48] sm:$0xff] %vm1338_vm5, %v1249_v42  ;;  %1272 = vrot.lane.b32.xlu1 %v1642_v34, %s3939_s9  ;;  %v5108_v42 = vld [vmem:[#allocation2 + $0x230] sm:$0xff] }
 0x1b6   : > { %v1891_v54 = vpop.permute.xlu0 %1890  ;;  %v5110_v34 = vld [vmem:[#allocation2 + $0x231] sm:$0xff]  ;;  %789 = vst.msk [vmem:[#allocation3 + $0x2b8] sm:$0xff] %vm595_vm0, %v5108_v42 }
 0x1b7   : > { %v1253_v61 = vpop.permute.xlu1 %1252  ;;  %1983 = vst.msk [vmem:[#allocation3 + $0x50] sm:$0xff] %vm1338_vm5, %v1891_v54  ;;  %v5170_v54 = vld [vmem:[#allocation2 + $0x261] sm:$0xff] }
 0x1b8   : > { %1527 = vrot.lane.b32.xlu0 %v4716_v1, %s3938_s16  ;;  %1431 = vst.msk [vmem:[#allocation3 + $0x2a8] sm:$0xff] %vm595_vm0, %v5110_v34  ;;  %1434 = vst.msk [vmem:[#allocation3 + $0x2f0] sm:$0xff] %vm595_vm0, %v5170_v54 }
 0x1b9   : > { %1270 = vrot.lane.b32.xlu1 %v4725_v4, %s3939_s9 }
 0x1ba   : > { %v1508_v9 = vpop.permute.xlu0 %1507 }
 0x1bb   : > { %v869_v53 = vpop.permute.xlu1 %868  ;;  %1599 = vst.msk [vmem:[#allocation3 + $0x68] sm:$0xff] %vm952_vm3, %v1508_v9 }
 0x1bc   : > { %959 = vst.msk [vmem:[#allocation3 + $0x90] sm:$0xff] %vm952_vm3, %v869_v53  ;;  %1724 = vrot.lane.b32.xlu0 %v4762_v25, %s3937_s15 }
 0x1bd   : > { %886 = vrot.lane.b32.xlu1 %v4727_v5, %s3938_s16  ;;  %1792 = vst.msk [vmem:[#allocation3 + $0x68] sm:$0xff] %vm1145_vm4, %v1701_v44  ;;  %v2085_v44 = vld [vmem:[#allocation3 + $0x48] sm:$0xff] }
 0x1be   : > { %1984 = vst.msk [vmem:[#allocation3 + $0x68] sm:$0xff] %vm1338_vm5, %v1893_v38  ;;  %v1705_v5 = vpop.permute.xlu0 %1704  ;;  %v2086_v32 = vld [vmem:[#allocation3 + $0x50] sm:$0xff] }
 0x1bf   : > { %v1062_v4 = vpop.permute.xlu1 %1061  ;;  %2390 = vmatprep.mubr.f32.mxu1 %v2086_v32 }
 0x1c0   : > { %1152 = vst.msk [vmem:[#allocation3 + $0x90] sm:$0xff] %vm1145_vm4, %v1062_v4  ;;  %1916 = vrot.lane.b32.xlu0 %v4764_v26, %s3939_s9  ;;  %2391 = vmatmul.mubr.f32.gmra.mrb[6].mxu1 %v2085_v44 }
 0x1c1   : > { %1079 = vrot.lane.b32.xlu1 %v4716_v1, %s3937_s15  ;;  %v1451_v1 = vld [vmem:[#allocation2 + $0x152] sm:$0xff] }
 0x1c2   : > { %v1897_v0 = vpop.permute.xlu0 %1896 }
 0x1c3   : > { %v1251_v22 = vpop.permute.xlu1 %1250 }
 0x1c4   : > { %1343 = vst.msk [vmem:[#allocation3 + $0x60] sm:$0xff] %vm1338_vm5, %v1251_v22  ;;  %1533 = vrot.lane.b32.xlu0 %v4756_v24, %s3938_s16 }
 0x1c5   : > { %1276 = vrot.lane.b32.xlu1 %v4762_v25, %s3939_s9  ;;  %v2089_v38 = vld [vmem:[#allocation3 + $0x68] sm:$0xff] }
 0x1c6   : > { %2395 = vmatprep.mubr.f32.mxu1 %v2089_v38  ;;  %v1514_v43 = vpop.permute.xlu0 %1513 }
 0x1c7   : > { %v867_v40 = vpop.permute.xlu1 %866  ;;  %1602 = vst.msk [vmem:[#allocation3 + $0xb0] sm:$0xff] %vm952_vm3, %v1514_v43 }
 0x1c8   : > { %958 = vst.msk [vmem:[#allocation3 + $0x78] sm:$0xff] %vm952_vm3, %v867_v40  ;;  %1531 = vrot.lane.b32.xlu0 %v1451_v1, %s3938_s16 }
 0x1c9   : > { %892 = vrot.lane.b32.xlu1 %v4764_v26, %s3938_s16  ;;  %1795 = vst.msk [vmem:[#allocation3 + $0xb0] sm:$0xff] %vm1145_vm4, %v4847_v6 }
 0x1ca   : > { %1987 = vst.msk [vmem:[#allocation3 + $0xb0] sm:$0xff] %vm1338_vm5, %v4861_v14  ;;  %v1703_v3 = vpop.permute.xlu0 %1702 }
 0x1cb   : > { %v1060_v25 = vpop.permute.xlu1 %1059  ;;  %v2088_v59 = vld [vmem:[#allocation3 + $0x60] sm:$0xff]  ;;  %1793 = vst.msk [vmem:[#allocation3 + $0x80] sm:$0xff] %vm1145_vm4, %v1703_v3 }
 0x1cc   : > { %1151 = vst.msk [vmem:[#allocation3 + $0x78] sm:$0xff] %vm1145_vm4, %v1060_v25  ;;  %2396 = vmatmul.mubr.f32.gmra.mrb[8].mxu1 %v2088_v59  ;;  %1728 = vrot.lane.b32.xlu0 %v4809_v49, %s3937_s15  ;;  %v2035_v59 = vld [vmem:[#allocation2 + $0x1d2] sm:$0xff] }
 0x1cd   : > { %1344 = vst.msk [vmem:[#allocation3 + $0x78] sm:$0xff] %vm1338_vm5, %v1253_v61  ;;  %1085 = vrot.lane.b32.xlu1 %v4756_v24, %s3937_s15  ;;  %v5163_v61 = vld [vmem:[#allocation2 + $0x250] sm:$0xff] }
 0x1ce   : > { %v1895_v6 = vpop.permute.xlu0 %1894  ;;  %v5165_v24 = vld [vmem:[#allocation2 + $0x251] sm:$0xff]  ;;  %791 = vst.msk [vmem:[#allocation3 + $0x2e8] sm:$0xff] %vm595_vm0, %v5163_v61  ;;  %2067 = vst.msk [vmem:[#allocation3 + $0x238] sm:$0xff] %vm595_vm0, %v2035_v59 }
 0x1cf   : > { %v1257_v26 = vpop.permute.xlu1 %1256  ;;  %1985 = vst.msk [vmem:[#allocation3 + $0x80] sm:$0xff] %vm1338_vm5, %v1895_v6 }
 0x1d0   : > { %1920 = vrot.lane.b32.xlu0 %v4811_v62, %s3939_s9  ;;  %1433 = vst.msk [vmem:[#allocation3 + $0x2d8] sm:$0xff] %vm595_vm0, %v5165_v24 }
 0x1d1   : > { %1274 = vrot.lane.b32.xlu1 %v4769_v46, %s3939_s9  ;;  %v2098_v38 = vld [vmem:[#allocation3 + $0xb0] sm:$0xff] }
 0x1d2   : > { %v1512_v51 = vpop.permute.xlu0 %1511 }
 0x1d3   : > { %v1255_v14 = vpop.permute.xlu1 %1254  ;;  %1601 = vst.msk [vmem:[#allocation3 + $0x98] sm:$0xff] %vm952_vm3, %v1512_v51 }
 0x1d4   : > { %1345 = vst.msk [vmem:[#allocation3 + $0x90] sm:$0xff] %vm1338_vm5, %v1255_v14  ;;  %1537 = vrot.lane.b32.xlu0 %v4799_v48, %s3938_s16  ;;  %v2091_v9 = vld [vmem:[#allocation3 + $0x78] sm:$0xff] }
 0x1d5   : > { %890 = vrot.lane.b32.xlu1 %v4771_v28, %s3938_s16  ;;  %1794 = vst.msk [vmem:[#allocation3 + $0x98] sm:$0xff] %vm1145_vm4, %v1705_v5 }
 0x1d6   : > { %1986 = vst.msk [vmem:[#allocation3 + $0x98] sm:$0xff] %vm1338_vm5, %v1897_v0  ;;  %v1709_v28 = vpop.permute.xlu0 %1708  ;;  %v2092_v53 = vld [vmem:[#allocation3 + $0x80] sm:$0xff] }
 0x1d7   : > { %v871_v46 = vpop.permute.xlu1 %870  ;;  %2400 = vmatprep.mubr.f32.mxu1 %v2092_v53 }
 0x1d8   : > { %960 = vst.msk [vmem:[#allocation3 + $0xa8] sm:$0xff] %vm952_vm3, %v871_v46  ;;  %1726 = vrot.lane.b32.xlu0 %v4813_v50, %s3937_s15  ;;  %2401 = vmatmul.mubr.f32.gmra.mrb[10].mxu1 %v2091_v9 }
 0x1d9   : > { %1083 = vrot.lane.b32.xlu1 %v1451_v1, %s3937_s15 }
 0x1da   : > { %v1901_v5 = vpop.permute.xlu0 %1900 }
 0x1db   : > { %v1064_v4 = vpop.permute.xlu1 %1063  ;;  %v2094_v22 = vld [vmem:[#allocation3 + $0x90] sm:$0xff] }
 0x1dc   : > { %1153 = vst.msk [vmem:[#allocation3 + $0xa8] sm:$0xff] %vm1145_vm4, %v1064_v4  ;;  %1918 = vrot.lane.b32.xlu0 %v4816_v60, %s3939_s9 }
 0x1dd   : > { %1346 = vst.msk [vmem:[#allocation3 + $0xa8] sm:$0xff] %vm1338_vm5, %v1257_v26  ;;  %1280 = vrot.lane.b32.xlu1 %v4809_v49, %s3939_s9  ;;  %v2095_v32 = vld [vmem:[#allocation3 + $0x98] sm:$0xff] }
 0x1de   : > { %2405 = vmatprep.mubr.f32.mxu1 %v2095_v32  ;;  %v1518_v0 = vpop.permute.xlu0 %1517  ;;  %v2794_v32 = vld [vmem:[%s5801_s5 + $0x8] sm:$0xff] }
 0x1df   : > { %v1261_v44 = vpop.permute.xlu1 %1260  ;;  %2406 = vmatmul.mubr.f32.gmra.mrb[12].mxu1 %v2094_v22  ;;  %1604 = vst.msk [vmem:[#allocation3 + $0xe0] sm:$0xff] %vm952_vm3, %v1518_v0 }
 0x1e0   : > { %2410 = vmatprep.mubr.f32.mxu1 %v2098_v38  ;;  %1535 = vrot.lane.b32.xlu0 %v4803_v58, %s3938_s16  ;;  %v1650_v38 = vld [vmem:[#allocation2 + $0x1c0] sm:$0xff] }
 0x1e1   : > { %896 = vrot.lane.b32.xlu1 %v4811_v62, %s3938_s16 }
 0x1e2   : > { %v1516_v40 = vpop.permute.xlu0 %1515 }
 0x1e3   : > { %v877_v49 = vpop.permute.xlu1 %876  ;;  %1603 = vst.msk [vmem:[#allocation3 + $0xc8] sm:$0xff] %vm952_vm3, %v1516_v40  ;;  %v2795_v40 = vld [vmem:[%s5801_s5 + $0x10] sm:$0xff] }
 0x1e4   : > { %963 = vst.msk [vmem:[#allocation3 + $0xf0] sm:$0xff] %vm952_vm3, %v877_v49  ;;  %v2097_v43 = vld [vmem:[#allocation3 + $0xa8] sm:$0xff]  ;;  %1732 = vrot.lane.b32.xlu0 %v4865_v16, %s3937_s15 }
 0x1e5   : > { %1089 = vrot.lane.b32.xlu1 %v4799_v48, %s3937_s15  ;;  %2411 = vmatmul.mubr.f32.gmra.mrb[14].mxu1 %v2097_v43  ;;  %1796 = vst.msk [vmem:[#allocation3 + $0xc8] sm:$0xff] %vm1145_vm4, %v1709_v28  ;;  %v2147_v28 = vld [vmem:[#allocation3 + $0x238] sm:$0xff] }
 0x1e6   : > { %1988 = vst.msk [vmem:[#allocation3 + $0xc8] sm:$0xff] %vm1338_vm5, %v1901_v5  ;;  %v1713_v1 = vpop.permute.xlu0 %1712  ;;  %3624 = vmatmul.mubr.msk.f32.gmra.mrb[54].mxu0 %vm595_vm0, %v2147_v28  ;;  %v2796_v43 = vld [vmem:[%s5801_s5 + $0x18] sm:$0xff] }
 0x1e7   : > { %v1070_v62 = vpop.permute.xlu1 %1069 }
 0x1e8   : > { %1156 = vst.msk [vmem:[#allocation3 + $0xf0] sm:$0xff] %vm1145_vm4, %v1070_v62  ;;  %1924 = vrot.lane.b32.xlu0 %v4867_v17, %s3939_s9 }
 0x1e9   : > { %1278 = vrot.lane.b32.xlu1 %v4813_v50, %s3939_s9 }
 0x1ea   : > { %v1905_v48 = vpop.permute.xlu0 %1904 }
 0x1eb   : > { %v1259_v25 = vpop.permute.xlu1 %1258 }
 0x1ec   : > { %1347 = vst.msk [vmem:[#allocation3 + $0xc0] sm:$0xff] %vm1338_vm5, %v1259_v25  ;;  %1541 = vrot.lane.b32.xlu0 %v4853_v15, %s3938_s16  ;;  %v3786_v25 = vpack.c.bf16 %v2796_v43, %v2795_v40 }
 0x1ed   : > { %894 = vrot.lane.b32.xlu1 %v4816_v60, %s3938_s16  ;;  %v2101_v3 = vld [vmem:[#allocation3 + $0xc8] sm:$0xff] }
 0x1ee   : > { %2415 = vmatprep.mubr.f32.mxu1 %v2101_v3  ;;  %v1522_v50 = vpop.permute.xlu0 %1521 }
 0x1ef   : > { %v875_v26 = vpop.permute.xlu1 %874  ;;  %1606 = vst.msk [vmem:[#allocation3 + $0x110] sm:$0xff] %vm952_vm3, %v1522_v50 }
 0x1f0   : > { %962 = vst.msk [vmem:[#allocation3 + $0xd8] sm:$0xff] %vm952_vm3, %v875_v26  ;;  %1730 = vrot.lane.b32.xlu0 %v4869_v19, %s3937_s15 }
 0x1f1   : > { %1087 = vrot.lane.b32.xlu1 %v4803_v58, %s3937_s15  ;;  %v5220_v6 = vpop.f32.mrb[32].mxu0 }
 0x1f2   : > { %v5224_v60 = vpop.f32.mrb[33].mxu0  ;;  %v1711_v46 = vpop.permute.xlu0 %1710 }
 0x1f3   : > { %v1068_v14 = vpop.permute.xlu1 %1067  ;;  %v2100_v51 = vld [vmem:[#allocation3 + $0xc0] sm:$0xff]  ;;  %1797 = vst.msk [vmem:[#allocation3 + $0xe0] sm:$0xff] %vm1145_vm4, %v1711_v46 }
 0x1f4   : > { %1155 = vst.msk [vmem:[#allocation3 + $0xd8] sm:$0xff] %vm1145_vm4, %v1068_v14  ;;  %2416 = vmatmul.mubr.f32.gmra.mrb[16].mxu1 %v2100_v51  ;;  %1922 = vrot.lane.b32.xlu0 %v4873_v20, %s3939_s9 }
 0x1f5   : > { %1348 = vst.msk [vmem:[#allocation3 + $0xd8] sm:$0xff] %vm1338_vm5, %v1261_v44  ;;  %1284 = vrot.lane.b32.xlu1 %v4865_v16, %s3939_s9  ;;  %v5231_v58 = vpop.f32.mrb[34].mxu0  ;;  %v2793_v16 = vld [vmem:[%s5801_s5] sm:$0xff] }
 0x1f6   : > { %v5235_v53 = vpop.f32.mrb[35].mxu0  ;;  %v1903_v4 = vpop.permute.xlu0 %1902  ;;  %v3782_v22 = vpack.c.bf16 %v2794_v32, %v2793_v16 }
 0x1f7   : > { %v1265_v9 = vpop.permute.xlu1 %1264  ;;  %1989 = vst.msk [vmem:[#allocation3 + $0xe0] sm:$0xff] %vm1338_vm5, %v1903_v4 }
 0x1f8   : > { %1539 = vrot.lane.b32.xlu0 %v4857_v10, %s3938_s16  ;;  %3783 = vmatprep.subr.bf16.mxu0 %v3782_v22 }
 0x1f9   : > { %900 = vrot.lane.b32.xlu1 %v4867_v17, %s3938_s16  ;;  %v5241_v5 = vpop.f32.mrb[36].mxu0  ;;  %3785 = vmatpush3.bf16.msra.mxu0 %v3782_v22 }
 0x1fa   : > { %v5251_v44 = vpop.f32.mrb[37].mxu0  ;;  %v1520_v49 = vpop.permute.xlu0 %1519  ;;  %3787 = vmatprep.subr.bf16.mxu0 %v3786_v25 }
 0x1fb   : > { %v881_v0 = vpop.permute.xlu1 %880  ;;  %1605 = vst.msk [vmem:[#allocation3 + $0xf8] sm:$0xff] %vm952_vm3, %v1520_v49 }
 0x1fc   : > { %965 = vst.msk [vmem:[#allocation3 + $0x120] sm:$0xff] %vm952_vm3, %v881_v0  ;;  %1736 = vrot.lane.b32.xlu0 %v1650_v38, %s3937_s15  ;;  %v2103_v26 = vld [vmem:[#allocation3 + $0xd8] sm:$0xff] }
 0x1fd   : > { %1093 = vrot.lane.b32.xlu1 %v4853_v15, %s3937_s15  ;;  %v5257_v17 = vpop.f32.mrb[38].mxu0  ;;  %1798 = vst.msk [vmem:[#allocation3 + $0xf8] sm:$0xff] %vm1145_vm4, %v1713_v1  ;;  %3789 = vmatpush3.bf16.msra.mxu0 %v3786_v25 }
 0x1fe   : > { %v5267_v62 = vpop.f32.mrb[39].mxu0  ;;  %1990 = vst.msk [vmem:[#allocation3 + $0xf8] sm:$0xff] %vm1338_vm5, %v1905_v48  ;;  %v1717_v59 = vpop.permute.xlu0 %1716  ;;  %v2104_v3 = vld [vmem:[#allocation3 + $0xe0] sm:$0xff] }
 0x1ff   : > { %v1074_v15 = vpop.permute.xlu1 %1073  ;;  %2420 = vmatprep.mubr.f32.mxu1 %v2104_v3 }
 0x200   : > { %1158 = vst.msk [vmem:[#allocation3 + $0x120] sm:$0xff] %vm1145_vm4, %v1074_v15  ;;  %1928 = vrot.lane.b32.xlu0 %v4951_v7, %s3939_s9  ;;  %2421 = vmatmul.mubr.f32.gmra.mrb[18].mxu1 %v2103_v26 }
 0x201   : > { %1282 = vrot.lane.b32.xlu1 %v4869_v19, %s3939_s9  ;;  %v5273_v50 = vpop.f32.mrb[40].mxu0 }
 0x202   : > { %v5277_v1 = vpop.f32.mrb[41].mxu0  ;;  %v1909_v14 = vpop.permute.xlu0 %1908 }
 0x203   : > { %v1263_v48 = vpop.permute.xlu1 %1262 }
 0x204   : > { %1349 = vst.msk [vmem:[#allocation3 + $0xf0] sm:$0xff] %vm1338_vm5, %v1263_v48  ;;  %1545 = vrot.lane.b32.xlu0 %v4925_v35, %s3938_s16 }
 0x205   : > { %898 = vrot.lane.b32.xlu1 %v4873_v20, %s3938_s16  ;;  %v5282_v51 = vpop.f32.mrb[42].mxu0  ;;  %v2107_v19 = vld [vmem:[#allocation3 + $0xf8] sm:$0xff] }
 0x206   : > { %v5286_v46 = vpop.f32.mrb[43].mxu0  ;;  %2425 = vmatprep.mubr.f32.mxu1 %v2107_v19  ;;  %v1526_v28 = vpop.permute.xlu0 %1525 }
 0x207   : > { %v879_v7 = vpop.permute.xlu1 %878  ;;  %1608 = vst.msk [vmem:[#allocation3 + $0x140] sm:$0xff] %vm952_vm3, %v1526_v28 }
 0x208   : > { %964 = vst.msk [vmem:[#allocation3 + $0x108] sm:$0xff] %vm952_vm3, %v879_v7  ;;  %1734 = vrot.lane.b32.xlu0 %v4953_v27, %s3937_s15 }
 0x209   : > { %1091 = vrot.lane.b32.xlu1 %v4857_v10, %s3937_s15  ;;  %v5292_v4 = vpop.f32.mrb[44].mxu0 }
 0x20a   : > { %v5296_v20 = vpop.f32.mrb[45].mxu0  ;;  %v1715_v32 = vpop.permute.xlu0 %1714 }
 0x20b   : > { %v1072_v35 = vpop.permute.xlu1 %1071  ;;  %v2106_v16 = vld [vmem:[#allocation3 + $0xf0] sm:$0xff]  ;;  %1799 = vst.msk [vmem:[#allocation3 + $0x110] sm:$0xff] %vm1145_vm4, %v1715_v32 }
 0x20c   : > { %1157 = vst.msk [vmem:[#allocation3 + $0x108] sm:$0xff] %vm1145_vm4, %v1072_v35  ;;  %2426 = vmatmul.mubr.f32.gmra.mrb[20].mxu1 %v2106_v16  ;;  %1926 = vrot.lane.b32.xlu0 %v4959_v63, %s3939_s9 }
 0x20d   : > { %1350 = vst.msk [vmem:[#allocation3 + $0x108] sm:$0xff] %vm1338_vm5, %v1265_v9  ;;  %1288 = vrot.lane.b32.xlu1 %v1650_v38, %s3939_s9 }
 0x20e   : > { %v1907_v22 = vpop.permute.xlu0 %1906 }
 0x20f   : > { %v1269_v10 = vpop.permute.xlu1 %1268  ;;  %1991 = vst.msk [vmem:[#allocation3 + $0x110] sm:$0xff] %vm1338_vm5, %v1907_v22 }
 0x210   : > { %1543 = vrot.lane.b32.xlu0 %v4936_v56, %s3938_s16 }
 0x211   : > { %1286 = vrot.lane.b32.xlu1 %v4953_v27, %s3939_s9 }
 0x212   : > { %v1524_v49 = vpop.permute.xlu0 %1523 }
 0x213   : > { %v885_v0 = vpop.permute.xlu1 %884  ;;  %1607 = vst.msk [vmem:[#allocation3 + $0x128] sm:$0xff] %vm952_vm3, %v1524_v49 }
 0x214   : > { %967 = vst.msk [vmem:[#allocation3 + $0x150] sm:$0xff] %vm952_vm3, %v885_v0  ;;  %1740 = vrot.lane.b32.xlu0 %v5018_v36, %s3937_s15  ;;  %v2109_v40 = vld [vmem:[#allocation3 + $0x108] sm:$0xff] }
 0x215   : > { %902 = vrot.lane.b32.xlu1 %v4959_v63, %s3938_s16  ;;  %1800 = vst.msk [vmem:[#allocation3 + $0x128] sm:$0xff] %vm1145_vm4, %v1717_v59 }
 0x216   : > { %1992 = vst.msk [vmem:[#allocation3 + $0x128] sm:$0xff] %vm1338_vm5, %v1909_v14  ;;  %v1721_v9 = vpop.permute.xlu0 %1720  ;;  %v2110_v38 = vld [vmem:[#allocation3 + $0x110] sm:$0xff] }
 0x217   : > { %v1078_v27 = vpop.permute.xlu1 %1077  ;;  %2430 = vmatprep.mubr.f32.mxu1 %v2110_v38 }
 0x218   : > { %1160 = vst.msk [vmem:[#allocation3 + $0x150] sm:$0xff] %vm1145_vm4, %v1078_v27  ;;  %1932 = vrot.lane.b32.xlu0 %v5020_v47, %s3939_s9  ;;  %2431 = vmatmul.mubr.f32.gmra.mrb[22].mxu1 %v2109_v40 }
 0x219   : > { %1095 = vrot.lane.b32.xlu1 %v4936_v56, %s3937_s15  ;;  %v1459_v56 = vld [vmem:[#allocation2 + $0x1f2] sm:$0xff] }
 0x21a   : > { %v1913_v43 = vpop.permute.xlu0 %1912 }
 0x21b   : > { %v1267_v63 = vpop.permute.xlu1 %1266 }
 0x21c   : > { %1351 = vst.msk [vmem:[#allocation3 + $0x120] sm:$0xff] %vm1338_vm5, %v1267_v63  ;;  %1549 = vrot.lane.b32.xlu0 %v4941_v57, %s3938_s16 }
 0x21d   : > { %1292 = vrot.lane.b32.xlu1 %v5018_v36, %s3939_s9  ;;  %v2113_v25 = vld [vmem:[#allocation3 + $0x128] sm:$0xff] }
 0x21e   : > { %2435 = vmatprep.mubr.f32.mxu1 %v2113_v25  ;;  %v1530_v59 = vpop.permute.xlu0 %1529 }
 0x21f   : > { %v883_v15 = vpop.permute.xlu1 %882  ;;  %1610 = vst.msk [vmem:[#allocation3 + $0x170] sm:$0xff] %vm952_vm3, %v1530_v59 }
 0x220   : > { %966 = vst.msk [vmem:[#allocation3 + $0x138] sm:$0xff] %vm952_vm3, %v883_v15  ;;  %1547 = vrot.lane.b32.xlu0 %v1459_v56, %s3938_s16 }
 0x221   : > { %1290 = vrot.lane.b32.xlu1 %v5024_v37, %s3939_s9  ;;  %1803 = vst.msk [vmem:[#allocation3 + $0x170] sm:$0xff] %vm1145_vm4, %v4887_v18  ;;  %v5343_v18 = vpop.f32.mrb[46].mxu0 }
 0x222   : > { %1995 = vst.msk [vmem:[#allocation3 + $0x170] sm:$0xff] %vm1338_vm5, %v4902_v23  ;;  %v1719_v26 = vpop.permute.xlu0 %1718  ;;  %v5345_v23 = vpop.f32.mrb[47].mxu0 }
 0x223   : > { %v1076_v36 = vpop.permute.xlu1 %1075  ;;  %v2112_v3 = vld [vmem:[#allocation3 + $0x120] sm:$0xff]  ;;  %1801 = vst.msk [vmem:[#allocation3 + $0x140] sm:$0xff] %vm1145_vm4, %v1719_v26 }
 0x224   : > { %1159 = vst.msk [vmem:[#allocation3 + $0x138] sm:$0xff] %vm1145_vm4, %v1076_v36  ;;  %2436 = vmatmul.mubr.f32.gmra.mrb[24].mxu1 %v2112_v3  ;;  %1742 = vrot.lane.b32.xlu0 %v5058_v45, %s3937_s15 }
 0x225   : > { %1352 = vst.msk [vmem:[#allocation3 + $0x138] sm:$0xff] %vm1338_vm5, %v1269_v10  ;;  %906 = vrot.lane.b32.xlu1 %v5026_v13, %s3938_s16 }
 0x226   : > { %v1911_v48 = vpop.permute.xlu0 %1910  ;;  %v5347_v14 = vpop.f32.mrb[48].mxu0 }
 0x227   : > { %v1273_v37 = vpop.permute.xlu1 %1272  ;;  %1993 = vst.msk [vmem:[#allocation3 + $0x140] sm:$0xff] %vm1338_vm5, %v1911_v48  ;;  %v5351_v19 = vpop.f32.mrb[49].mxu0 }
 0x228   : > { %1934 = vrot.lane.b32.xlu0 %v5060_v39, %s3939_s9 }
 0x229   : > { %1099 = vrot.lane.b32.xlu1 %v1459_v56, %s3937_s15  ;;  %v2122_v27 = vld [vmem:[#allocation3 + $0x170] sm:$0xff] }
 0x22a   : > { %v1528_v7 = vpop.permute.xlu0 %1527 }
 0x22b   : > { %v1271_v13 = vpop.permute.xlu1 %1270  ;;  %1609 = vst.msk [vmem:[#allocation3 + $0x158] sm:$0xff] %vm952_vm3, %v1528_v7 }
 0x22c   : > { %1353 = vst.msk [vmem:[#allocation3 + $0x150] sm:$0xff] %vm1338_vm5, %v1271_v13  ;;  %1551 = vrot.lane.b32.xlu0 %v4967_v31, %s3938_s16  ;;  %v2115_v32 = vld [vmem:[#allocation3 + $0x138] sm:$0xff] }
 0x22d   : > { %908 = vrot.lane.b32.xlu1 %v5020_v47, %s3938_s16  ;;  %1802 = vst.msk [vmem:[#allocation3 + $0x158] sm:$0xff] %vm1145_vm4, %v1721_v9 }
 0x22e   : > { %1994 = vst.msk [vmem:[#allocation3 + $0x158] sm:$0xff] %vm1338_vm5, %v1913_v43  ;;  %v1725_v35 = vpop.permute.xlu0 %1724  ;;  %v2116_v16 = vld [vmem:[#allocation3 + $0x140] sm:$0xff] }
 0x22f   : > { %v887_v28 = vpop.permute.xlu1 %886  ;;  %2440 = vmatprep.mubr.f32.mxu1 %v2116_v16 }
 0x230   : > { %968 = vst.msk [vmem:[#allocation3 + $0x168] sm:$0xff] %vm952_vm3, %v887_v28  ;;  %1744 = vrot.lane.b32.xlu0 %v5065_v55, %s3937_s15  ;;  %2441 = vmatmul.mubr.f32.gmra.mrb[26].mxu1 %v2115_v32 }
 0x231   : > { %1101 = vrot.lane.b32.xlu1 %v4941_v57, %s3937_s15 }
 0x232   : > { %v1917_v10 = vpop.permute.xlu0 %1916 }
 0x233   : > { %v1080_v47 = vpop.permute.xlu1 %1079  ;;  %v2118_v0 = vld [vmem:[#allocation3 + $0x150] sm:$0xff] }
 0x234   : > { %1161 = vst.msk [vmem:[#allocation3 + $0x168] sm:$0xff] %vm1145_vm4, %v1080_v47  ;;  %1936 = vrot.lane.b32.xlu0 %v5067_v12, %s3939_s9  ;;  %v1658_v47 = vld [vmem:[#allocation2 + $0x260] sm:$0xff] }
 0x235   : > { %1354 = vst.msk [vmem:[#allocation3 + $0x168] sm:$0xff] %vm1338_vm5, %v1273_v37  ;;  %1294 = vrot.lane.b32.xlu1 %v5058_v45, %s3939_s9  ;;  %v2119_v22 = vld [vmem:[#allocation3 + $0x158] sm:$0xff] }
 0x236   : > { %2445 = vmatprep.mubr.f32.mxu1 %v2119_v22  ;;  %v1534_v49 = vpop.permute.xlu0 %1533 }
 0x237   : > { %v1277_v57 = vpop.permute.xlu1 %1276  ;;  %2446 = vmatmul.mubr.f32.gmra.mrb[28].mxu1 %v2118_v0  ;;  %1612 = vst.msk [vmem:[#allocation3 + $0x1a0] sm:$0xff] %vm952_vm3, %v1534_v49  ;;  %v1659_v49 = vld [vmem:[#allocation2 + $0x270] sm:$0xff] }
 0x238   : > { %2450 = vmatprep.mubr.f32.mxu1 %v2122_v27  ;;  %1553 = vrot.lane.b32.xlu0 %v4957_v8, %s3938_s16  ;;  %v5388_v63 = vpop.f32.mrb[50].mxu0 }
 0x239   : > { %910 = vrot.lane.b32.xlu1 %v5060_v39, %s3938_s16  ;;  %v5392_v43 = vpop.f32.mrb[51].mxu0 }
 0x23a   : > { %v1532_v9 = vpop.permute.xlu0 %1531 }
 0x23b   : > { %v893_v45 = vpop.permute.xlu1 %892  ;;  %1611 = vst.msk [vmem:[#allocation3 + $0x188] sm:$0xff] %vm952_vm3, %v1532_v9 }
 0x23c   : > { %971 = vst.msk [vmem:[#allocation3 + $0x1b0] sm:$0xff] %vm952_vm3, %v893_v45  ;;  %v2121_v38 = vld [vmem:[#allocation3 + $0x168] sm:$0xff]  ;;  %1746 = vrot.lane.b32.xlu0 %v5108_v42, %s3937_s15 }
 0x23d   : > { %1103 = vrot.lane.b32.xlu1 %v4967_v31, %s3937_s15  ;;  %2451 = vmatmul.mubr.f32.gmra.mrb[30].mxu1 %v2121_v38  ;;  %1804 = vst.msk [vmem:[#allocation3 + $0x188] sm:$0xff] %vm1145_vm4, %v1725_v35 }
 0x23e   : > { %1996 = vst.msk [vmem:[#allocation3 + $0x188] sm:$0xff] %vm1338_vm5, %v1917_v10  ;;  %v1729_v40 = vpop.permute.xlu0 %1728 }
 0x23f   : > { %v1086_v39 = vpop.permute.xlu1 %1085 }
 0x240   : > { %1164 = vst.msk [vmem:[#allocation3 + $0x1b0] sm:$0xff] %vm1145_vm4, %v1086_v39  ;;  %1938 = vrot.lane.b32.xlu0 %v5110_v34, %s3939_s9 }
 0x241   : > { %1296 = vrot.lane.b32.xlu1 %v5065_v55, %s3939_s9 }
 0x242   : > { %v1921_v25 = vpop.permute.xlu0 %1920 }
 0x243   : > { %v1275_v31 = vpop.permute.xlu1 %1274 }
 0x244   : > { %1355 = vst.msk [vmem:[#allocation3 + $0x180] sm:$0xff] %vm1338_vm5, %v1275_v31  ;;  %1555 = vrot.lane.b32.xlu0 %v4979_v21, %s3938_s16 }
 0x245   : > { %912 = vrot.lane.b32.xlu1 %v5067_v12, %s3938_s16  ;;  %v2125_v15 = vld [vmem:[#allocation3 + $0x188] sm:$0xff] }
 0x246   : > { %2455 = vmatprep.mubr.f32.mxu1 %v2125_v15  ;;  %v1538_v56 = vpop.permute.xlu0 %1537 }
 0x247   : > { %v891_v59 = vpop.permute.xlu1 %890  ;;  %1614 = vst.msk [vmem:[#allocation3 + $0x1d0] sm:$0xff] %vm952_vm3, %v1538_v56 }
 0x248   : > { %970 = vst.msk [vmem:[#allocation3 + $0x198] sm:$0xff] %vm952_vm3, %v891_v59  ;;  %1748 = vrot.lane.b32.xlu0 %v5115_v52, %s3937_s15  ;;  %v2043_v59 = vld [vmem:[#allocation2 + $0x272] sm:$0xff] }
 0x249   : > { %1105 = vrot.lane.b32.xlu1 %v4957_v8, %s3937_s15  ;;  %2075 = vst.msk [vmem:[#allocation3 + $0x2f8] sm:$0xff] %vm595_vm0, %v2043_v59 }
 0x24a   : > { %v1727_v12 = vpop.permute.xlu0 %1726 }
 0x24b   : > { %v1084_v55 = vpop.permute.xlu1 %1083  ;;  %v2124_v36 = vld [vmem:[#allocation3 + $0x180] sm:$0xff]  ;;  %1805 = vst.msk [vmem:[#allocation3 + $0x1a0] sm:$0xff] %vm1145_vm4, %v1727_v12 }
 0x24c   : > { %1163 = vst.msk [vmem:[#allocation3 + $0x198] sm:$0xff] %vm1145_vm4, %v1084_v55  ;;  %2456 = vmatmul.mubr.f32.gmra.mrb[32].mxu1 %v2124_v36  ;;  %1940 = vrot.lane.b32.xlu0 %v5117_v33, %s3939_s9 }
 0x24d   : > { %1356 = vst.msk [vmem:[#allocation3 + $0x198] sm:$0xff] %vm1338_vm5, %v1277_v57  ;;  %1298 = vrot.lane.b32.xlu1 %v5108_v42, %s3939_s9 }
 0x24e   : > { %v1919_v3 = vpop.permute.xlu0 %1918 }
 0x24f   : > { %v1281_v8 = vpop.permute.xlu1 %1280  ;;  %1997 = vst.msk [vmem:[#allocation3 + $0x1a0] sm:$0xff] %vm1338_vm5, %v1919_v3 }
 0x250   : > { %1557 = vrot.lane.b32.xlu0 %v4973_v2, %s3938_s16 }
 0x251   : > { %914 = vrot.lane.b32.xlu1 %v5110_v34, %s3938_s16 }
 0x252   : > { %v1536_v37 = vpop.permute.xlu0 %1535 }
 0x253   : > { %v897_v26 = vpop.permute.xlu1 %896  ;;  %1613 = vst.msk [vmem:[#allocation3 + $0x1b8] sm:$0xff] %vm952_vm3, %v1536_v37 }
 0x254   : > { %973 = vst.msk [vmem:[#allocation3 + $0x1e0] sm:$0xff] %vm952_vm3, %v897_v26  ;;  %1750 = vrot.lane.b32.xlu0 %v5163_v61, %s3937_s15  ;;  %v2127_v7 = vld [vmem:[#allocation3 + $0x198] sm:$0xff] }
 0x255   : > { %1107 = vrot.lane.b32.xlu1 %v4979_v21, %s3937_s15  ;;  %1806 = vst.msk [vmem:[#allocation3 + $0x1b8] sm:$0xff] %vm1145_vm4, %v1729_v40  ;;  %v5428_v13 = vpop.f32.mrb[52].mxu0 }
 0x256   : > { %1998 = vst.msk [vmem:[#allocation3 + $0x1b8] sm:$0xff] %vm1338_vm5, %v1921_v25  ;;  %v1733_v34 = vpop.permute.xlu0 %1732  ;;  %v2128_v48 = vld [vmem:[#allocation3 + $0x1a0] sm:$0xff]  ;;  %v5432_v21 = vpop.f32.mrb[53].mxu0 }
 0x257   : > { %v1090_v42 = vpop.permute.xlu1 %1089  ;;  %2460 = vmatprep.mubr.f32.mxu1 %v2128_v48 }
 0x258   : > { %1166 = vst.msk [vmem:[#allocation3 + $0x1e0] sm:$0xff] %vm1145_vm4, %v1090_v42  ;;  %1942 = vrot.lane.b32.xlu0 %v5165_v24, %s3939_s9  ;;  %2461 = vmatmul.mubr.f32.gmra.mrb[34].mxu1 %v2127_v7 }
 0x259   : > { %1300 = vrot.lane.b32.xlu1 %v5115_v52, %s3939_s9 }
 0x25a   : > { %v1925_v35 = vpop.permute.xlu0 %1924 }
 0x25b   : > { %v1279_v28 = vpop.permute.xlu1 %1278 }
 0x25c   : > { %1357 = vst.msk [vmem:[#allocation3 + $0x1b0] sm:$0xff] %vm1338_vm5, %v1279_v28  ;;  %1559 = vrot.lane.b32.xlu0 %v4988_v11, %s3938_s16 }
 0x25d   : > { %916 = vrot.lane.b32.xlu1 %v5117_v33, %s3938_s16  ;;  %v2131_v16 = vld [vmem:[#allocation3 + $0x1b8] sm:$0xff] }
 0x25e   : > { %2465 = vmatprep.mubr.f32.mxu1 %v2131_v16  ;;  %v1542_v32 = vpop.permute.xlu0 %1541 }
 0x25f   : > { %v895_v52 = vpop.permute.xlu1 %894  ;;  %1616 = vst.msk [vmem:[#allocation3 + $0x200] sm:$0xff] %vm952_vm3, %v1542_v32 }
 0x260   : > { %972 = vst.msk [vmem:[#allocation3 + $0x1c8] sm:$0xff] %vm952_vm3, %v895_v52  ;;  %1752 = vrot.lane.b32.xlu0 %v1658_v47, %s3937_s15 }
 0x261   : > { %1109 = vrot.lane.b32.xlu1 %v4973_v2, %s3937_s15 }
 0x262   : > { %v1731_v33 = vpop.permute.xlu0 %1730 }
 0x263   : > { %v1088_v10 = vpop.permute.xlu1 %1087  ;;  %v2130_v22 = vld [vmem:[#allocation3 + $0x1b0] sm:$0xff]  ;;  %1807 = vst.msk [vmem:[#allocation3 + $0x1d0] sm:$0xff] %vm1145_vm4, %v1731_v33 }
 0x264   : > { %1165 = vst.msk [vmem:[#allocation3 + $0x1c8] sm:$0xff] %vm1145_vm4, %v1088_v10  ;;  %2466 = vmatmul.mubr.f32.gmra.mrb[36].mxu1 %v2130_v22  ;;  %1944 = vrot.lane.b32.xlu0 %v5170_v54, %s3939_s9  ;;  %v1851_v54 = vld [vmem:[#allocation2 + $0x271] sm:$0xff] }
 0x265   : > { %1358 = vst.msk [vmem:[#allocation3 + $0x1c8] sm:$0xff] %vm1338_vm5, %v1281_v8  ;;  %1302 = vrot.lane.b32.xlu1 %v5163_v61, %s3939_s9  ;;  %v5465_v61 = vld [vmem:[%s5800_s4] ss:$0 sm:$0xff] }
 0x266   : > { %v1923_v2 = vpop.permute.xlu0 %1922 }
 0x267   : > { %v1285_v57 = vpop.permute.xlu1 %1284  ;;  %1999 = vst.msk [vmem:[#allocation3 + $0x1d0] sm:$0xff] %vm1338_vm5, %v1923_v2 }
 0x268   : > { %1561 = vrot.lane.b32.xlu0 %v4984_v41, %s3938_s16 }
 0x269   : > { %918 = vrot.lane.b32.xlu1 %v5165_v24, %s3938_s16 }
 0x26a   : > { %v1540_v27 = vpop.permute.xlu0 %1539 }
 0x26b   : > { %v901_v0 = vpop.permute.xlu1 %900  ;;  %1615 = vst.msk [vmem:[#allocation3 + $0x1e8] sm:$0xff] %vm952_vm3, %v1540_v27 }
 0x26c   : > { %975 = vst.msk [vmem:[#allocation3 + $0x210] sm:$0xff] %vm952_vm3, %v901_v0  ;;  %1754 = vrot.lane.b32.xlu0 %v1659_v49, %s3937_s15  ;;  %v2133_v39 = vld [vmem:[#allocation3 + $0x1c8] sm:$0xff] }
 0x26d   : > { %1111 = vrot.lane.b32.xlu1 %v4988_v11, %s3937_s15  ;;  %1808 = vst.msk [vmem:[#allocation3 + $0x1e8] sm:$0xff] %vm1145_vm4, %v1733_v34  ;;  %s272_s15 = sand.u32 1, %s3926_s25  }
 0x26e   : > { %2000 = vst.msk [vmem:[#allocation3 + $0x1e8] sm:$0xff] %vm1338_vm5, %v1925_v35  ;;  %v1737_v45 = vpop.permute.xlu0 %1736  ;;  %v2134_v38 = vld [vmem:[#allocation3 + $0x1d0] sm:$0xff]  ;;  %s3302_s20 = sshll.u32 %s272_s15, 8  ;;  %s5755_s28 = scalar_lea.sflag [#allocation5], %s272_s15 }
 0x26f   : > { %v2377_v41 = vpop.f32.mrb[0].mxu1  ;;  %v1094_v24 = vpop.permute.xlu1 %1093  ;;  %2470 = vmatprep.mubr.f32.mxu1 %v2134_v38  ;;  %s5625_s19 = scalar_lea.vmem [#allocation4], %s3302_s20 }
 0x270   : > { %v2378_v9 = vadd.f32 %v5465_v61, %v2377_v41  ;;  %1168 = vst.msk [vmem:[#allocation3 + $0x210] sm:$0xff] %vm1145_vm4, %v1094_v24  ;;  %v2379_v11 = vpop.f32.mrb[1].mxu1  ;;  %1946 = vrot.lane.b32.xlu0 %v1851_v54, %s3939_s9  ;;  %2471 = vmatmul.mubr.f32.gmra.mrb[38].mxu1 %v2133_v39  ;;  %s3236_s23 = sshll.u32 %s5625_s19, 4  ;;  %s5749_s23 = int_to_ptr.vmem [resolvable:$true] %s3236_s23 }
 0x271   : > { %1304 = vrot.lane.b32.xlu1 %v1658_v47, %s3939_s9  ;;  %s3872_s14 = scalar_lea.vmem %s5749_s23, 4096 }
 0x272   : > { %v2603_v40 = vadd.f32 %v5224_v60, %v2378_v9  ;;  %v1929_v15 = vpop.permute.xlu0 %1928  ;;  %p3873_p11 = scmp.ne.s32.totalorder %s5749_s23, %s3872_s14 }
 0x273   : > { %v1283_v31 = vpop.permute.xlu1 %1282 }
 0x274   : > { %v2761_v25 = vmax.f32 %v2603_v40, 0.0  ;;  %1359 = vst.msk [vmem:[#allocation3 + $0x1e0] sm:$0xff] %vm1338_vm5, %v1283_v31  ;;  %p3874_p12 = pnand %p3873_p11, %p4022_p5 }
 0x275   : > { %v2137_v56 = vld [vmem:[#allocation3 + $0x1e8] sm:$0xff] }
 0x276   : > { %3646 = vmatprep.mubr.msk.f32.mxu0 %vm595_vm0, %v2761_v25  ;;  %2475 = vmatprep.mubr.f32.mxu1 %v2137_v56  ;;  %v1546_v36 = vpop.permute.xlu0 %1545  ;;  %p3875_p13 = pneg %p3874_p12 }
 0x277   : > { %v899_v55 = vpop.permute.xlu1 %898  ;;  %1618 = vst.msk [vmem:[#allocation3 + $0x230] sm:$0xff] %vm952_vm3, %v1546_v36 }
 0x278   : > { %974 = vst.msk [vmem:[#allocation3 + $0x1f8] sm:$0xff] %vm952_vm3, %v899_v55 }
 0x279   : > { %1811 = vst.msk [vmem:[#allocation3 + $0x230] sm:$0xff] %vm1145_vm4, %v4921_v29 }
 0x27a   : > { %2003 = vst.msk [vmem:[#allocation3 + $0x230] sm:$0xff] %vm1338_vm5, %v4949_v30  ;;  %v1735_v8 = vpop.permute.xlu0 %1734 }
 0x27b   : > { %v1092_v60 = vpop.permute.xlu1 %1091  ;;  %v2136_v12 = vld [vmem:[#allocation3 + $0x1e0] sm:$0xff]  ;;  %1809 = vst.msk [vmem:[#allocation3 + $0x200] sm:$0xff] %vm1145_vm4, %v1735_v8  ;;  %v2382_v3 = vpop.f32.mrb[2].mxu1 }
 0x27c   : > { %1167 = vst.msk [vmem:[#allocation3 + $0x1f8] sm:$0xff] %vm1145_vm4, %v1092_v60  ;;  %2476 = vmatmul.mubr.f32.gmra.mrb[40].mxu1 %v2136_v12  ;;  %v2383_v26 = vadd.f32 %v5465_v61, %v2382_v3  ;;  %v2384_v37 = vpop.f32.mrb[3].mxu1 }
 0x27d   : > { %1360 = vst.msk [vmem:[#allocation3 + $0x1f8] sm:$0xff] %vm1338_vm5, %v1285_v57 }
 0x27e   : > { %v2608_v29 = vadd.f32 %v5220_v6, %v2383_v26  ;;  %v1927_v34 = vpop.permute.xlu0 %1926 }
 0x27f   : > { %v1289_v42 = vpop.permute.xlu1 %1288  ;;  %2001 = vst.msk [vmem:[#allocation3 + $0x200] sm:$0xff] %vm1338_vm5, %v1927_v34 }
 0x280   : > { %v2762_v30 = vmax.f32 %v2608_v29, 0.0 }
 0x281   : > { %v2146_v41 = vld [vmem:[#allocation3 + $0x230] sm:$0xff] }
 0x282   : > { %v1544_v7 = vpop.permute.xlu0 %1543  ;;  %3647 = vmatmul.mubr.msk.f32.vlgmr.msra.gmra.mrb[56].mxu0 %vm595_vm0, %v2762_v30 }
 0x283   : > { %v1287_v48 = vpop.permute.xlu1 %1286  ;;  %1617 = vst.msk [vmem:[#allocation3 + $0x218] sm:$0xff] %vm952_vm3, %v1544_v7 }
 0x284   : > { %1361 = vst.msk [vmem:[#allocation3 + $0x210] sm:$0xff] %vm1338_vm5, %v1287_v48  ;;  %v2139_v47 = vld [vmem:[#allocation3 + $0x1f8] sm:$0xff] }
 0x285   : > { %1810 = vst.msk [vmem:[#allocation3 + $0x218] sm:$0xff] %vm1145_vm4, %v1737_v45 }
 0x286   : > { %2002 = vst.msk [vmem:[#allocation3 + $0x218] sm:$0xff] %vm1338_vm5, %v1929_v15  ;;  %v1741_v16 = vpop.permute.xlu0 %1740  ;;  %v2140_v32 = vld [vmem:[#allocation3 + $0x200] sm:$0xff] }
 0x287   : > { %v903_v28 = vpop.permute.xlu1 %902  ;;  %v2387_v35 = vpop.f32.mrb[4].mxu1  ;;  %2480 = vmatprep.mubr.f32.mxu1 %v2140_v32 }
 0x288   : > { %976 = vst.msk [vmem:[#allocation3 + $0x228] sm:$0xff] %vm952_vm3, %v903_v28  ;;  %v2388_v6 = vadd.f32 %v5465_v61, %v2387_v35  ;;  %v2389_v52 = vpop.f32.mrb[5].mxu1  ;;  %2481 = vmatmul.mubr.f32.gmra.mrb[42].mxu1 %v2139_v47 }
 0x28a   : > { %v2613_v10 = vadd.f32 %v5235_v53, %v2388_v6  ;;  %v1933_v57 = vpop.permute.xlu0 %1932 }
 0x28b   : > { %v1096_v22 = vpop.permute.xlu1 %1095  ;;  %v2142_v49 = vld [vmem:[#allocation3 + $0x210] sm:$0xff] }
 0x28c   : > { %v2763_v33 = vmax.f32 %v2613_v10, 0.0  ;;  %1169 = vst.msk [vmem:[#allocation3 + $0x228] sm:$0xff] %vm1145_vm4, %v1096_v22 }
 0x28d   : > { %1362 = vst.msk [vmem:[#allocation3 + $0x228] sm:$0xff] %vm1338_vm5, %v1289_v42  ;;  %v2143_v2 = vld [vmem:[#allocation3 + $0x218] sm:$0xff] }
 0x28e   : > { %3649 = vmatprep.mubr.msk.f32.mxu0 %vm595_vm0, %v2763_v33  ;;  %2485 = vmatprep.mubr.f32.mxu1 %v2143_v2  ;;  %v1550_v27 = vpop.permute.xlu0 %1549 }
 0x28f   : > { %v1293_v0 = vpop.permute.xlu1 %1292  ;;  %2486 = vmatmul.mubr.f32.gmra.mrb[44].mxu1 %v2142_v49  ;;  %1620 = vst.msk [vmem:[#allocation3 + $0x260] sm:$0xff] %vm952_vm3, %v1550_v27 }
 0x290   : > { %2490 = vmatprep.mubr.f32.mxu1 %v2146_v41 }
 0x292   : > { %v1548_v24 = vpop.permute.xlu0 %1547 }
 0x293   : > { %v1291_v53 = vpop.permute.xlu1 %1290  ;;  %1619 = vst.msk [vmem:[#allocation3 + $0x248] sm:$0xff] %vm952_vm3, %v1548_v24  ;;  %v2392_v45 = vpop.f32.mrb[6].mxu1 }
 0x294   : > { %1363 = vst.msk [vmem:[#allocation3 + $0x240] sm:$0xff] %vm1338_vm5, %v1291_v53  ;;  %v2145_v54 = vld [vmem:[#allocation3 + $0x228] sm:$0xff]  ;;  %v2393_v9 = vadd.f32 %v5465_v61, %v2392_v45  ;;  %v2394_v11 = vpop.f32.mrb[7].mxu1 }
 0x295   : > { %2491 = vmatmul.mubr.f32.gmra.mrb[46].mxu1 %v2145_v54  ;;  %1812 = vst.msk [vmem:[#allocation3 + $0x248] sm:$0xff] %vm1145_vm4, %v1741_v16 }
 0x296   : > { %2004 = vst.msk [vmem:[#allocation3 + $0x248] sm:$0xff] %vm1338_vm5, %v1933_v57  ;;  %v2618_v39 = vadd.f32 %v5231_v58, %v2393_v9  ;;  %v1743_v40 = vpop.permute.xlu0 %1742 }
 0x297   : > { %v907_v38 = vpop.permute.xlu1 %906  ;;  %1813 = vst.msk [vmem:[#allocation3 + $0x260] sm:$0xff] %vm1145_vm4, %v1743_v40 }
 0x298   : > { %978 = vst.msk [vmem:[#allocation3 + $0x258] sm:$0xff] %vm952_vm3, %v907_v38  ;;  %v2764_v31 = vmax.f32 %v2618_v39, 0.0 }
 0x29a   : > { %v1935_v15 = vpop.permute.xlu0 %1934  ;;  %3650 = vmatmul.mubr.msk.f32.gmra.mrb[58].mxu0 %vm595_vm0, %v2764_v31 }
 0x29b   : > { %v1100_v25 = vpop.permute.xlu1 %1099  ;;  %2005 = vst.msk [vmem:[#allocation3 + $0x260] sm:$0xff] %vm1338_vm5, %v1935_v15  ;;  %v2148_v55 = vld [vmem:[#allocation3 + $0x240] sm:$0xff] }
 0x29c   : > { %1171 = vst.msk [vmem:[#allocation3 + $0x258] sm:$0xff] %vm1145_vm4, %v1100_v25 }
 0x29d   : > { %1364 = vst.msk [vmem:[#allocation3 + $0x258] sm:$0xff] %vm1338_vm5, %v1293_v0  ;;  %v2149_v59 = vld [vmem:[#allocation3 + $0x248] sm:$0xff] }
 0x29e   : > { %2495 = vmatprep.mubr.f32.mxu1 %v2149_v59  ;;  %v1552_v36 = vpop.permute.xlu0 %1551 }
 0x29f   : > { %v909_v56 = vpop.permute.xlu1 %908  ;;  %v2397_v58 = vpop.f32.mrb[8].mxu1  ;;  %2496 = vmatmul.mubr.f32.gmra.mrb[48].mxu1 %v2148_v55  ;;  %1621 = vst.msk [vmem:[#allocation3 + $0x278] sm:$0xff] %vm952_vm3, %v1552_v36 }
 0x2a0   : > { %979 = vst.msk [vmem:[#allocation3 + $0x270] sm:$0xff] %vm952_vm3, %v909_v56  ;;  %v2398_v60 = vadd.f32 %v5465_v61, %v2397_v58  ;;  %v2399_v12 = vpop.f32.mrb[9].mxu1 }
 0x2a2   : > { %v2623_v8 = vadd.f32 %v5251_v44, %v2398_v60  ;;  %v1745_v37 = vpop.permute.xlu0 %1744  ;;  %v2152_v42 = vld [vmem:[#allocation3 + $0x260] sm:$0xff] }
 0x2a3   : > { %v1102_v3 = vpop.permute.xlu1 %1101  ;;  %1814 = vst.msk [vmem:[#allocation3 + $0x278] sm:$0xff] %vm1145_vm4, %v1745_v37  ;;  %2500 = vmatprep.mubr.f32.mxu1 %v2152_v42 }
 0x2a4   : > { %v2765_v26 = vmax.f32 %v2623_v8, 0.0  ;;  %1172 = vst.msk [vmem:[#allocation3 + $0x270] sm:$0xff] %vm1145_vm4, %v1102_v3  ;;  %v2151_v29 = vld [vmem:[#allocation3 + $0x258] sm:$0xff] }
 0x2a5   : > { %2501 = vmatmul.mubr.f32.gmra.mrb[50].mxu1 %v2151_v29 }
 0x2a6   : > { %3652 = vmatprep.mubr.msk.f32.mxu0 %vm595_vm0, %v2765_v26  ;;  %v1937_v30 = vpop.permute.xlu0 %1936 }
 0x2a7   : > { %v1295_v34 = vpop.permute.xlu1 %1294  ;;  %2006 = vst.msk [vmem:[#allocation3 + $0x278] sm:$0xff] %vm1338_vm5, %v1937_v30 }
 0x2a8   : > { %1365 = vst.msk [vmem:[#allocation3 + $0x270] sm:$0xff] %vm1338_vm5, %v1295_v34 }
 0x2aa   : > { %v1554_v48 = vpop.permute.xlu0 %1553 }
 0x2ab   : > { %v911_v44 = vpop.permute.xlu1 %910  ;;  %1622 = vst.msk [vmem:[#allocation3 + $0x290] sm:$0xff] %vm952_vm3, %v1554_v48  ;;  %v2402_v7 = vpop.f32.mrb[10].mxu1 }
 0x2ac   : > { %980 = vst.msk [vmem:[#allocation3 + $0x288] sm:$0xff] %vm952_vm3, %v911_v44  ;;  %v2403_v28 = vadd.f32 %v5465_v61, %v2402_v7  ;;  %v2404_v35 = vpop.f32.mrb[11].mxu1 }
 0x2ae   : > { %v2628_v52 = vadd.f32 %v5241_v5, %v2403_v28  ;;  %v1747_v32 = vpop.permute.xlu0 %1746  ;;  %v2155_v47 = vld [vmem:[#allocation3 + $0x278] sm:$0xff] }
 0x2af   : > { %v1104_v16 = vpop.permute.xlu1 %1103  ;;  %v2154_v6 = vld [vmem:[#allocation3 + $0x270] sm:$0xff]  ;;  %1815 = vst.msk [vmem:[#allocation3 + $0x290] sm:$0xff] %vm1145_vm4, %v1747_v32  ;;  %2505 = vmatprep.mubr.f32.mxu1 %v2155_v47 }
 0x2b0   : > { %1173 = vst.msk [vmem:[#allocation3 + $0x288] sm:$0xff] %vm1145_vm4, %v1104_v16  ;;  %v2766_v10 = vmax.f32 %v2628_v52, 0.0  ;;  %2506 = vmatmul.mubr.f32.gmra.mrb[52].mxu1 %v2154_v6 }
 0x2b2   : > { %v2407_v22 = vpop.f32.mrb[12].mxu1  ;;  %v1939_v2 = vpop.permute.xlu0 %1938  ;;  %3653 = vmatmul.mubr.msk.f32.gmra.mrb[60].mxu0 %vm595_vm0, %v2766_v10 }
 0x2b3   : > { %v1297_v33 = vpop.permute.xlu1 %1296  ;;  %v2408_v57 = vadd.f32 %v5465_v61, %v2407_v22  ;;  %v2409_v0 = vpop.f32.mrb[13].mxu1  ;;  %2007 = vst.msk [vmem:[#allocation3 + $0x290] sm:$0xff] %vm1338_vm5, %v1939_v2 }
 0x2b4   : > { %1366 = vst.msk [vmem:[#allocation3 + $0x288] sm:$0xff] %vm1338_vm5, %v1297_v33 }
 0x2b5   : > { %v2633_v5 = vadd.f32 %v5267_v62, %v2408_v57 }
 0x2b6   : > { %v1556_v41 = vpop.permute.xlu0 %1555 }
 0x2b7   : > { %v913_v49 = vpop.permute.xlu1 %912  ;;  %v2767_v27 = vmax.f32 %v2633_v5, 0.0  ;;  %1623 = vst.msk [vmem:[#allocation3 + $0x2a8] sm:$0xff] %vm952_vm3, %v1556_v41 }
 0x2b8   : > { %981 = vst.msk [vmem:[#allocation3 + $0x2a0] sm:$0xff] %vm952_vm3, %v913_v49  ;;  %v2412_v53 = vpop.f32.mrb[14].mxu1 }
 0x2b9   : > { %v2413_v24 = vadd.f32 %v5465_v61, %v2412_v53  ;;  %v2414_v54 = vpop.f32.mrb[15].mxu1  ;;  %3655 = vmatprep.mubr.msk.f32.mxu0 %vm595_vm0, %v2767_v27  ;;  %v5556_v44 = vpop.f32.mrb[54].mxu0 }
 0x2ba   : > { %v1749_v38 = vpop.permute.xlu0 %1748  ;;  %v2158_v62 = vld [vmem:[#allocation3 + $0x290] sm:$0xff]  ;;  %v5559_v7 = vpop.f32.mrb[55].mxu0 }
 0x2bb   : > { %v2638_v45 = vadd.f32 %v5257_v17, %v2413_v24  ;;  %v1106_v9 = vpop.permute.xlu1 %1105  ;;  %v2157_v11 = vld [vmem:[#allocation3 + $0x288] sm:$0xff]  ;;  %1816 = vst.msk [vmem:[#allocation3 + $0x2a8] sm:$0xff] %vm1145_vm4, %v1749_v38  ;;  %2510 = vmatprep.mubr.f32.mxu1 %v2158_v62  ;;  %v2150_v38 = vld [vmem:[#allocation3 + $0x250] sm:$0xff] }
 0x2bc   : > { %1174 = vst.msk [vmem:[#allocation3 + $0x2a0] sm:$0xff] %vm1145_vm4, %v1106_v9  ;;  %2511 = vmatmul.mubr.f32.gmra.mrb[54].mxu1 %v2157_v11  ;;  %v2153_v62 = vld [vmem:[#allocation3 + $0x268] sm:$0xff] }
 0x2bd   : > { %v2768_v39 = vmax.f32 %v2638_v45, 0.0 }
 0x2be   : > { %v1941_v31 = vpop.permute.xlu0 %1940 }
 0x2bf   : > { %v1299_v40 = vpop.permute.xlu1 %1298  ;;  %3656 = vmatmul.mubr.msk.f32.gmra.mrb[62].mxu0 %vm595_vm0, %v2768_v39  ;;  %2008 = vst.msk [vmem:[#allocation3 + $0x2a8] sm:$0xff] %vm1338_vm5, %v1941_v31  ;;  %v2159_v31 = vld [vmem:[#allocation3 + $0x298] sm:$0xff] }
 0x2c0   : > { %1367 = vst.msk [vmem:[#allocation3 + $0x2a0] sm:$0xff] %vm1338_vm5, %v1299_v40  ;;  %v2156_v40 = vld [vmem:[#allocation3 + $0x280] sm:$0xff] }
 0x2c2   : > { %v1558_v25 = vpop.permute.xlu0 %1557 }
 0x2c3   : > { %v915_v17 = vpop.permute.xlu1 %914  ;;  %1624 = vst.msk [vmem:[#allocation3 + $0x2c0] sm:$0xff] %vm952_vm3, %v1558_v25 }
 0x2c4   : > { %982 = vst.msk [vmem:[#allocation3 + $0x2b8] sm:$0xff] %vm952_vm3, %v915_v17  ;;  %v2162_v17 = vld [vmem:[#allocation3 + $0x2b0] sm:$0xff] }
 0x2c6   : > { %v1751_v58 = vpop.permute.xlu0 %1750  ;;  %v2161_v60 = vld [vmem:[#allocation3 + $0x2a8] sm:$0xff] }
 0x2c7   : > { %v1108_v15 = vpop.permute.xlu1 %1107  ;;  %v2417_v59 = vpop.f32.mrb[16].mxu1  ;;  %v2160_v56 = vld [vmem:[#allocation3 + $0x2a0] sm:$0xff]  ;;  %1817 = vst.msk [vmem:[#allocation3 + $0x2c0] sm:$0xff] %vm1145_vm4, %v1751_v58  ;;  %2515 = vmatprep.mubr.f32.mxu1 %v2161_v60 }
 0x2c8   : > { %1175 = vst.msk [vmem:[#allocation3 + $0x2b8] sm:$0xff] %vm1145_vm4, %v1108_v15  ;;  %v2418_v55 = vadd.f32 %v5465_v61, %v2417_v59  ;;  %v2419_v36 = vpop.f32.mrb[17].mxu1  ;;  %2516 = vmatmul.mubr.f32.gmra.mrb[56].mxu1 %v2160_v56  ;;  %v2168_v58 = vld [vmem:[#allocation3 + $0x2e0] sm:$0xff] }
 0x2ca   : > { %v2643_v12 = vadd.f32 %v5277_v1, %v2418_v55  ;;  %v1943_v26 = vpop.permute.xlu0 %1942  ;;  %v2171_v55 = vld [vmem:[#allocation3 + $0x2f8] sm:$0xff] }
 0x2cb   : > { %v1301_v8 = vpop.permute.xlu1 %1300  ;;  %2009 = vst.msk [vmem:[#allocation3 + $0x2c0] sm:$0xff] %vm1338_vm5, %v1943_v26 }
 0x2cc   : > { %v2769_v3 = vmax.f32 %v2643_v12, 0.0  ;;  %1368 = vst.msk [vmem:[#allocation3 + $0x2b8] sm:$0xff] %vm1338_vm5, %v1301_v8 }
 0x2ce   : > { %3658 = vmatprep.mubr.msk.f32.mxu0 %vm595_vm0, %v2769_v3  ;;  %v1560_v42 = vpop.permute.xlu0 %1559 }
 0x2cf   : > { %v917_v37 = vpop.permute.xlu1 %916  ;;  %1625 = vst.msk [vmem:[#allocation3 + $0x2d8] sm:$0xff] %vm952_vm3, %v1560_v42 }
 0x2d0   : > { %983 = vst.msk [vmem:[#allocation3 + $0x2d0] sm:$0xff] %vm952_vm3, %v917_v37 }
 0x2d2   : > { %v1753_v30 = vpop.permute.xlu0 %1752  ;;  %v2164_v1 = vld [vmem:[#allocation3 + $0x2c0] sm:$0xff] }
 0x2d3   : > { %v1110_v29 = vpop.permute.xlu1 %1109  ;;  %v2163_v34 = vld [vmem:[#allocation3 + $0x2b8] sm:$0xff]  ;;  %1818 = vst.msk [vmem:[#allocation3 + $0x2d8] sm:$0xff] %vm1145_vm4, %v1753_v30  ;;  %v2422_v48 = vpop.f32.mrb[18].mxu1  ;;  %2520 = vmatprep.mubr.f32.mxu1 %v2164_v1 }
 0x2d4   : > { %1176 = vst.msk [vmem:[#allocation3 + $0x2d0] sm:$0xff] %vm1145_vm4, %v1110_v29  ;;  %v2423_v28 = vadd.f32 %v5465_v61, %v2422_v48  ;;  %v2424_v35 = vpop.f32.mrb[19].mxu1  ;;  %2521 = vmatmul.mubr.f32.gmra.mrb[58].mxu1 %v2163_v34 }
 0x2d6   : > { %v2648_v6 = vadd.f32 %v5273_v50, %v2423_v28  ;;  %v1945_v52 = vpop.permute.xlu0 %1944 }
 0x2d7   : > { %v1303_v16 = vpop.permute.xlu1 %1302  ;;  %2010 = vst.msk [vmem:[#allocation3 + $0x2d8] sm:$0xff] %vm1338_vm5, %v1945_v52 }
 0x2d8   : > { %1369 = vst.msk [vmem:[#allocation3 + $0x2d0] sm:$0xff] %vm1338_vm5, %v1303_v16  ;;  %v2770_v32 = vmax.f32 %v2648_v6, 0.0 }
 0x2da   : > { %v1562_v10 = vpop.permute.xlu0 %1561  ;;  %3659 = vmatmul.mubr.msk.f32.gmra.mrb[64].mxu0 %vm595_vm0, %v2770_v32 }
 0x2db   : > { %v919_v47 = vpop.permute.xlu1 %918  ;;  %1626 = vst.msk [vmem:[#allocation3 + $0x2f0] sm:$0xff] %vm952_vm3, %v1562_v10 }
 0x2dc   : > { %984 = vst.msk [vmem:[#allocation3 + $0x2e8] sm:$0xff] %vm952_vm3, %v919_v47 }
 0x2de   : > { %v1755_v2 = vpop.permute.xlu0 %1754  ;;  %v2167_v5 = vld [vmem:[#allocation3 + $0x2d8] sm:$0xff] }
 0x2df   : > { %v1112_v22 = vpop.permute.xlu1 %1111  ;;  %v2427_v33 = vpop.f32.mrb[20].mxu1  ;;  %v2166_v57 = vld [vmem:[#allocation3 + $0x2d0] sm:$0xff]  ;;  %1819 = vst.msk [vmem:[#allocation3 + $0x2f0] sm:$0xff] %vm1145_vm4, %v1755_v2  ;;  %2525 = vmatprep.mubr.f32.mxu1 %v2167_v5 }
 0x2e0   : > { %1177 = vst.msk [vmem:[#allocation3 + $0x2e8] sm:$0xff] %vm1145_vm4, %v1112_v22  ;;  %v2428_v50 = vadd.f32 %v5465_v61, %v2427_v33  ;;  %v2429_v0 = vpop.f32.mrb[21].mxu1  ;;  %2526 = vmatmul.mubr.f32.gmra.mrb[60].mxu1 %v2166_v57 }
 0x2e2   : > { %v2653_v49 = vadd.f32 %v5286_v46, %v2428_v50  ;;  %v1947_v53 = vpop.permute.xlu0 %1946 }
 0x2e3   : > { %v1305_v27 = vpop.permute.xlu1 %1304  ;;  %2011 = vst.msk [vmem:[#allocation3 + $0x2f0] sm:$0xff] %vm1338_vm5, %v1947_v53 }
 0x2e4   : > { %v2771_v41 = vmax.f32 %v2653_v49, 0.0  ;;  %1370 = vst.msk [vmem:[#allocation3 + $0x2e8] sm:$0xff] %vm1338_vm5, %v1305_v27 }
 0x2e6   : > { %3661 = vmatprep.mubr.msk.f32.mxu0 %vm595_vm0, %v2771_v41 }
 0x2ea   : > { %v2170_v54 = vld [vmem:[#allocation3 + $0x2f0] sm:$0xff] }
 0x2eb   : > { %v2169_v24 = vld [vmem:[#allocation3 + $0x2e8] sm:$0xff]  ;;  %v2432_v45 = vpop.f32.mrb[22].mxu1  ;;  %2530 = vmatprep.mubr.f32.mxu1 %v2170_v54 }
 0x2ec   : > { %v2433_v9 = vadd.f32 %v5465_v61, %v2432_v45  ;;  %v2434_v11 = vpop.f32.mrb[23].mxu1  ;;  %2531 = vmatmul.mubr.f32.gmra.mrb[62].mxu1 %v2169_v24  ;;  %v5616_v45 = vld [vmem:[%s5802_s6] ss:$0 sm:$0xff] }
 0x2ed   : > { %3626 = vmatprep.mubr.msk.f32.mxu1 %vm595_vm0, %v2150_v38 }
 0x2ee   : > { %v2658_v46 = vadd.f32 %v5282_v51, %v2433_v9  ;;  %v2165_v51 = vld [vmem:[#allocation3 + $0x2c8] sm:$0xff] }
 0x2f0   : > { %v2772_v39 = vmax.f32 %v2658_v46, 0.0  ;;  %3627 = vmatmul.mubr.msk.f32.vlgmr.msra.gmra.mrb[64].mxu1 %vm595_vm0, %v2153_v62  ;;  %v3840_v46 = vld [vmem:[%s4275_s21 + $0x8] sm:$0xff] }
 0x2f1   : > { %3629 = vmatprep.mubr.msk.f32.mxu1 %vm595_vm0, %v2156_v40 }
 0x2f2   : > { %3662 = vmatmul.mubr.msk.f32.gmra.mrb[66].mxu0 %vm595_vm0, %v2772_v39 }
 0x2f4   : > { %3630 = vmatmul.mubr.msk.f32.gmra.mrb[66].mxu1 %vm595_vm0, %v2159_v31 }
 0x2f5   : > { %3632 = vmatprep.mubr.msk.f32.mxu1 %vm595_vm0, %v2162_v17 }
 0x2f7   : > { %v2437_v25 = vpop.f32.mrb[24].mxu1 }
 0x2f8   : > { %v2438_v15 = vadd.f32 %v5465_v61, %v2437_v25  ;;  %v2439_v59 = vpop.f32.mrb[25].mxu1  ;;  %3633 = vmatmul.mubr.msk.f32.gmra.mrb[68].mxu1 %vm595_vm0, %v2165_v51 }
 0x2f9   : > { %3635 = vmatprep.mubr.msk.f32.mxu1 %vm595_vm0, %v2168_v58 }
 0x2fa   : > { %v2663_v56 = vadd.f32 %v5296_v20, %v2438_v15 }
 0x2fc   : > { %v2773_v36 = vmax.f32 %v2663_v56, 0.0  ;;  %3636 = vmatmul.mubr.msk.f32.gmra.mrb[70].mxu1 %vm595_vm0, %v2171_v55 }
 0x2fe   : > { %3664 = vmatprep.mubr.msk.f32.mxu0 %vm595_vm0, %v2773_v36 }
 0x303   : > { %v2442_v60 = vpop.f32.mrb[26].mxu1 }
 0x304   : > { %v2443_v12 = vadd.f32 %v5465_v61, %v2442_v60  ;;  %v2444_v8 = vpop.f32.mrb[27].mxu1 }
 0x306   : > { %v2668_v3 = vadd.f32 %v5292_v4, %v2443_v12 }
 0x308   : > { %v2774_v26 = vmax.f32 %v2668_v3, 0.0 }
 0x30a   : > { %v2447_v37 = vpop.f32.mrb[28].mxu1  ;;  %3665 = vmatmul.mubr.msk.f32.gmra.mrb[68].mxu0 %vm595_vm0, %v2774_v26 }
 0x30b   : > { %v2448_v20 = vadd.f32 %v5465_v61, %v2447_v37  ;;  %v2449_v42 = vpop.f32.mrb[29].mxu1 }
 0x30d   : > { %v2673_v29 = vadd.f32 %v5345_v23, %v2448_v20 }
 0x30f   : > { %v2775_v34 = vmax.f32 %v2673_v29, 0.0  ;;  %v3842_v29 = vld [vmem:[%s4275_s21 + $0x18] sm:$0xff] }
 0x310   : > { %v2452_v30 = vpop.f32.mrb[30].mxu1 }
 0x311   : > { %v2453_v1 = vadd.f32 %v5465_v61, %v2452_v30  ;;  %v2454_v48 = vpop.f32.mrb[31].mxu1  ;;  %3667 = vmatprep.mubr.msk.f32.mxu0 %vm595_vm0, %v2775_v34  ;;  %v3843_v30 = vld [vmem:[%s4275_s21 + $0x10] sm:$0xff] }
 0x313   : > { %v2678_v28 = vadd.f32 %v5343_v18, %v2453_v1 }
 0x315   : > { %v2776_v35 = vmax.f32 %v2678_v28, 0.0 }
 0x317   : > { %3668 = vmatmul.mubr.msk.f32.gmra.mrb[70].mxu0 %vm595_vm0, %v2776_v35 }
 0x31f   : > { %v2457_v4 = vpop.f32.mrb[32].mxu1 }
 0x320   : > { %v2458_v16 = vadd.f32 %v5465_v61, %v2457_v4  ;;  %v2459_v6 = vpop.f32.mrb[33].mxu1 }
 0x322   : > { %v2683_v52 = vadd.f32 %v5351_v19, %v2458_v16 }
 0x324   : > { %v2777_v32 = vmax.f32 %v2683_v52, 0.0 }
 0x326   : > { %3670 = vmatprep.mubr.msk.f32.mxu0 %vm595_vm0, %v2777_v32 }
 0x32b   : > { %v2462_v23 = vpop.f32.mrb[34].mxu1 }
 0x32c   : > { %v2463_v47 = vadd.f32 %v5465_v61, %v2462_v23  ;;  %v2464_v10 = vpop.f32.mrb[35].mxu1 }
 0x32e   : > { %v2688_v22 = vadd.f32 %v5347_v14, %v2463_v47 }
 0x330   : > { %v2778_v33 = vmax.f32 %v2688_v22, 0.0  ;;  %v3844_v22 = vld [vmem:[%s4275_s21 + $0x28] sm:$0xff] }
 0x332   : > { %3671 = vmatmul.mubr.msk.f32.gmra.mrb[72].mxu0 %vm595_vm0, %v2778_v33 }
 0x337   : > { %v2467_v18 = vpop.f32.mrb[36].mxu1 }
 0x338   : > { %v2468_v57 = vadd.f32 %v5465_v61, %v2467_v18  ;;  %v2469_v2 = vpop.f32.mrb[37].mxu1  ;;  %v3845_v18 = vld [vmem:[%s4275_s21 + $0x20] sm:$0xff] }
 0x33a   : > { %v2693_v50 = vadd.f32 %v5392_v43, %v2468_v57 }
 0x33c   : > { %v2779_v19 = vmax.f32 %v2693_v50, 0.0 }
 0x33e   : > { %3673 = vmatprep.mubr.msk.f32.mxu0 %vm595_vm0, %v2779_v19 }
 0x343   : > { %v2472_v0 = vpop.f32.mrb[38].mxu1 }
 0x344   : > { %v2473_v5 = vadd.f32 %v5465_v61, %v2472_v0  ;;  %v2474_v49 = vpop.f32.mrb[39].mxu1 }
 0x346   : > { %v2698_v14 = vadd.f32 %v5388_v63, %v2473_v5 }
 0x348   : > { %v2780_v27 = vmax.f32 %v2698_v14, 0.0 }
 0x34a   : > { %3674 = vmatmul.mubr.msk.f32.gmra.mrb[74].mxu0 %vm595_vm0, %v2780_v27 }
 0x34f   : > { %v2477_v41 = vpop.f32.mrb[40].mxu1 }
 0x350   : > { %v2478_v53 = vadd.f32 %v5465_v61, %v2477_v41  ;;  %v2479_v24 = vpop.f32.mrb[41].mxu1  ;;  %v3846_v41 = vld [vmem:[%s4275_s21 + $0x38] sm:$0xff] }
 0x351   : > { %v3847_v24 = vld [vmem:[%s4275_s21 + $0x30] sm:$0xff] }
 0x352   : > { %v2703_v43 = vadd.f32 %v5432_v21, %v2478_v53  ;;  %v3841_v21 = vld [vmem:[%s4275_s21] sm:$0xff] }
 0x354   : > { %v2781_v54 = vmax.f32 %v2703_v43, 0.0 }
 0x355   : > { %v3648_v63 = vpop.f32.mrb[56].mxu0 }
 0x356   : > { %3676 = vmatprep.mubr.msk.f32.mxu0 %vm595_vm0, %v2781_v54  ;;  %v2972_v9 = vadd.f32 %v3648_v63, %v5616_v45  ;;  %v2966_v11 = vpop.f32.mrb[57].mxu0 }
 0x357   : > { %v2967_v38 = vadd.f32 %v5616_v45, %v2966_v11 }
 0x358   : > { %v3126_v62 = vadd.f32 %v3840_v46, %v2972_v9 }
 0x359   : > { %v3125_v39 = vadd.f32 %v3841_v21, %v2967_v38 }
 0x35a   : > { %v3158_v40 = vmax.f32 %v3126_v62, 0.0 }
 0x35b   : > { %v3157_v31 = vmax.f32 %v3125_v39, 0.0  ;;  %v2482_v17 = vpop.f32.mrb[42].mxu1 }
 0x35c   : > { %3190 = vst [vmem:[%s5625_s19 + $0x8] sm:$0xff] %v3158_v40  ;;  %v2483_v25 = vadd.f32 %v5465_v61, %v2482_v17  ;;  %v2484_v15 = vpop.f32.mrb[43].mxu1 }
 0x35d   : > { %3189 = vst [vmem:[%s5625_s19] sm:$0xff] %v3157_v31  ;;  %v3848_v31 = vld [vmem:[%s4275_s21 + $0x48] sm:$0xff] }
 0x35e   : > { %v2708_v59 = vadd.f32 %v5428_v13, %v2483_v25  ;;  %v3849_v25 = vld [vmem:[%s4275_s21 + $0x40] sm:$0xff] }
 0x360   : > { %v2782_v51 = vmax.f32 %v2708_v59, 0.0 }
 0x362   : > { %v2487_v56 = vpop.f32.mrb[44].mxu1  ;;  %3677 = vmatmul.mubr.msk.f32.gmra.mrb[76].mxu0 %vm595_vm0, %v2782_v51 }
 0x363   : > { %v2488_v58 = vadd.f32 %v5465_v61, %v2487_v56  ;;  %v2489_v55 = vpop.f32.mrb[45].mxu1 }
 0x365   : > { %v2713_v36 = vadd.f32 %v5559_v7, %v2488_v58 }
 0x367   : > { %v2783_v60 = vmax.f32 %v2713_v36, 0.0 }
 0x368   : > { %v2492_v12 = vpop.f32.mrb[46].mxu1 }
 0x369   : > { %v2493_v8 = vadd.f32 %v5465_v61, %v2492_v12  ;;  %v2494_v3 = vpop.f32.mrb[47].mxu1  ;;  %3679 = vmatprep.mubr.msk.f32.mxu0 %vm595_vm0, %v2783_v60 }
 0x36b   : > { %v2718_v13 = vadd.f32 %v5556_v44, %v2493_v8 }
 0x36d   : > { %v2784_v26 = vmax.f32 %v2718_v13, 0.0  ;;  %v3651_v37 = vpop.f32.mrb[58].mxu0 }
 0x36e   : > { %v2982_v20 = vadd.f32 %v3651_v37, %v5616_v45  ;;  %v2976_v42 = vpop.f32.mrb[59].mxu0 }
 0x36f   : > { %3680 = vmatmul.mubr.msk.f32.gmra.mrb[78].mxu0 %vm595_vm0, %v2784_v26  ;;  %v2977_v7 = vadd.f32 %v5616_v45, %v2976_v42 }
 0x370   : > { %v3128_v34 = vadd.f32 %v3842_v29, %v2982_v20 }
 0x371   : > { %v3127_v1 = vadd.f32 %v3843_v30, %v2977_v7 }
 0x372   : > { %v2497_v48 = vpop.f32.mrb[48].mxu1  ;;  %v3160_v28 = vmax.f32 %v3128_v34, 0.0 }
 0x373   : > { %v2499_v35 = vpop.f32.mrb[49].mxu1  ;;  %v3159_v44 = vmax.f32 %v3127_v1, 0.0  ;;  %v2498_v12 = vadd.f32 %v5465_v61, %v2497_v48  ;;  %v3850_v48 = vld [vmem:[%s4275_s21 + $0x58] sm:$0xff] }
 0x374   : > { %3192 = vst [vmem:[%s5625_s19 + $0x18] sm:$0xff] %v3160_v28 }
 0x375   : > { %3191 = vst [vmem:[%s5625_s19 + $0x10] sm:$0xff] %v3159_v44 }
 0x378   : > { %v2502_v4 = vpop.f32.mrb[50].mxu1 }
 0x379   : > { %v2504_v16 = vpop.f32.mrb[51].mxu1  ;;  %v2503_v60 = vadd.f32 %v5465_v61, %v2502_v4 }
 0x37a   : > { %v3851_v16 = vld [vmem:[%s4275_s21 + $0x50] sm:$0xff] }
 0x383   : > { %v2507_v6 = vpop.f32.mrb[52].mxu1 }
 0x384   : > { %v2509_v52 = vpop.f32.mrb[53].mxu1  ;;  %v2508_v29 = vadd.f32 %v5465_v61, %v2507_v6 }
 0x385   : > { %v3654_v32 = vpop.f32.mrb[60].mxu0 }
 0x386   : > { %v2992_v23 = vadd.f32 %v3654_v32, %v5616_v45  ;;  %v2986_v47 = vpop.f32.mrb[61].mxu0 }
 0x387   : > { %v2987_v10 = vadd.f32 %v5616_v45, %v2986_v47 }
 0x388   : > { %v3130_v33 = vadd.f32 %v3844_v22, %v2992_v23 }
 0x389   : > { %v3129_v57 = vadd.f32 %v3845_v18, %v2987_v10 }
 0x38a   : > { %v3162_v2 = vmax.f32 %v3130_v33, 0.0 }
 0x38b   : > { %v3161_v50 = vmax.f32 %v3129_v57, 0.0 }
 0x38c   : > { %3194 = vst [vmem:[%s5625_s19 + $0x28] sm:$0xff] %v3162_v2 }
 0x38d   : > { %3193 = vst [vmem:[%s5625_s19 + $0x20] sm:$0xff] %v3161_v50 }
 0x38f   : > { %v2512_v19 = vpop.f32.mrb[54].mxu1 }
 0x390   : > { %v2514_v0 = vpop.f32.mrb[55].mxu1  ;;  %v2513_v20 = vadd.f32 %v5465_v61, %v2512_v19 }
 0x392   : > { %v3657_v5 = vpop.f32.mrb[62].mxu0 }
 0x393   : > { %v3002_v49 = vadd.f32 %v3657_v5, %v5616_v45  ;;  %v2996_v14 = vpop.f32.mrb[63].mxu0 }
 0x394   : > { %v2997_v27 = vadd.f32 %v5616_v45, %v2996_v14 }
 0x395   : > { %v3132_v53 = vadd.f32 %v3846_v41, %v3002_v49 }
 0x396   : > { %v3131_v43 = vadd.f32 %v3847_v24, %v2997_v27 }
 0x397   : > { %v3164_v54 = vmax.f32 %v3132_v53, 0.0 }
 0x398   : > { %v3163_v63 = vmax.f32 %v3131_v43, 0.0 }
 0x399   : > { %3196 = vst [vmem:[%s5625_s19 + $0x38] sm:$0xff] %v3164_v54 }
 0x39a   : > { %3195 = vst [vmem:[%s5625_s19 + $0x30] sm:$0xff] %v3163_v63 }
 0x39b   : > { %v2517_v9 = vpop.f32.mrb[56].mxu1 }
 0x39c   : > { %v2519_v11 = vpop.f32.mrb[57].mxu1  ;;  %v2518_v6 = vadd.f32 %v5465_v61, %v2517_v9 }
 0x39d   : > { %v3852_v11 = vld [vmem:[%s4275_s21 + $0x68] sm:$0xff] }
 0x3a7   : > { %v2522_v38 = vpop.f32.mrb[58].mxu1 }
 0x3a8   : > { %v2524_v46 = vpop.f32.mrb[59].mxu1  ;;  %v2523_v23 = vadd.f32 %v5465_v61, %v2522_v38 }
 0x3a9   : > { %v3853_v46 = vld [vmem:[%s4275_s21 + $0x60] sm:$0xff] }
 0x3ad   : > { %v3660_v62 = vpop.f32.mrb[64].mxu0 }
 0x3ae   : > { %v3012_v21 = vadd.f32 %v3660_v62, %v5616_v45  ;;  %v3006_v39 = vpop.f32.mrb[65].mxu0 }
 0x3af   : > { %v3007_v40 = vadd.f32 %v5616_v45, %v3006_v39 }
 0x3b0   : > { %v3134_v17 = vadd.f32 %v3848_v31, %v3012_v21 }
 0x3b1   : > { %v3133_v15 = vadd.f32 %v3849_v25, %v3007_v40 }
 0x3b2   : > { %v3166_v59 = vmax.f32 %v3134_v17, 0.0 }
 0x3b3   : > { %v3165_v51 = vmax.f32 %v3133_v15, 0.0  ;;  %v2527_v56 = vpop.f32.mrb[60].mxu1  ;;  %v3854_v15 = vld [vmem:[%s4275_s21 + $0x78] sm:$0xff] }
 0x3b4   : > { %3198 = vst [vmem:[%s5625_s19 + $0x48] sm:$0xff] %v3166_v59  ;;  %v2529_v58 = vpop.f32.mrb[61].mxu1  ;;  %v2528_v0 = vadd.f32 %v5465_v61, %v2527_v56 }
 0x3b5   : > { %3197 = vst [vmem:[%s5625_s19 + $0x40] sm:$0xff] %v3165_v51  ;;  %v3855_v51 = vld [vmem:[%s4275_s21 + $0x70] sm:$0xff] }
 0x3bf   : > { %v2532_v55 = vpop.f32.mrb[62].mxu1 }
 0x3c0   : > { %v2534_v36 = vpop.f32.mrb[63].mxu1  ;;  %v2533_v19 = vadd.f32 %v5465_v61, %v2532_v55 }
 0x3c3   : > { %v3628_v8 = vpop.f32.mrb[64].mxu1 }
 0x3c4   : > { %v2728_v3 = vadd.f32 %v3628_v8, %v2503_v60  ;;  %v2722_v13 = vpop.f32.mrb[65].mxu1 }
 0x3c5   : > { %v2723_v26 = vadd.f32 %v2722_v13, %v2498_v12  ;;  %v3663_v37 = vpop.f32.mrb[66].mxu0 }
 0x3c6   : > { %v3022_v42 = vadd.f32 %v3663_v37, %v5616_v45  ;;  %v3016_v7 = vpop.f32.mrb[67].mxu0  ;;  %v2786_v28 = vmax.f32 %v2728_v3, 0.0  ;;  %v3856_v3 = vld [vmem:[%s4275_s21 + $0x88] sm:$0xff] }
 0x3c7   : > { %v2785_v34 = vmax.f32 %v2723_v26, 0.0  ;;  %v3017_v30 = vadd.f32 %v5616_v45, %v3016_v7  ;;  %v3631_v1 = vpop.f32.mrb[66].mxu1  ;;  %v3857_v26 = vld [vmem:[%s4275_s21 + $0x80] sm:$0xff] }
 0x3c8   : > { %v3136_v35 = vadd.f32 %v3850_v48, %v3022_v42  ;;  %v2738_v44 = vadd.f32 %v3631_v1, %v2513_v20  ;;  %v2732_v4 = vpop.f32.mrb[67].mxu1  ;;  %v3858_v1 = vld [vmem:[%s4275_s21 + $0x98] sm:$0xff]  ;;  %v3859_v48 = vld [vmem:[%s4275_s21 + $0x90] sm:$0xff] }
 0x3c9   : > { %v3135_v52 = vadd.f32 %v3851_v16, %v3017_v30  ;;  %v2733_v32 = vadd.f32 %v2732_v4, %v2508_v29  ;;  %3682 = vmatprep.mubr.msk.f32.mxu0 %vm595_vm0, %v2785_v34 }
 0x3ca   : > { %v3168_v47 = vmax.f32 %v3136_v35, 0.0  ;;  %3683 = vmatmul.mubr.msk.f32.gmra.mrb[80].mxu0 %vm595_vm0, %v2786_v28  ;;  %v2788_v18 = vmax.f32 %v2738_v44, 0.0 }
 0x3cb   : > { %v3167_v10 = vmax.f32 %v3135_v52, 0.0  ;;  %v2787_v22 = vmax.f32 %v2733_v32, 0.0  ;;  %v3634_v33 = vpop.f32.mrb[68].mxu1 }
 0x3cc   : > { %3200 = vst [vmem:[%s5625_s19 + $0x58] sm:$0xff] %v3168_v47  ;;  %v2748_v57 = vadd.f32 %v3634_v33, %v2523_v23  ;;  %v2742_v2 = vpop.f32.mrb[69].mxu1  ;;  %v3860_v47 = vld [vmem:[%s4275_s21 + $0xa8] sm:$0xff] }
 0x3cd   : > { %3199 = vst [vmem:[%s5625_s19 + $0x50] sm:$0xff] %v3167_v10  ;;  %v2743_v50 = vadd.f32 %v2742_v2, %v2518_v6  ;;  %3685 = vmatprep.mubr.msk.f32.mxu0 %vm595_vm0, %v2787_v22  ;;  %v3861_v10 = vld [vmem:[%s4275_s21 + $0xa0] sm:$0xff] }
 0x3ce   : > { %3686 = vmatmul.mubr.msk.f32.gmra.mrb[82].mxu0 %vm595_vm0, %v2788_v18  ;;  %v2790_v14 = vmax.f32 %v2748_v57, 0.0 }
 0x3cf   : > { %v2789_v5 = vmax.f32 %v2743_v50, 0.0  ;;  %v3637_v49 = vpop.f32.mrb[70].mxu1 }
 0x3d0   : > { %v2758_v27 = vadd.f32 %v3637_v49, %v2533_v19  ;;  %v2752_v41 = vpop.f32.mrb[71].mxu1  ;;  %v3863_v49 = vld [vmem:[%s4275_s21 + $0xb0] sm:$0xff] }
 0x3d1   : > { %v2753_v53 = vadd.f32 %v2752_v41, %v2528_v0  ;;  %3688 = vmatprep.mubr.msk.f32.mxu0 %vm595_vm0, %v2789_v5  ;;  %v3862_v0 = vld [vmem:[%s4275_s21 + $0xb8] sm:$0xff] }
 0x3d2   : > { %3689 = vmatmul.mubr.msk.f32.gmra.mrb[84].mxu0 %vm595_vm0, %v2790_v14  ;;  %v2792_v43 = vmax.f32 %v2758_v27, 0.0 }
 0x3d3   : > { %v2791_v24 = vmax.f32 %v2753_v53, 0.0 }
 0x3d5   : > { %3691 = vmatprep.mubr.msk.f32.mxu0 %vm595_vm0, %v2791_v24 }
 0x3d6   : > { %3692 = vmatmul.mubr.msk.f32.gmra.mrb[86].mxu0 %vm595_vm0, %v2792_v43 }
 0x3dd   : > { %v3666_v61 = vpop.f32.mrb[68].mxu0 }
 0x3de   : > { %v3032_v54 = vadd.f32 %v3666_v61, %v5616_v45  ;;  %v3026_v63 = vpop.f32.mrb[69].mxu0 }
 0x3df   : > { %v3027_v9 = vadd.f32 %v5616_v45, %v3026_v63 }
 0x3e0   : > { %v3138_v38 = vadd.f32 %v3852_v11, %v3032_v54  ;;  %v3864_v54 = vld [vmem:[%s4275_s21 + $0xc8] sm:$0xff] }
 0x3e1   : > { %v3137_v62 = vadd.f32 %v3853_v46, %v3027_v9  ;;  %v3865_v9 = vld [vmem:[%s4275_s21 + $0xc0] sm:$0xff] }
 0x3e2   : > { %v3170_v21 = vmax.f32 %v3138_v38, 0.0 }
 0x3e3   : > { %v3169_v39 = vmax.f32 %v3137_v62, 0.0 }
 0x3e4   : > { %3202 = vst [vmem:[%s5625_s19 + $0x68] sm:$0xff] %v3170_v21 }
 0x3e5   : > { %3201 = vst [vmem:[%s5625_s19 + $0x60] sm:$0xff] %v3169_v39 }
 0x3ea   : > { %v3669_v40 = vpop.f32.mrb[70].mxu0 }
 0x3eb   : > { %v3042_v31 = vadd.f32 %v3669_v40, %v5616_v45  ;;  %v3036_v17 = vpop.f32.mrb[71].mxu0 }
 0x3ec   : > { %v3037_v25 = vadd.f32 %v5616_v45, %v3036_v17 }
 0x3ed   : > { %v3140_v59 = vadd.f32 %v3854_v15, %v3042_v31  ;;  %v3866_v31 = vld [vmem:[%s4275_s21 + $0xd8] sm:$0xff] }
 0x3ee   : > { %v3139_v56 = vadd.f32 %v3855_v51, %v3037_v25  ;;  %v3867_v25 = vld [vmem:[%s4275_s21 + $0xd0] sm:$0xff] }
 0x3ef   : > { %v3172_v58 = vmax.f32 %v3140_v59, 0.0 }
 0x3f0   : > { %v3171_v55 = vmax.f32 %v3139_v56, 0.0 }
 0x3f1   : > { %3204 = vst [vmem:[%s5625_s19 + $0x78] sm:$0xff] %v3172_v58 }
 0x3f2   : > { %3203 = vst [vmem:[%s5625_s19 + $0x70] sm:$0xff] %v3171_v55 }
 0x405   : > { %v3672_v36 = vpop.f32.mrb[72].mxu0 }
 0x406   : > { %v3052_v60 = vadd.f32 %v3672_v36, %v5616_v45  ;;  %v3046_v12 = vpop.f32.mrb[73].mxu0 }
 0x407   : > { %v3047_v8 = vadd.f32 %v5616_v45, %v3046_v12 }
 0x408   : > { %v3142_v13 = vadd.f32 %v3856_v3, %v3052_v60  ;;  %v3868_v60 = vld [vmem:[%s4275_s21 + $0xe8] sm:$0xff] }
 0x409   : > { %v3141_v37 = vadd.f32 %v3857_v26, %v3047_v8  ;;  %v3869_v8 = vld [vmem:[%s4275_s21 + $0xe0] sm:$0xff] }
 0x40a   : > { %v3174_v20 = vmax.f32 %v3142_v13, 0.0 }
 0x40b   : > { %v3173_v42 = vmax.f32 %v3141_v37, 0.0 }
 0x40c   : > { %3206 = vst [vmem:[%s5625_s19 + $0x88] sm:$0xff] %v3174_v20 }
 0x40d   : > { %3205 = vst [vmem:[%s5625_s19 + $0x80] sm:$0xff] %v3173_v42 }
 0x41d   : > { %v3675_v7 = vpop.f32.mrb[74].mxu0 }
 0x41e   : > { %v3062_v29 = vadd.f32 %v3675_v7, %v5616_v45  ;;  %v3056_v34 = vpop.f32.mrb[75].mxu0 }
 0x41f   : > { %v3057_v30 = vadd.f32 %v5616_v45, %v3056_v34 }
 0x420   : > { %v3144_v28 = vadd.f32 %v3858_v1, %v3062_v29  ;;  %v3870_v29 = vld [vmem:[%s4275_s21 + $0xf8] sm:$0xff] }
 0x421   : > { %v3143_v35 = vadd.f32 %v3859_v48, %v3057_v30  ;;  %v3871_v30 = vld [vmem:[%s4275_s21 + $0xf0] sm:$0xff]  ;;  %s3941_s21 = smov [#allocation4]  }
 0x422   : > { %v3176_v44 = vmax.f32 %v3144_v28, 0.0  ;;  %s3876_s17 = sshll.u32 %s3941_s21, 4  ;;  %s3877_s17 = int_to_ptr.vmem [resolvable:$false] %s3876_s17 }
 0x423   : > { %v3175_v4 = vmax.f32 %v3143_v35, 0.0  ;;  %s3878_s18 = scalar_lea.vmem %s3877_s17, 8192  ;;  %p3879_p0 = scmp.lt.s32.totalorder %s5749_s23, %s3877_s17 }
 0x424   : > { %3208 = vst [vmem:[%s5625_s19 + $0x98] sm:$0xff] %v3176_v44  ;;  %p3880_p1 = scmp.lt.s32.totalorder %s3878_s18, %s3872_s14 }
 0x425   : > { %3207 = vst [vmem:[%s5625_s19 + $0x90] sm:$0xff] %v3175_v4 }
 0x426   : > { %p3881_p2 = por %p3880_p1, %p3879_p0 }
 0x428   : > { %p3882_p3 = pnand %p3881_p2, %p3875_p13 }
 0x435   : > { %v3678_v16 = vpop.f32.mrb[76].mxu0 }
 0x436   : > { %v3072_v52 = vadd.f32 %v3678_v16, %v5616_v45  ;;  %v3066_v32 = vpop.f32.mrb[77].mxu0 }
 0x437   : > { %v3067_v23 = vadd.f32 %v5616_v45, %v3066_v32 }
 0x438   : > { %v3146_v6 = vadd.f32 %v3860_v47, %v3072_v52 }
 0x439   : > { %v3145_v22 = vadd.f32 %v3861_v10, %v3067_v23 }
 0x43a   : > { %v3178_v33 = vmax.f32 %v3146_v6, 0.0 }
 0x43b   : > { %v3177_v18 = vmax.f32 %v3145_v22, 0.0 }
 0x43c   : > { %3210 = vst [vmem:[%s5625_s19 + $0xa8] sm:$0xff] %v3178_v33 }
 0x43d   : > { %3209 = vst [vmem:[%s5625_s19 + $0xa0] sm:$0xff] %v3177_v18 }
 0x442   : > { %v3681_v57 = vpop.f32.mrb[78].mxu0 }
 0x443   : > { %v3082_v2 = vadd.f32 %v3681_v57, %v5616_v45  ;;  %v3076_v50 = vpop.f32.mrb[79].mxu0 }
 0x444   : > { %v3077_v19 = vadd.f32 %v5616_v45, %v3076_v50 }
 0x445   : > { %v3148_v5 = vadd.f32 %v3862_v0, %v3082_v2 }
 0x446   : > { %v3147_v14 = vadd.f32 %v3863_v49, %v3077_v19 }
 0x447   : > { %v3180_v27 = vmax.f32 %v3148_v5, 0.0 }
 0x448   : > { %v3179_v41 = vmax.f32 %v3147_v14, 0.0 }
 0x449   : > { %3212 = vst [vmem:[%s5625_s19 + $0xb8] sm:$0xff] %v3180_v27 }
 0x44a   : > { %3211 = vst [vmem:[%s5625_s19 + $0xb0] sm:$0xff] %v3179_v41 }
 0x49d   : > { %v3684_v53 = vpop.f32.mrb[80].mxu0 }
 0x49e   : > { %v3092_v24 = vadd.f32 %v3684_v53, %v5616_v45  ;;  %v3086_v43 = vpop.f32.mrb[81].mxu0 }
 0x49f   : > { %v3087_v61 = vadd.f32 %v5616_v45, %v3086_v43 }
 0x4a0   : > { %v3150_v63 = vadd.f32 %v3864_v54, %v3092_v24 }
 0x4a1   : > { %v3149_v11 = vadd.f32 %v3865_v9, %v3087_v61  ;;  %v3687_v38 = vpop.f32.mrb[82].mxu0 }
 0x4a2   : > { %v3182_v46 = vmax.f32 %v3150_v63, 0.0  ;;  %v3102_v62 = vadd.f32 %v3687_v38, %v5616_v45  ;;  %v3096_v21 = vpop.f32.mrb[83].mxu0 }
 0x4a3   : > { %v3181_v39 = vmax.f32 %v3149_v11, 0.0  ;;  %v3097_v40 = vadd.f32 %v5616_v45, %v3096_v21 }
 0x4a4   : > { %3214 = vst [vmem:[%s5625_s19 + $0xc8] sm:$0xff] %v3182_v46  ;;  %v3152_v17 = vadd.f32 %v3866_v31, %v3102_v62 }
 0x4a5   : > { %3213 = vst [vmem:[%s5625_s19 + $0xc0] sm:$0xff] %v3181_v39  ;;  %v3151_v15 = vadd.f32 %v3867_v25, %v3097_v40  ;;  %v3690_v59 = vpop.f32.mrb[84].mxu0 }
 0x4a6   : > { %v3184_v51 = vmax.f32 %v3152_v17, 0.0  ;;  %v3112_v56 = vadd.f32 %v3690_v59, %v5616_v45  ;;  %v3106_v58 = vpop.f32.mrb[85].mxu0 }
 0x4a7   : > { %v3183_v55 = vmax.f32 %v3151_v15, 0.0  ;;  %v3107_v36 = vadd.f32 %v5616_v45, %v3106_v58 }
 0x4a8   : > { %3216 = vst [vmem:[%s5625_s19 + $0xd8] sm:$0xff] %v3184_v51  ;;  %v3154_v12 = vadd.f32 %v3868_v60, %v3112_v56 }
 0x4a9   : > { %3215 = vst [vmem:[%s5625_s19 + $0xd0] sm:$0xff] %v3183_v55  ;;  %v3153_v3 = vadd.f32 %v3869_v8, %v3107_v36  ;;  %v3693_v13 = vpop.f32.mrb[86].mxu0 }
 0x4aa   : > { %v3186_v26 = vmax.f32 %v3154_v12, 0.0  ;;  %v3122_v37 = vadd.f32 %v3693_v13, %v5616_v45  ;;  %v3116_v20 = vpop.f32.mrb[87].mxu0 }
 0x4ab   : > { %v3185_v42 = vmax.f32 %v3153_v3, 0.0  ;;  %v3117_v7 = vadd.f32 %v5616_v45, %v3116_v20 }
 0x4ac   : > { %3218 = vst [vmem:[%s5625_s19 + $0xe8] sm:$0xff] %v3186_v26  ;;  %v3156_v34 = vadd.f32 %v3870_v29, %v3122_v37 }
 0x4ad   : > { %3217 = vst [vmem:[%s5625_s19 + $0xe0] sm:$0xff] %v3185_v42  ;;  %v3155_v1 = vadd.f32 %v3871_v30, %v3117_v7 }
 0x4ae   : > { %v3188_v28 = vmax.f32 %v3156_v34, 0.0 }
 0x4af   : > { %v3187_v45 = vmax.f32 %v3155_v1, 0.0 }
 0x4b0   : > { %3220 = vst [vmem:[%s5625_s19 + $0xf8] sm:$0xff] %v3188_v28 }
 0x4b1   : > { %3219 = vst [vmem:[%s5625_s19 + $0xf0] sm:$0xff] %v3187_v45 }
 0x4b2   : > { %3885 = shalt.err (!%p3882_p3)
}
 0x4b3   : > { %s3886_s15 = scalar_lea.hbm %s5747_s13, 4096  ;;  %s3890_s20 = scalar_lea.hbm %s5803_s7, 8192 }
 0x4b4   : > { %p3887_p4 = scmp.ne.s32.totalorder %s5747_s13, %s3886_s15  ;;  %p3891_p9 = scmp.lt.u32.totalorder %s5747_s13, %s5803_s7 }
 0x4b5   : > { %p3892_p10 = scmp.lt.u32.totalorder %s3890_s20, %s3886_s15  ;;  %p3894_p12 = scmp.lt.u32.totalorder %s3886_s15, %s5747_s13 }
 0x4b6   : > { %p3888_p7 = pnand %p3887_p4, %p4022_p5 }
 0x4b7   : > { %p3893_p11 = por %p3892_p10, %p3891_p9 }
 0x4b8   : > { %p3889_p8 = pneg %p3888_p7 }
 0x4b9   : > { %p3895_p13 = por %p3894_p12, %p3893_p11 }
 0x4bb   : > { %p3896_p0 = pnand %p3895_p13, %p3889_p8 }
 0x4bd   : > { %3899 = shalt.err (!%p3896_p0)
}
 0x4be   : > { %s3942_s29 = smov 128   ;;  %s3943_s8 = smov 8  }
 0x4bf   : > { %3794 = dma.vmem_to_hbm [thread:$0]  (%p4022_p5), %s5749_s23, 4096, %s5747_s13, %s5755_s28, %s3942_s29, %s3942_s29, %s3943_s8  }
 0x4c0 PF: > { %p3800_p1 = scmp.ge.s32.totalorder %s3934_s27, 2  ;;  %s3251_s14 = sand.u32 1, %s3922_s24  }
 0x4c1   : > { %s3252_s21 = scalar_lea.sflag [#allocation5], %s3251_s14 }
 0x4c2   : > { %p3797_p2 = pnand %p3800_p1, %p4026_p6 }
 0x4c4   : > { %3917 = dma.done.wait (!%p3797_p2), %s3252_s21, 4096  }
 0x4c5   : > { %3919 = vsyncadd (!%p3797_p2), %s3252_s21, 4294963200  ;;  %p17_p3 = scmp.ge.s32.totalorder %s4009_s30, 4   ;;  %s5807_s24 = smov %s3926_s25 }
 0x4c6   : > { %s5808_s25 = smov %s3930_s26  ;;  %s5809_s26 = smov %s4020_s10 }
 0x4c7   : > { %s5810_s27 = smov %s4009_s30  ;;  %19 = sbr.rel (!%p17_p3) target bundleno = 3 (0x3), region = 86 }
 0x4ce   :  { %3257 = vsyncpa [#allocation5], 1 }
 0x4cf   :  { %3259 = vsyncpa [#allocation5 + $0x1], 1 }

</bundles_post_ra>
